<compile_context>
chip_gen: v7x
topology: tpu7x:2x2x1
jax: 0.10.0
libtpu: 0.0.40
codegen_flags: <defaults>
</compile_context>

<pallas_src>
import math

import jax
import jax.numpy as jnp
from jax.experimental import pallas as pl
from jax.experimental.pallas import tpu as pltpu


# ------------------------------- Pallas kernel ------------------------------ #
def _gated_gcn_stage(h, e, src_col, dst_col, dst_row, w_fused, b_fused, w_c, b_c):
    """One GatedGCN layer on in-VMEM values.

    h: (N, Din) bf16/f32, e: (E, Din) bf16/f32, src_col/dst_col: (E, 1) int32,
    dst_row: (1, E) int32, w_fused: (Din, 4*Dout) bf16 packed [Wa|Wd|We|Wb],
    b_fused: (1, 4*Dout) f32 packed [ba|bd|be|bb], w_c: (Din, Dout) bf16, b_c: (1, Dout) f32.
    Padded edges carry index -1 (match nothing).
    """
    f32 = jnp.float32
    bf16 = jnp.bfloat16
    n_nodes = h.shape[0]
    n_edges = e.shape[0]
    d_out = w_c.shape[1]

    hb = h.astype(bf16)
    eb = e.astype(bf16)

    # Fused [A|D|E|B] linear: one lane-dense MXU matmul, f32 accumulation.
    nd = jnp.dot(hb, w_fused, preferred_element_type=f32) + b_fused      # (N, 4*Dout)
    Ah = nd[:, 0 * d_out:1 * d_out]
    Dh = nd[:, 1 * d_out:2 * d_out]
    EhBh = nd[:, 2 * d_out:4 * d_out]                                    # [Eh|Bh] contiguous slice
    Ce = jnp.dot(eb, w_c, preferred_element_type=f32) + b_c              # (E, Dout)

    # One-hot gather / scatter masks built in-kernel, directly as bf16 (no f32 select).
    node_iota = jax.lax.broadcasted_iota(jnp.int32, (n_edges, n_nodes), 1)
    s_src = (node_iota == src_col).astype(bf16)                          # (E, N): feat[src]
    s_dst = (node_iota == dst_col).astype(bf16)                          # (E, N): feat[dst]
    t_dst = (jax.lax.broadcasted_iota(jnp.int32, (n_nodes, n_edges), 0)
             == dst_row).astype(bf16)                                    # (N, E): scatter to dst

    # Edge update: e' = Dh[dst] + Eh[src] + Ce  ([Eh|Bh] src-gather in one matmul).
    eb_src = jnp.dot(s_src, EhBh.astype(bf16), preferred_element_type=f32)   # (E, 2*Dout)
    dh_dst = jnp.dot(s_dst, Dh.astype(bf16), preferred_element_type=f32)     # (E, Dout)
    e_new = dh_dst + eb_src[:, :d_out] + Ce
    sigma = jax.nn.sigmoid(e_new)

    # Node update: gated mean aggregation; [num|den] scatter fused in one matmul.
    bh_src = eb_src[:, d_out:]
    agg = jnp.dot(t_dst, jnp.concatenate([sigma * bh_src, sigma], axis=1).astype(bf16),
                  preferred_element_type=f32)                            # (N, 2*Dout)
    num = agg[:, :d_out]
    den = agg[:, d_out:]
    h_new = Ah + num * pl.reciprocal(den + 1e-6, approx=True)

    return jnp.maximum(h_new, 0.0), jnp.maximum(e_new, 0.0)


def _alignn_kernel(h_ref, e_ref, a_ref,
                   gsrc_ref, gdst_ref, gdstT_ref,
                   lsrc_ref, ldst_ref, ldstT_ref,
                   w1_ref, b1_ref, w1c_ref, b1c_ref,
                   w2_ref, b2_ref, w2c_ref, b2c_ref,
                   h_out_ref, e_out_ref, a_out_ref):
    # Stage 1: node update on the atom graph.  Intermediate edge feats stay in VMEM values.
    h_new, e_mid = _gated_gcn_stage(
        h_ref[...], e_ref[...],
        gsrc_ref[...], gdst_ref[...], gdstT_ref[...],
        w1_ref[...], b1_ref[...], w1c_ref[...], b1c_ref[...])

    # Stage 2: edge update on the line graph (edge feats act as "nodes", angles as "edges").
    e_new, a_new = _gated_gcn_stage(
        e_mid, a_ref[...],
        lsrc_ref[...], ldst_ref[...], ldstT_ref[...],
        w2_ref[...], b2_ref[...], w2c_ref[...], b2c_ref[...])

    h_out_ref[...] = h_new.astype(h_out_ref.dtype)
    e_out_ref[...] = e_new.astype(e_out_ref.dtype)
    a_out_ref[...] = a_new.astype(a_out_ref.dtype)


# ------------------------------ JAX wrapper glue ----------------------------- #
def _round_up(x, m):
    return ((x + m - 1) // m) * m


def _pad2(x, rows, cols):
    return jnp.pad(x, ((0, rows - x.shape[0]), (0, cols - x.shape[1])))


def _prep_indices(edge_index, n_pad):
    """Pad edge indices to n_pad with -1 (matches no node) and emit column + row layouts."""
    n = edge_index.shape[1]
    src = jnp.full((n_pad,), -1, jnp.int32).at[:n].set(edge_index[0].astype(jnp.int32))
    dst = jnp.full((n_pad,), -1, jnp.int32).at[:n].set(edge_index[1].astype(jnp.int32))
    return src.reshape(n_pad, 1), dst.reshape(n_pad, 1), dst.reshape(1, n_pad)


def _pack_gcn_params(params, d_in_pad, d_out_pad):
    """Fuse linears into one zero-padded (d_in_pad, 4*d_out_pad) bf16 slab in [A|D|E|B]
    order (so [Eh|Bh] is a contiguous slice of the fused output); pad C likewise."""
    def padw(w):
        return _pad2(w, d_in_pad, d_out_pad)

    def padb(b):
        return jnp.pad(b, (0, d_out_pad - b.shape[0]))

    order = "ADEB"
    w_fused = jnp.concatenate([padw(params[k][0]) for k in order], axis=1).astype(jnp.bfloat16)
    b_fused = jnp.concatenate([padb(params[k][1]) for k in order]).reshape(1, -1).astype(jnp.float32)
    w_c = padw(params["C"][0]).astype(jnp.bfloat16)
    b_c = padb(params["C"][1]).reshape(1, -1).astype(jnp.float32)
    return w_fused, b_fused, w_c, b_c


def _estimate_vmem_bytes(n_p, e_p, a_p, d_in_p, d_hid_p, d_out2_p):
    """Rough peak-footprint estimate: inputs + outputs + masks + live f32 intermediates."""
    bf, f4 = 2, 4
    feats = (n_p * d_in_p + e_p * d_in_p + a_p * d_hid_p) * bf
    weights = (d_in_p * 5 * d_hid_p + d_hid_p * 5 * d_out2_p) * bf
    biases = (5 * d_hid_p + 5 * d_out2_p) * f4
    outs = (n_p * d_hid_p + e_p * d_out2_p + a_p * d_out2_p) * f4
    masks = 3 * (e_p * n_p + a_p * e_p) * bf
    inter1 = (n_p * 4 * d_hid_p + e_p * 4 * d_hid_p) * f4
    inter2 = (e_p * 4 * d_out2_p + a_p * 4 * d_out2_p) * f4
    return feats + weights + biases + outs + masks + inter1 + inter2


def alignn_layer(graph_edge_index, line_edge_index,
                 node_feats, edge_feats, angle_feats, params):
    """ALIGNNlayer forward: both GatedGCN stages in one fused pallas_call."""
    n, d_in = node_feats.shape
    e = edge_feats.shape[0]
    a, d_hid = angle_feats.shape
    d_out2 = params["edge_update"]["A"][0].shape[1]     # == input_dim of ALIGNNlayer

    # Pad rows to LANE multiples (128): they are the last dim of the gather/scatter masks and
    # the MXU K dim of the gather/scatter matmuls.  Feature dims also padded to 128.
    n_p, e_p, a_p = _round_up(n, 128), _round_up(e, 128), _round_up(a, 128)
    d_in_p = _round_up(d_in, 128)
    d_hid_p = _round_up(d_hid, 128)
    d_out2_p = _round_up(d_out2, 128)

    # Feature slabs travel HBM->VMEM as bf16 (they are consumed in bf16 anyway).
    h = _pad2(node_feats, n_p, d_in_p).astype(jnp.bfloat16)
    ef = _pad2(edge_feats, e_p, d_in_p).astype(jnp.bfloat16)
    af = _pad2(angle_feats, a_p, d_hid_p).astype(jnp.bfloat16)

    g_src, g_dst, g_dst_t = _prep_indices(graph_edge_index, e_p)
    l_src, l_dst, l_dst_t = _prep_indices(line_edge_index, a_p)

    w1, b1, w1c, b1c = _pack_gcn_params(params["node_update"], d_in_p, d_hid_p)
    w2, b2, w2c, b2c = _pack_gcn_params(params["edge_update"], d_hid_p, d_out2_p)

    args = (h, ef, af, g_src, g_dst, g_dst_t, l_src, l_dst, l_dst_t,
            w1, b1, w1c, b1c, w2, b2, w2c, b2c)
    out_dtype = node_feats.dtype
    out_shapes = (jax.ShapeDtypeStruct((n_p, d_hid_p), out_dtype),
                  jax.ShapeDtypeStruct((e_p, d_out2_p), out_dtype),
                  jax.ShapeDtypeStruct((a_p, d_out2_p), out_dtype))

    # Cost hint for XLA's scheduler around the custom call.
    def _stage_cost(nn, ne, di, do):
        flops = 2 * nn * di * 4 * do + 2 * ne * di * do + 2 * ne * nn * 5 * do + 12 * ne * do
        return flops, ne * do

    f1, t1 = _stage_cost(n_p, e_p, d_in_p, d_hid_p)
    f2, t2 = _stage_cost(e_p, a_p, d_hid_p, d_out2_p)
    bytes_accessed = sum(int(x.size) * x.dtype.itemsize for x in args)
    bytes_accessed += sum(math.prod(s.shape) * jnp.dtype(s.dtype).itemsize for s in out_shapes)

    # Size the scoped-VMEM limit to the real footprint (defaults are 16/32 MiB), clamped
    # under physical VMEM with headroom (v7x only has 64 MiB per TC).
    needed = _estimate_vmem_bytes(n_p, e_p, a_p, d_in_p, d_hid_p, d_out2_p)
    try:
        vmem_cap = int(pltpu.get_tpu_info().vmem_capacity_bytes)
    except Exception:
        vmem_cap = 64 << 20
    vmem_limit = int(min(max(2 * needed + (8 << 20), 32 << 20), int(0.9 * vmem_cap)))

    vmem = pl.BlockSpec(memory_space=pltpu.MemorySpace.VMEM)
    h_o, e_o, a_o = pl.pallas_call(
        _alignn_kernel,
        out_shape=out_shapes,
        in_specs=[vmem] * len(args),
        out_specs=(vmem, vmem, vmem),
        cost_estimate=pl.CostEstimate(flops=int(f1 + f2),
                                      transcendentals=int(t1 + t2),
                                      bytes_accessed=int(bytes_accessed)),
        compiler_params=pltpu.CompilerParams(vmem_limit_bytes=vmem_limit),
    )(*args)

    return h_o[:n, :d_hid], e_o[:e, :d_out2], a_o[:a, :d_out2]


# --------------------------- parameter construction -------------------------- #
def _init_linear(key, din, dout):
    kw, kb = jax.random.split(key)
    bound = 1.0 / jnp.sqrt(jnp.float32(din))
    w = jax.random.uniform(kw, (din, dout), jnp.float32, -bound, bound)  # stored pre-transposed
    b = jax.random.uniform(kb, (dout,), jnp.float32, -bound, bound)
    return w, b


def _init_gated_gcn(key, din, dout):
    keys = jax.random.split(key, 5)
    return {name: _init_linear(k, din, dout) for name, k in zip("ABCDE", keys)}


# ------------------------------ pure-JAX reference --------------------------- #
def _gated_gcn_ref(h, e, edge_index, params):
    def lin(x, p):
        return x @ p[0] + p[1]
    src, dst = edge_index[0], edge_index[1]
    Ah, Bh, Dh, Eh = lin(h, params["A"]), lin(h, params["B"]), lin(h, params["D"]), lin(h, params["E"])
    Ce = lin(e, params["C"])
    e_new = Dh[dst] + Eh[src] + Ce
    sigma = jax.nn.sigmoid(e_new)
    d_out = Ah.shape[1]
    num = jnp.zeros((h.shape[0], d_out), jnp.float32).at[dst].add(sigma * Bh[src])
    den = jnp.zeros((h.shape[0], d_out), jnp.float32).at[dst].add(sigma)
    h_new = Ah + num / (den + 1e-6)
    return jnp.maximum(h_new, 0.0), jnp.maximum(e_new, 0.0)


# ----------------------------------- main ------------------------------------ #
if __name__ == "__main__":
    key = jax.random.PRNGKey(0)
    N, E, A = 16, 40, 64          # nodes, edges, angles (= line-graph edges)
    input_dim, output_dim = 32, 64

    ks = jax.random.split(key, 8)
    node_feats = jax.random.normal(ks[0], (N, input_dim), jnp.float32)
    edge_feats = jax.random.normal(ks[1], (E, input_dim), jnp.float32)
    angle_feats = jax.random.normal(ks[2], (A, output_dim), jnp.float32)
    graph_edge_index = jax.random.randint(ks[3], (2, E), 0, N)
    line_edge_index = jax.random.randint(ks[4], (2, A), 0, E)

    params = {
        "node_update": _init_gated_gcn(ks[5], input_dim, output_dim),
        "edge_update": _init_gated_gcn(ks[6], output_dim, input_dim),
    }

    h_out, e_out, a_out = alignn_layer(
        graph_edge_index, line_edge_index, node_feats, edge_feats, angle_feats, params)
    jax.block_until_ready((h_out, e_out, a_out))

    # Correctness check against a pure-JAX f32 reference.  The kernel feeds the MXU bf16
    # operands (with f32 accumulation and f32 epilogue), so the tolerance is loosened
    # accordingly vs. an all-f32 implementation.
    h_ref, e_mid = _gated_gcn_ref(node_feats, edge_feats, graph_edge_index, params["node_update"])
    e_ref, a_ref = _gated_gcn_ref(e_mid, angle_feats, line_edge_index, params["edge_update"])
    assert h_out.shape == (N, output_dim)
    assert e_out.shape == (E, input_dim)
    assert a_out.shape == (A, input_dim)
    assert jnp.allclose(h_out, h_ref, atol=5e-2, rtol=5e-2)
    assert jnp.allclose(e_out, e_ref, atol=5e-2, rtol=5e-2)
    assert jnp.allclose(a_out, a_ref, atol=5e-2, rtol=5e-2)

    print("KERNEL_OK")
</pallas_src>

<mosaic_0001>
module attributes {stable_mosaic.version = 11 : i64} {
  func.func @_alignn_kernel(%arg0: memref<128x128xbf16, #tpu.memory_space<vmem>>, %arg1: memref<128x128xbf16, #tpu.memory_space<vmem>>, %arg2: memref<128x128xbf16, #tpu.memory_space<vmem>>, %arg3: memref<128x1xi32, #tpu.memory_space<vmem>>, %arg4: memref<128x1xi32, #tpu.memory_space<vmem>>, %arg5: memref<1x128xi32, #tpu.memory_space<vmem>>, %arg6: memref<128x1xi32, #tpu.memory_space<vmem>>, %arg7: memref<128x1xi32, #tpu.memory_space<vmem>>, %arg8: memref<1x128xi32, #tpu.memory_space<vmem>>, %arg9: memref<128x512xbf16, #tpu.memory_space<vmem>>, %arg10: memref<1x512xf32, #tpu.memory_space<vmem>>, %arg11: memref<128x128xbf16, #tpu.memory_space<vmem>>, %arg12: memref<1x128xf32, #tpu.memory_space<vmem>>, %arg13: memref<128x512xbf16, #tpu.memory_space<vmem>>, %arg14: memref<1x512xf32, #tpu.memory_space<vmem>>, %arg15: memref<128x128xbf16, #tpu.memory_space<vmem>>, %arg16: memref<1x128xf32, #tpu.memory_space<vmem>>, %arg17: memref<128x128xf32, #tpu.memory_space<vmem>>, %arg18: memref<128x128xf32, #tpu.memory_space<vmem>>, %arg19: memref<128x128xf32, #tpu.memory_space<vmem>>) attributes {dimension_semantics = [], scalar_prefetch = 0 : i64, scratch_operands = 0 : i64, tpu.core_type = #tpu.core_type<tc>} {
    %c0 = arith.constant 0 : index
    %c0_0 = arith.constant 0 : index
    %0 = vector.load %arg0[%c0, %c0_0] : memref<128x128xbf16, #tpu.memory_space<vmem>>, vector<128x128xbf16>
    %c0_1 = arith.constant 0 : index
    %c0_2 = arith.constant 0 : index
    %1 = vector.load %arg1[%c0_1, %c0_2] : memref<128x128xbf16, #tpu.memory_space<vmem>>, vector<128x128xbf16>
    %c0_3 = arith.constant 0 : index
    %c0_4 = arith.constant 0 : index
    %2 = vector.load %arg3[%c0_3, %c0_4] : memref<128x1xi32, #tpu.memory_space<vmem>>, vector<128x1xi32>
    %c0_5 = arith.constant 0 : index
    %c0_6 = arith.constant 0 : index
    %3 = vector.load %arg4[%c0_5, %c0_6] : memref<128x1xi32, #tpu.memory_space<vmem>>, vector<128x1xi32>
    %c0_7 = arith.constant 0 : index
    %c0_8 = arith.constant 0 : index
    %4 = vector.load %arg5[%c0_7, %c0_8] : memref<1x128xi32, #tpu.memory_space<vmem>>, vector<1x128xi32>
    %c0_9 = arith.constant 0 : index
    %c0_10 = arith.constant 0 : index
    %5 = vector.load %arg9[%c0_9, %c0_10] : memref<128x512xbf16, #tpu.memory_space<vmem>>, vector<128x512xbf16>
    %c0_11 = arith.constant 0 : index
    %c0_12 = arith.constant 0 : index
    %6 = vector.load %arg10[%c0_11, %c0_12] : memref<1x512xf32, #tpu.memory_space<vmem>>, vector<1x512xf32>
    %c0_13 = arith.constant 0 : index
    %c0_14 = arith.constant 0 : index
    %7 = vector.load %arg11[%c0_13, %c0_14] : memref<128x128xbf16, #tpu.memory_space<vmem>>, vector<128x128xbf16>
    %c0_15 = arith.constant 0 : index
    %c0_16 = arith.constant 0 : index
    %8 = vector.load %arg12[%c0_15, %c0_16] : memref<1x128xf32, #tpu.memory_space<vmem>>, vector<1x128xf32>
    %cst = arith.constant dense<0.000000e+00> : vector<128x512xf32>
    %9 = tpu.matmul %0, %5, %cst {dimension_numbers = #tpu.dot_dimension_numbers<[1], [0], [0], [1], [0, 0, 1, 1], [], []>} : vector<128x128xbf16>, vector<128x512xbf16>, vector<128x512xf32> -> vector<128x512xf32>
    %10 = vector.broadcast %6 : vector<1x512xf32> to vector<128x512xf32>
    %11 = arith.addf %9, %10 : vector<128x512xf32>
    %12 = vector.extract_strided_slice %11 {offsets = [0, 0], sizes = [128, 128], strides = [1, 1]} : vector<128x512xf32> to vector<128x128xf32>
    %13 = vector.extract_strided_slice %11 {offsets = [0, 128], sizes = [128, 128], strides = [1, 1]} : vector<128x512xf32> to vector<128x128xf32>
    %14 = vector.extract_strided_slice %11 {offsets = [0, 256], sizes = [128, 256], strides = [1, 1]} : vector<128x512xf32> to vector<128x256xf32>
    %cst_17 = arith.constant dense<0.000000e+00> : vector<128x128xf32>
    %15 = tpu.matmul %1, %7, %cst_17 {dimension_numbers = #tpu.dot_dimension_numbers<[1], [0], [0], [1], [0, 0, 1, 1], [], []>} : vector<128x128xbf16>, vector<128x128xbf16>, vector<128x128xf32> -> vector<128x128xf32>
    %16 = vector.broadcast %8 : vector<1x128xf32> to vector<128x128xf32>
    %17 = arith.addf %15, %16 : vector<128x128xf32>
    %18 = tpu.iota {dimensions = array<i32: 1>} : vector<128x128xi32>
    %19 = vector.broadcast %2 : vector<128x1xi32> to vector<128x128xi32>
    %20 = arith.cmpi eq, %18, %19 : vector<128x128xi32>
    %21 = arith.extui %20 : vector<128x128xi1> to vector<128x128xi32>
    %22 = arith.sitofp %21 : vector<128x128xi32> to vector<128x128xf32>
    %23 = arith.truncf %22 : vector<128x128xf32> to vector<128x128xbf16>
    %24 = vector.broadcast %3 : vector<128x1xi32> to vector<128x128xi32>
    %25 = arith.cmpi eq, %18, %24 : vector<128x128xi32>
    %26 = arith.extui %25 : vector<128x128xi1> to vector<128x128xi32>
    %27 = arith.sitofp %26 : vector<128x128xi32> to vector<128x128xf32>
    %28 = arith.truncf %27 : vector<128x128xf32> to vector<128x128xbf16>
    %29 = tpu.iota {dimensions = array<i32: 0>} : vector<128x128xi32>
    %30 = vector.broadcast %4 : vector<1x128xi32> to vector<128x128xi32>
    %31 = arith.cmpi eq, %29, %30 : vector<128x128xi32>
    %32 = arith.extui %31 : vector<128x128xi1> to vector<128x128xi32>
    %33 = arith.sitofp %32 : vector<128x128xi32> to vector<128x128xf32>
    %34 = arith.truncf %33 : vector<128x128xf32> to vector<128x128xbf16>
    %35 = arith.truncf %14 : vector<128x256xf32> to vector<128x256xbf16>
    %cst_18 = arith.constant dense<0.000000e+00> : vector<128x256xf32>
    %36 = tpu.matmul %23, %35, %cst_18 {dimension_numbers = #tpu.dot_dimension_numbers<[1], [0], [0], [1], [0, 0, 1, 1], [], []>} : vector<128x128xbf16>, vector<128x256xbf16>, vector<128x256xf32> -> vector<128x256xf32>
    %37 = arith.truncf %13 : vector<128x128xf32> to vector<128x128xbf16>
    %cst_19 = arith.constant dense<0.000000e+00> : vector<128x128xf32>
    %38 = tpu.matmul %28, %37, %cst_19 {dimension_numbers = #tpu.dot_dimension_numbers<[1], [0], [0], [1], [0, 0, 1, 1], [], []>} : vector<128x128xbf16>, vector<128x128xbf16>, vector<128x128xf32> -> vector<128x128xf32>
    %39 = vector.extract_strided_slice %36 {offsets = [0, 0], sizes = [128, 128], strides = [1, 1]} : vector<128x256xf32> to vector<128x128xf32>
    %40 = arith.addf %38, %39 : vector<128x128xf32>
    %41 = arith.addf %40, %17 : vector<128x128xf32>
    %42 = arith.negf %41 : vector<128x128xf32>
    %43 = math.exp %42 : vector<128x128xf32>
    %cst_20 = arith.constant 1.000000e+00 : f32
    %44 = vector.broadcast %cst_20 : f32 to vector<128x128xf32>
    %45 = arith.addf %44, %43 : vector<128x128xf32>
    %46 = arith.divf %44, %45 : vector<128x128xf32>
    %47 = vector.extract_strided_slice %36 {offsets = [0, 128], sizes = [128, 128], strides = [1, 1]} : vector<128x256xf32> to vector<128x128xf32>
    %48 = arith.mulf %46, %47 : vector<128x128xf32>
    %49 = tpu.concatenate %48, %46 in 1 : vector<128x128xf32>, vector<128x128xf32> -> vector<128x256xf32>
    %50 = arith.truncf %49 : vector<128x256xf32> to vector<128x256xbf16>
    %cst_21 = arith.constant dense<0.000000e+00> : vector<128x256xf32>
    %51 = tpu.matmul %34, %50, %cst_21 {dimension_numbers = #tpu.dot_dimension_numbers<[1], [0], [0], [1], [0, 0, 1, 1], [], []>} : vector<128x128xbf16>, vector<128x256xbf16>, vector<128x256xf32> -> vector<128x256xf32>
    %52 = vector.extract_strided_slice %51 {offsets = [0, 0], sizes = [128, 128], strides = [1, 1]} : vector<128x256xf32> to vector<128x128xf32>
    %53 = vector.extract_strided_slice %51 {offsets = [0, 128], sizes = [128, 128], strides = [1, 1]} : vector<128x256xf32> to vector<128x128xf32>
    %cst_22 = arith.constant 9.99999997E-7 : f32
    %54 = vector.broadcast %cst_22 : f32 to vector<128x128xf32>
    %55 = arith.addf %53, %54 : vector<128x128xf32>
    %56 = tpu.reciprocal %55 {approx = true} : vector<128x128xf32> -> vector<128x128xf32>
    %57 = arith.mulf %52, %56 : vector<128x128xf32>
    %58 = arith.addf %12, %57 : vector<128x128xf32>
    %cst_23 = arith.constant 0.000000e+00 : f32
    %59 = vector.broadcast %cst_23 : f32 to vector<128x128xf32>
    %60 = arith.maximumf %58, %59 : vector<128x128xf32>
    %cst_24 = arith.constant 0.000000e+00 : f32
    %61 = vector.broadcast %cst_24 : f32 to vector<128x128xf32>
    %62 = arith.maximumf %41, %61 : vector<128x128xf32>
    %c0_25 = arith.constant 0 : index
    %c0_26 = arith.constant 0 : index
    %63 = vector.load %arg2[%c0_25, %c0_26] : memref<128x128xbf16, #tpu.memory_space<vmem>>, vector<128x128xbf16>
    %c0_27 = arith.constant 0 : index
    %c0_28 = arith.constant 0 : index
    %64 = vector.load %arg6[%c0_27, %c0_28] : memref<128x1xi32, #tpu.memory_space<vmem>>, vector<128x1xi32>
    %c0_29 = arith.constant 0 : index
    %c0_30 = arith.constant 0 : index
    %65 = vector.load %arg7[%c0_29, %c0_30] : memref<128x1xi32, #tpu.memory_space<vmem>>, vector<128x1xi32>
    %c0_31 = arith.constant 0 : index
    %c0_32 = arith.constant 0 : index
    %66 = vector.load %arg8[%c0_31, %c0_32] : memref<1x128xi32, #tpu.memory_space<vmem>>, vector<1x128xi32>
    %c0_33 = arith.constant 0 : index
    %c0_34 = arith.constant 0 : index
    %67 = vector.load %arg13[%c0_33, %c0_34] : memref<128x512xbf16, #tpu.memory_space<vmem>>, vector<128x512xbf16>
    %c0_35 = arith.constant 0 : index
    %c0_36 = arith.constant 0 : index
    %68 = vector.load %arg14[%c0_35, %c0_36] : memref<1x512xf32, #tpu.memory_space<vmem>>, vector<1x512xf32>
    %c0_37 = arith.constant 0 : index
    %c0_38 = arith.constant 0 : index
    %69 = vector.load %arg15[%c0_37, %c0_38] : memref<128x128xbf16, #tpu.memory_space<vmem>>, vector<128x128xbf16>
    %c0_39 = arith.constant 0 : index
    %c0_40 = arith.constant 0 : index
    %70 = vector.load %arg16[%c0_39, %c0_40] : memref<1x128xf32, #tpu.memory_space<vmem>>, vector<1x128xf32>
    %71 = arith.truncf %62 : vector<128x128xf32> to vector<128x128xbf16>
    %cst_41 = arith.constant dense<0.000000e+00> : vector<128x512xf32>
    %72 = tpu.matmul %71, %67, %cst_41 {dimension_numbers = #tpu.dot_dimension_numbers<[1], [0], [0], [1], [0, 0, 1, 1], [], []>} : vector<128x128xbf16>, vector<128x512xbf16>, vector<128x512xf32> -> vector<128x512xf32>
    %73 = vector.broadcast %68 : vector<1x512xf32> to vector<128x512xf32>
    %74 = arith.addf %72, %73 : vector<128x512xf32>
    %75 = vector.extract_strided_slice %74 {offsets = [0, 0], sizes = [128, 128], strides = [1, 1]} : vector<128x512xf32> to vector<128x128xf32>
    %76 = vector.extract_strided_slice %74 {offsets = [0, 128], sizes = [128, 128], strides = [1, 1]} : vector<128x512xf32> to vector<128x128xf32>
    %77 = vector.extract_strided_slice %74 {offsets = [0, 256], sizes = [128, 256], strides = [1, 1]} : vector<128x512xf32> to vector<128x256xf32>
    %cst_42 = arith.constant dense<0.000000e+00> : vector<128x128xf32>
    %78 = tpu.matmul %63, %69, %cst_42 {dimension_numbers = #tpu.dot_dimension_numbers<[1], [0], [0], [1], [0, 0, 1, 1], [], []>} : vector<128x128xbf16>, vector<128x128xbf16>, vector<128x128xf32> -> vector<128x128xf32>
    %79 = vector.broadcast %70 : vector<1x128xf32> to vector<128x128xf32>
    %80 = arith.addf %78, %79 : vector<128x128xf32>
    %81 = tpu.iota {dimensions = array<i32: 1>} : vector<128x128xi32>
    %82 = vector.broadcast %64 : vector<128x1xi32> to vector<128x128xi32>
    %83 = arith.cmpi eq, %81, %82 : vector<128x128xi32>
    %84 = arith.extui %83 : vector<128x128xi1> to vector<128x128xi32>
    %85 = arith.sitofp %84 : vector<128x128xi32> to vector<128x128xf32>
    %86 = arith.truncf %85 : vector<128x128xf32> to vector<128x128xbf16>
    %87 = vector.broadcast %65 : vector<128x1xi32> to vector<128x128xi32>
    %88 = arith.cmpi eq, %81, %87 : vector<128x128xi32>
    %89 = arith.extui %88 : vector<128x128xi1> to vector<128x128xi32>
    %90 = arith.sitofp %89 : vector<128x128xi32> to vector<128x128xf32>
    %91 = arith.truncf %90 : vector<128x128xf32> to vector<128x128xbf16>
    %92 = tpu.iota {dimensions = array<i32: 0>} : vector<128x128xi32>
    %93 = vector.broadcast %66 : vector<1x128xi32> to vector<128x128xi32>
    %94 = arith.cmpi eq, %92, %93 : vector<128x128xi32>
    %95 = arith.extui %94 : vector<128x128xi1> to vector<128x128xi32>
    %96 = arith.sitofp %95 : vector<128x128xi32> to vector<128x128xf32>
    %97 = arith.truncf %96 : vector<128x128xf32> to vector<128x128xbf16>
    %98 = arith.truncf %77 : vector<128x256xf32> to vector<128x256xbf16>
    %cst_43 = arith.constant dense<0.000000e+00> : vector<128x256xf32>
    %99 = tpu.matmul %86, %98, %cst_43 {dimension_numbers = #tpu.dot_dimension_numbers<[1], [0], [0], [1], [0, 0, 1, 1], [], []>} : vector<128x128xbf16>, vector<128x256xbf16>, vector<128x256xf32> -> vector<128x256xf32>
    %100 = arith.truncf %76 : vector<128x128xf32> to vector<128x128xbf16>
    %cst_44 = arith.constant dense<0.000000e+00> : vector<128x128xf32>
    %101 = tpu.matmul %91, %100, %cst_44 {dimension_numbers = #tpu.dot_dimension_numbers<[1], [0], [0], [1], [0, 0, 1, 1], [], []>} : vector<128x128xbf16>, vector<128x128xbf16>, vector<128x128xf32> -> vector<128x128xf32>
    %102 = vector.extract_strided_slice %99 {offsets = [0, 0], sizes = [128, 128], strides = [1, 1]} : vector<128x256xf32> to vector<128x128xf32>
    %103 = arith.addf %101, %102 : vector<128x128xf32>
    %104 = arith.addf %103, %80 : vector<128x128xf32>
    %105 = arith.negf %104 : vector<128x128xf32>
    %106 = math.exp %105 : vector<128x128xf32>
    %cst_45 = arith.constant 1.000000e+00 : f32
    %107 = vector.broadcast %cst_45 : f32 to vector<128x128xf32>
    %108 = arith.addf %107, %106 : vector<128x128xf32>
    %109 = arith.divf %107, %108 : vector<128x128xf32>
    %110 = vector.extract_strided_slice %99 {offsets = [0, 128], sizes = [128, 128], strides = [1, 1]} : vector<128x256xf32> to vector<128x128xf32>
    %111 = arith.mulf %109, %110 : vector<128x128xf32>
    %112 = tpu.concatenate %111, %109 in 1 : vector<128x128xf32>, vector<128x128xf32> -> vector<128x256xf32>
    %113 = arith.truncf %112 : vector<128x256xf32> to vector<128x256xbf16>
    %cst_46 = arith.constant dense<0.000000e+00> : vector<128x256xf32>
    %114 = tpu.matmul %97, %113, %cst_46 {dimension_numbers = #tpu.dot_dimension_numbers<[1], [0], [0], [1], [0, 0, 1, 1], [], []>} : vector<128x128xbf16>, vector<128x256xbf16>, vector<128x256xf32> -> vector<128x256xf32>
    %115 = vector.extract_strided_slice %114 {offsets = [0, 0], sizes = [128, 128], strides = [1, 1]} : vector<128x256xf32> to vector<128x128xf32>
    %116 = vector.extract_strided_slice %114 {offsets = [0, 128], sizes = [128, 128], strides = [1, 1]} : vector<128x256xf32> to vector<128x128xf32>
    %cst_47 = arith.constant 9.99999997E-7 : f32
    %117 = vector.broadcast %cst_47 : f32 to vector<128x128xf32>
    %118 = arith.addf %116, %117 : vector<128x128xf32>
    %119 = tpu.reciprocal %118 {approx = true} : vector<128x128xf32> -> vector<128x128xf32>
    %120 = arith.mulf %115, %119 : vector<128x128xf32>
    %121 = arith.addf %75, %120 : vector<128x128xf32>
    %cst_48 = arith.constant 0.000000e+00 : f32
    %122 = vector.broadcast %cst_48 : f32 to vector<128x128xf32>
    %123 = arith.maximumf %121, %122 : vector<128x128xf32>
    %cst_49 = arith.constant 0.000000e+00 : f32
    %124 = vector.broadcast %cst_49 : f32 to vector<128x128xf32>
    %125 = arith.maximumf %104, %124 : vector<128x128xf32>
    %c0_50 = arith.constant 0 : index
    %c0_51 = arith.constant 0 : index
    %126 = vector.load %arg17[%c0_50, %c0_51] : memref<128x128xf32, #tpu.memory_space<vmem>>, vector<128x128xf32>
    tpu.vector_store %arg17[%c0_50, %c0_51], %60 {strides = array<i32>} : memref<128x128xf32, #tpu.memory_space<vmem>>, vector<128x128xf32>,
    %c0_52 = arith.constant 0 : index
    %c0_53 = arith.constant 0 : index
    %127 = vector.load %arg18[%c0_52, %c0_53] : memref<128x128xf32, #tpu.memory_space<vmem>>, vector<128x128xf32>
    tpu.vector_store %arg18[%c0_52, %c0_53], %123 {strides = array<i32>} : memref<128x128xf32, #tpu.memory_space<vmem>>, vector<128x128xf32>,
    %c0_54 = arith.constant 0 : index
    %c0_55 = arith.constant 0 : index
    %128 = vector.load %arg19[%c0_54, %c0_55] : memref<128x128xf32, #tpu.memory_space<vmem>>, vector<128x128xf32>
    tpu.vector_store %arg19[%c0_54, %c0_55], %125 {strides = array<i32>} : memref<128x128xf32, #tpu.memory_space<vmem>>, vector<128x128xf32>,
    return
  }
}

</mosaic_0001>

<bundles_post_ra>
// kernel: tpu_custom_call.1
= control target key start
LH: loop header
LB: loop body
LE: loop exit
PB: predicated region body
PF: predicated region fallthrough
CT: control target
= control target key end

     0   :  { %s6237_s0 = inlined_call_operand.hbm [shape: bf16[128,128], index: 0, kind: input, shape index: {}]   ;;  %s6238_s1 = inlined_call_operand.hbm [shape: bf16[128,128], index: 1, kind: input, shape index: {}]   ;;  %s6239_s2 = inlined_call_operand.hbm [shape: bf16[128,128], index: 2, kind: input, shape index: {}]   ;;  %s6240_s3 = inlined_call_operand.vmem [shape: s32[128,1], index: 3, kind: input, shape index: {}]   ;;  %s6241_s4 = inlined_call_operand.vmem [shape: s32[128,1], index: 4, kind: input, shape index: {}]   ;;  %s6242_s5 = inlined_call_operand.vmem [shape: s32[1,128], index: 5, kind: input, shape index: {}]   ;;  %s6243_s6 = inlined_call_operand.vmem [shape: s32[128,1], index: 6, kind: input, shape index: {}]   ;;  %s6244_s7 = inlined_call_operand.vmem [shape: s32[128,1], index: 7, kind: input, shape index: {}]   ;;  %s6245_s8 = inlined_call_operand.vmem [shape: s32[1,128], index: 8, kind: input, shape index: {}]   ;;  %s6246_s9 = inlined_call_operand.vmem [shape: bf16[128,512], index: 9, kind: input, shape index: {}]   ;;  %s6247_s10 = inlined_call_operand.vmem [shape: f32[1,512], index: 10, kind: input, shape index: {}]   ;;  %s6248_s11 = inlined_call_operand.hbm [shape: bf16[128,128], index: 11, kind: input, shape index: {}]   ;;  %s6249_s12 = inlined_call_operand.vmem [shape: f32[1,128], index: 12, kind: input, shape index: {}]   ;;  %s6250_s13 = inlined_call_operand.vmem [shape: bf16[128,512], index: 13, kind: input, shape index: {}]   ;;  %s6251_s14 = inlined_call_operand.vmem [shape: f32[1,512], index: 14, kind: input, shape index: {}]   ;;  %s6252_s15 = inlined_call_operand.hbm [shape: bf16[128,128], index: 15, kind: input, shape index: {}]   ;;  %s6253_s16 = inlined_call_operand.vmem [shape: f32[1,128], index: 16, kind: input, shape index: {}]   ;;  %s6254_s17 = inlined_call_operand.hbm [shape: f32[128,128], index: 17, kind: output, shape index: {0}]   ;;  %s6255_s18 = inlined_call_operand.hbm [shape: f32[128,128], index: 18, kind: output, shape index: {1}]   ;;  %s6256_s19 = inlined_call_operand.hbm [shape: f32[128,128], index: 19, kind: output, shape index: {2}]  }
   0x1   :  { %6280 = sst [smem:[#allocation62_spill]] %s6237_s0 }
   0x2   :  { %6281 = sst [smem:[#allocation63_spill]] %s6238_s1 }
   0x3   :  { %6282 = sst [smem:[#allocation64_spill]] %s6239_s2 }
   0x4   :  { %6283 = sst [smem:[#allocation65_spill]] %s6240_s3 }
   0x5   :  { %6284 = sst [smem:[#allocation66_spill]] %s6255_s18 }
   0x6   :  { %6285 = sst [smem:[#allocation67_spill]] %s6256_s19 }
   0x7   :  { %25 = vsyncpa [#allocation3], 0 }
   0x8   :  { %26 = vsyncpa [#allocation6], 0 }
   0x9   :  { %27 = vsyncpa [#allocation9], 0 }
   0xa   :  { %28 = vsyncpa [#allocation4], 0 }
   0xb   :  { %29 = vsyncpa [#allocation13], 0  ;;  %s4511_s0 = smov [#allocation5]   ;;  %s4512_s20 = smov [#allocation8]  }
   0xc   :  { %s47_s30 = sshll.u32 %s4511_s0, 4  ;;  %s87_s21 = sshll.u32 %s4512_s20, 4  ;;  %s48_s30 = int_to_ptr.vmem [resolvable:$true] %s47_s30  ;;  %s4625_s21 = int_to_ptr.vmem [resolvable:$true] %s87_s21 }
   0xd   :  { %s6286_s2 = sld [smem:[#allocation63_spill]] }
  0x13   :  { %s4325_s23 = scalar_lea.hbm %s6286_s2, 1024 }
  0x14   :  { %p4326_p0 = scmp.ne.s32.totalorder %s6286_s2, %s4325_s23  ;;  %p4329_p1 = scmp.lt.u32.totalorder %s4325_s23, %s6286_s2 }
  0x16   :  { %p4331_p2 = pnand %p4329_p1, %p4326_p0 }
  0x18   :  { %4334 = shalt.err (!%p4331_p2)
}
  0x19   :  { %s4335_s27 = scalar_lea.vmem %s48_s30, 1024  ;;  %p4340_p4 = scmp.lt.s32.totalorder %s48_s30, %s48_s30 }
  0x1a   :  { %p4336_p3 = scmp.ne.s32.totalorder %s48_s30, %s4335_s27  ;;  %p4341_p5 = scmp.lt.s32.totalorder %s4335_s27, %s4335_s27 }
  0x1c   :  { %p4342_p6 = por %p4341_p5, %p4340_p4 }
  0x1e   :  { %p4343_p7 = pnand %p4342_p6, %p4336_p3 }
  0x20   :  { %4346 = shalt.err (!%p4343_p7)
}
  0x21   :  { %s4513_s28 = smov 64   ;;  %s4514_s29 = smov 4  }
  0x22   :  { %53 = dma.hbm_to_vmem [thread:$0]  %s6286_s2, 1024, %s48_s30, [#allocation6], %s4513_s28, %s4513_s28, %s4514_s29  }
  0x23   :  { %s4347_s23 = scalar_lea.hbm %s6248_s11, 1024 }
  0x24   :  { %p4348_p8 = scmp.ne.s32.totalorder %s6248_s11, %s4347_s23  ;;  %p4351_p9 = scmp.lt.u32.totalorder %s4347_s23, %s6248_s11 }
  0x26   :  { %p4353_p10 = pnand %p4351_p9, %p4348_p8 }
  0x28   :  { %4356 = shalt.err (!%p4353_p10)
}
  0x29   :  { %s4357_s27 = scalar_lea.vmem %s4625_s21, 1024  ;;  %p4362_p12 = scmp.lt.s32.totalorder %s4625_s21, %s4625_s21 }
  0x2a   :  { %p4358_p11 = scmp.ne.s32.totalorder %s4625_s21, %s4357_s27  ;;  %p4363_p13 = scmp.lt.s32.totalorder %s4357_s27, %s4357_s27 }
  0x2c   :  { %p4364_p0 = por %p4363_p13, %p4362_p12 }
  0x2e   :  { %p4365_p1 = pnand %p4364_p0, %p4358_p11 }
  0x30   :  { %4368 = shalt.err (!%p4365_p1)
}
  0x31   :  { %93 = dma.hbm_to_vmem [thread:$0]  %s6248_s11, 1024, %s4625_s21, [#allocation9], %s4513_s28, %s4513_s28, %s4514_s29  }
  0x32   :  { %s4515_s0 = smov [#allocation2]   ;;  %s4516_s1 = smov [#allocation7]  }
  0x33   :  { %s35_s20 = sshll.u32 %s4515_s0, 4  ;;  %s59_s22 = sshll.u32 %s4516_s1, 4  ;;  %s36_s20 = int_to_ptr.vmem [resolvable:$true] %s35_s20  ;;  %s4662_s22 = int_to_ptr.vmem [resolvable:$true] %s59_s22 }
  0x34   :  { %s6287_s25 = sld [smem:[#allocation62_spill]] }
  0x3a   :  { %s4369_s3 = scalar_lea.hbm %s6287_s25, 1024 }
  0x3b   :  { %p4370_p2 = scmp.ne.s32.totalorder %s6287_s25, %s4369_s3  ;;  %p4373_p3 = scmp.lt.u32.totalorder %s4369_s3, %s6287_s25 }
  0x3d   :  { %p4375_p4 = pnand %p4373_p3, %p4370_p2 }
  0x3f   :  { %4378 = shalt.err (!%p4375_p4)
}
  0x40   :  { %s4379_s11 = scalar_lea.vmem %s36_s20, 1024  ;;  %p4384_p6 = scmp.lt.s32.totalorder %s36_s20, %s36_s20 }
  0x41   :  { %p4380_p5 = scmp.ne.s32.totalorder %s36_s20, %s4379_s11  ;;  %p4385_p7 = scmp.lt.s32.totalorder %s4379_s11, %s4379_s11 }
  0x43   :  { %p4386_p8 = por %p4385_p7, %p4384_p6 }
  0x45   :  { %p4387_p9 = pnand %p4386_p8, %p4380_p5 }
  0x47   :  { %4390 = shalt.err (!%p4387_p9)
}
  0x48   :  { %41 = dma.hbm_to_vmem [thread:$0]  %s6287_s25, 1024, %s36_s20, [#allocation3], %s4513_s28, %s4513_s28, %s4514_s29  }
  0x49   :  { %s6288_s18 = sld [smem:[#allocation64_spill]] }
  0x4f   :  { %s4391_s19 = scalar_lea.hbm %s6288_s18, 1024 }
  0x50   :  { %p4392_p10 = scmp.ne.s32.totalorder %s6288_s18, %s4391_s19  ;;  %p4395_p11 = scmp.lt.u32.totalorder %s4391_s19, %s6288_s18 }
  0x52   :  { %p4397_p12 = pnand %p4395_p11, %p4392_p10 }
  0x54   :  { %4400 = shalt.err (!%p4397_p12)
}
  0x55   :  { %s4401_s26 = scalar_lea.vmem %s4662_s22, 1024  ;;  %p4406_p0 = scmp.lt.s32.totalorder %s4662_s22, %s4662_s22 }
  0x56   :  { %p4402_p13 = scmp.ne.s32.totalorder %s4662_s22, %s4401_s26  ;;  %p4407_p1 = scmp.lt.s32.totalorder %s4401_s26, %s4401_s26 }
  0x58   :  { %p4408_p2 = por %p4407_p1, %p4406_p0 }
  0x5a   :  { %p4409_p3 = pnand %p4408_p2, %p4402_p13 }
  0x5c   :  { %4412 = shalt.err (!%p4409_p3)
}
  0x5d   :  { %65 = dma.hbm_to_vmem [thread:$0]  %s6288_s18, 1024, %s4662_s22, [#allocation6], %s4513_s28, %s4513_s28, %s4514_s29  }
  0x5e   :  { %s4517_s27 = smov [#allocation10]   ;;  %s4413_s2 = scalar_lea.hbm %s6252_s15, 1024 }
  0x5f   :  { %s105_s11 = sshll.u32 %s4517_s27, 4  ;;  %p4414_p4 = scmp.ne.s32.totalorder %s6252_s15, %s4413_s2  ;;  %s106_s11 = int_to_ptr.vmem [resolvable:$true] %s105_s11 }
  0x60   :  { %p4417_p5 = scmp.lt.u32.totalorder %s4413_s2, %s6252_s15 }
  0x62   :  { %p4419_p6 = pnand %p4417_p5, %p4414_p4 }
  0x64   :  { %4422 = shalt.err (!%p4419_p6)
}
  0x65   :  { %s4423_s24 = scalar_lea.vmem %s106_s11, 1024  ;;  %p4428_p8 = scmp.lt.s32.totalorder %s106_s11, %s106_s11 }
  0x66   :  { %p4424_p7 = scmp.ne.s32.totalorder %s106_s11, %s4423_s24  ;;  %p4429_p9 = scmp.lt.s32.totalorder %s4423_s24, %s4423_s24 }
  0x68   :  { %p4430_p10 = por %p4429_p9, %p4428_p8 }
  0x6a   :  { %p4431_p11 = pnand %p4430_p10, %p4424_p7 }
  0x6c   :  { %4434 = shalt.err (!%p4431_p11)
}
  0x6d   :  { %111 = dma.hbm_to_vmem [thread:$0]  %s6252_s15, 1024, %s106_s11, [#allocation9], %s4513_s28, %s4513_s28, %s4514_s29  }
  0x6e   :  { %4501 = dma.done.wait [#allocation3], 1024  }
  0x6f   :  { %4502 = vsyncadd [#allocation3], 4294966272 }
  0x70   :  { %4503 = dma.done.wait [#allocation6], 2048  }
  0x71   :  { %4504 = vsyncadd [#allocation6], 4294965248 }
  0x72   :  { %4505 = dma.done.wait [#allocation9], 2048  }
  0x73   :  { %4506 = vsyncadd [#allocation9], 4294965248  ;;  %v6264_v0 = vmov 0   ;;  %v3995_v1 = vld [vmem:[%s6246_s9 + $0x4] ss:$16 sps:$4 sm:$0xff]   ;;  %s6289_s22 = sld [smem:[#allocation65_spill]] }
  0x74   :  { %506 = vmatprep.mubr.bf16.mxu0 %v6264_v0  ;;  %546 = vmatprep.mubr.bf16.mxu1 %v6264_v0  ;;  %v3997_v2 = vld [vmem:[%s6246_s9] ss:$16 sps:$4 sm:$0xff]   ;;  %v3998_v3 = vld [vmem:[%s6246_s9 + $0x24] ss:$16 sps:$4 sm:$0xff]   ;;  %v4023_v17 = vld [vmem:[%s6246_s9 + $0xc] ss:$16 sps:$4 sm:$0xff]  }
  0x75   :  { %3994 = vset.pattern.permute.xlu1 %v6264_v0  ;;  %3993 = vset.pattern.permute.xlu0 %v6264_v0  ;;  %v4000_v4 = vld [vmem:[%s6246_s9 + $0x20] ss:$16 sps:$4 sm:$0xff]   ;;  %v4001_v5 = vld [vmem:[%s6246_s9 + $0x44] ss:$16 sps:$4 sm:$0xff]   ;;  %v4021_v22 = vld [vmem:[%s6246_s9 + $0x8] ss:$16 sps:$4 sm:$0xff]  }
  0x76   :  { %474 = vmatprep.subr.bf16.mxu0 %v3995_v1  ;;  %3963 = vmatprep.subr.bf16.mxu1 %v3995_v1  ;;  %v4003_v6 = vld [vmem:[%s6246_s9 + $0x40] ss:$16 sps:$4 sm:$0xff]   ;;  %v4004_v7 = vld [vmem:[%s6246_s9 + $0x64] ss:$16 sps:$4 sm:$0xff]   ;;  %v4026_v23 = vld [vmem:[%s6246_s9 + $0x2c] ss:$16 sps:$4 sm:$0xff]  }
  0x77   :  { %475 = vmatpush1.bf16.msra.mxu0 %v3997_v2  ;;  %3971 = vmatpush1.bf16.msra.mxu1 %v3997_v2  ;;  %v4006_v8 = vld [vmem:[%s6246_s9 + $0x60] ss:$16 sps:$4 sm:$0xff]   ;;  %v4007_v9 = vld [vmem:[%s6246_s9 + $0x84] ss:$16 sps:$4 sm:$0xff]   ;;  %v4024_v26 = vld [vmem:[%s6246_s9 + $0x28] ss:$16 sps:$4 sm:$0xff]  }
  0x78   :  { %476 = vmatprep.subr.bf16.mxu0 %v3998_v3  ;;  %3964 = vmatprep.subr.bf16.mxu1 %v3998_v3  ;;  %v4009_v10 = vld [vmem:[%s6246_s9 + $0x80] ss:$16 sps:$4 sm:$0xff]   ;;  %v4010_v11 = vld [vmem:[%s6246_s9 + $0xa4] ss:$16 sps:$4 sm:$0xff]   ;;  %v4031_v27 = vld [vmem:[%s6246_s9 + $0x4c] ss:$16 sps:$4 sm:$0xff]  }
  0x79   :  { %v4012_v12 = vld [vmem:[%s6246_s9 + $0xa0] ss:$16 sps:$4 sm:$0xff]   ;;  %v4013_v13 = vld [vmem:[%s6246_s9 + $0xc4] ss:$16 sps:$4 sm:$0xff]   ;;  %v165_v24 = vld [vmem:[%s6289_s22 + $0x18] sm:$0xff] }
  0x7a   :  { %v4015_v14 = vld [vmem:[%s6246_s9 + $0xc0] ss:$16 sps:$4 sm:$0xff]   ;;  %v4016_v15 = vld [vmem:[%s6246_s9 + $0xe4] ss:$16 sps:$4 sm:$0xff]   ;;  %v163_v25 = vld [vmem:[%s6289_s22 + $0x8] sm:$0xff] }
  0x7b   :  { %477 = vmatpush1.bf16.msra.mxu0 %v4000_v4  ;;  %3972 = vmatpush1.bf16.msra.mxu1 %v4000_v4  ;;  %v4018_v16 = vld [vmem:[%s6246_s9 + $0xe0] ss:$16 sps:$4 sm:$0xff]   ;;  %v4801_v28 = vld [vmem:[#allocation2 + $0x8] sm:$0xff]   ;;  %v169_v34 = vld [vmem:[%s6289_s22 + $0x38] sm:$0xff] }
  0x7c   :  { %478 = vmatprep.subr.bf16.mxu0 %v4001_v5  ;;  %3965 = vmatprep.subr.bf16.mxu1 %v4001_v5  ;;  %v164_v18 = vld [vmem:[%s6289_s22 + $0x10] sm:$0xff]  ;;  %v162_v19 = vld [vmem:[%s6289_s22] sm:$0xff]  ;;  %v4803_v29 = vld [vmem:[#allocation2 + $0x28] sm:$0xff]  }
  0x7d   :  { %v4775_v20 = vld [vmem:[#allocation2] sm:$0xff]   ;;  %908 = vperm.xlu1 %3994, %v164_v18   ;;  %902 = vperm.xlu0 %3993, %v162_v19   ;;  %v167_v30 = vld [vmem:[%s6289_s22 + $0x28] sm:$0xff]  ;;  %v168_v35 = vld [vmem:[%s6289_s22 + $0x30] sm:$0xff] }
  0x7e   :  { %v4777_v21 = vld [vmem:[#allocation2 + $0x20] sm:$0xff]   ;;  %v4029_v32 = vld [vmem:[%s6246_s9 + $0x48] ss:$16 sps:$4 sm:$0xff]   ;;  %v4034_v33 = vld [vmem:[%s6246_s9 + $0x6c] ss:$16 sps:$4 sm:$0xff]  }
  0x7f   :  { %479 = vmatpush1.bf16.msra.mxu0 %v4003_v6  ;;  %3973 = vmatpush1.bf16.msra.mxu1 %v4003_v6  ;;  %v166_v31 = vld [vmem:[%s6289_s22 + $0x20] sm:$0xff]  ;;  %v4032_v36 = vld [vmem:[%s6246_s9 + $0x68] ss:$16 sps:$4 sm:$0xff]   ;;  %v4039_v37 = vld [vmem:[%s6246_s9 + $0x8c] ss:$16 sps:$4 sm:$0xff]  }
  0x80   :  { %480 = vmatprep.subr.bf16.mxu0 %v4004_v7  ;;  %3966 = vmatprep.subr.bf16.mxu1 %v4004_v7  ;;  %v4833_v38 = vld [vmem:[#allocation2 + $0x10] sm:$0xff]   ;;  %v179_v40 = vld [vmem:[%s6241_s4 + $0x8] sm:$0xff]  ;;  %v178_v41 = vld [vmem:[%s6241_s4] sm:$0xff] }
  0x81   :  { %911 = vperm.xlu1 %3994, %v165_v24   ;;  %905 = vperm.xlu0 %3993, %v163_v25   ;;  %v4835_v39 = vld [vmem:[#allocation2 + $0x30] sm:$0xff]   ;;  %v4037_v42 = vld [vmem:[%s6246_s9 + $0x88] ss:$16 sps:$4 sm:$0xff]   ;;  %v4042_v43 = vld [vmem:[%s6246_s9 + $0xac] ss:$16 sps:$4 sm:$0xff]  }
  0x82   :  { %v4040_v44 = vld [vmem:[%s6246_s9 + $0xa8] ss:$16 sps:$4 sm:$0xff]   ;;  %v4047_v45 = vld [vmem:[%s6246_s9 + $0xcc] ss:$16 sps:$4 sm:$0xff]   ;;  %v180_v47 = vld [vmem:[%s6241_s4 + $0x10] sm:$0xff] }
  0x83   :  { %481 = vmatpush1.bf16.msra.mxu0 %v4006_v8  ;;  %3974 = vmatpush1.bf16.msra.mxu1 %v4006_v8  ;;  %v181_v46 = vld [vmem:[%s6241_s4 + $0x18] sm:$0xff]  ;;  %v4051_v48 = vld [vmem:[#allocation8] sm:$0xff]   ;;  %v171_v51 = vld [vmem:[%s6289_s22 + $0x48] sm:$0xff] }
  0x84   :  { %482 = vmatprep.subr.bf16.mxu0 %v4007_v9  ;;  %3967 = vmatprep.subr.bf16.mxu1 %v4007_v9  ;;  %v4865_v49 = vld [vmem:[#allocation2 + $0x18] sm:$0xff]   ;;  %v170_v52 = vld [vmem:[%s6289_s22 + $0x40] sm:$0xff]  ;;  %v4052_v55 = vld [vmem:[#allocation8 + $0x8] sm:$0xff]  }
  0x85   :  { %917 = vperm.xlu1 %3994, %v167_v30   ;;  %914 = vperm.xlu0 %3993, %v166_v31   ;;  %v4867_v50 = vld [vmem:[#allocation2 + $0x38] sm:$0xff]   ;;  %v183_v56 = vld [vmem:[%s6241_s4 + $0x28] sm:$0xff]  ;;  %v182_v57 = vld [vmem:[%s6241_s4 + $0x20] sm:$0xff] }
  0x86   :  { %v4045_v53 = vld [vmem:[%s6246_s9 + $0xc8] ss:$16 sps:$4 sm:$0xff]   ;;  %v4050_v54 = vld [vmem:[%s6246_s9 + $0xec] ss:$16 sps:$4 sm:$0xff]   ;;  %v4053_v59 = vld [vmem:[#allocation8 + $0x10] sm:$0xff]  }
  0x87   :  { %483 = vmatpush1.bf16.msra.mxu0 %v4009_v10  ;;  %3975 = vmatpush1.bf16.msra.mxu1 %v4009_v10  ;;  %v4048_v58 = vld [vmem:[%s6246_s9 + $0xe8] ss:$16 sps:$4 sm:$0xff]   ;;  %v184_v61 = vld [vmem:[%s6241_s4 + $0x30] sm:$0xff]  ;;  %v186_v2 = vld [vmem:[%s6241_s4 + $0x40] sm:$0xff] }
  0x88   :  { %484 = vmatprep.subr.bf16.mxu0 %v4010_v11  ;;  %3968 = vmatprep.subr.bf16.mxu1 %v4010_v11  ;;  %v185_v60 = vld [vmem:[%s6241_s4 + $0x38] sm:$0xff]  ;;  %v172_v63 = vld [vmem:[%s6289_s22 + $0x50] sm:$0xff]  ;;  %v187_v1 = vld [vmem:[%s6241_s4 + $0x48] sm:$0xff] }
  0x89   :  { %923 = vperm.xlu1 %3994, %v169_v34   ;;  %920 = vperm.xlu0 %3993, %v168_v35   ;;  %v173_v62 = vld [vmem:[%s6289_s22 + $0x58] sm:$0xff]  ;;  %v188_v4 = vld [vmem:[%s6241_s4 + $0x50] sm:$0xff]  ;;  %v175_v5 = vld [vmem:[%s6289_s22 + $0x68] sm:$0xff] }
  0x8a   :  { %v189_v3 = vld [vmem:[%s6241_s4 + $0x58] sm:$0xff]  ;;  %v174_v6 = vld [vmem:[%s6289_s22 + $0x60] sm:$0xff]  ;;  %v191_v7 = vld [vmem:[%s6241_s4 + $0x68] sm:$0xff] }
  0x8b   :  { %485 = vmatpush1.bf16.msra.mxu0 %v4012_v12  ;;  %3976 = vmatpush1.bf16.msra.mxu1 %v4012_v12  ;;  %v190_v8 = vld [vmem:[%s6241_s4 + $0x60] sm:$0xff]  ;;  %v193_v9 = vld [vmem:[%s6241_s4 + $0x78] sm:$0xff]  ;;  %v192_v10 = vld [vmem:[%s6241_s4 + $0x70] sm:$0xff] }
  0x8c   :  { %486 = vmatprep.subr.bf16.mxu0 %v4013_v13  ;;  %3969 = vmatprep.subr.bf16.mxu1 %v4013_v13  ;;  %v177_v11 = vld [vmem:[%s6289_s22 + $0x78] sm:$0xff]  ;;  %v176_v12 = vld [vmem:[%s6289_s22 + $0x70] sm:$0xff]  ;;  %v1790_v13 = vld [vmem:[%s6243_s6 + $0x8] sm:$0xff] }
  0x8d   :  { %1009 = vperm.xlu1 %3994, %v179_v40   ;;  %1006 = vperm.xlu0 %3993, %v178_v41   ;;  %v1793_v18 = vld [vmem:[%s6243_s6 + $0x20] sm:$0xff]  ;;  %v1796_v19 = vld [vmem:[%s6243_s6 + $0x38] sm:$0xff]  ;;  %v1807_v24 = vld [vmem:[%s6244_s7 + $0x10] sm:$0xff] }
  0x8e   :  { %v4054_v25 = vld [vmem:[#allocation8 + $0x18] sm:$0xff]   ;;  %v1809_v30 = vld [vmem:[%s6244_s7 + $0x20] sm:$0xff]  ;;  %v4056_v31 = vld [vmem:[#allocation8 + $0x28] sm:$0xff]  }
  0x8f   :  { %487 = vmatpush1.bf16.msra.mxu0 %v4015_v14  ;;  %3977 = vmatpush1.bf16.msra.mxu1 %v4015_v14  ;;  %v1789_v14 = vld [vmem:[%s6243_s6] sm:$0xff]  ;;  %v4057_v34 = vld [vmem:[#allocation8 + $0x30] sm:$0xff]   ;;  %v1800_v35 = vld [vmem:[%s6243_s6 + $0x58] sm:$0xff] }
  0x90   :  { %488 = vmatprep.subr.bf16.mxu0 %v4016_v15  ;;  %3970 = vmatprep.subr.bf16.mxu1 %v4016_v15  ;;  %v1792_v15 = vld [vmem:[%s6243_s6 + $0x18] sm:$0xff]  ;;  %v4059_v40 = vld [vmem:[#allocation5] sm:$0xff]   ;;  %v4060_v41 = vld [vmem:[#allocation5 + $0x8] sm:$0xff]  }
  0x91   :  { %1015 = vperm.xlu1 %3994, %v181_v46   ;;  %1012 = vperm.xlu0 %3993, %v180_v47   ;;  %v1818_v46 = vld [vmem:[%s6244_s7 + $0x68] sm:$0xff]  ;;  %v1817_v47 = vld [vmem:[%s6244_s7 + $0x60] sm:$0xff] }
  0x93   :  { %489 = vmatpush1.bf16.msra.mxu0 %v4018_v16  ;;  %3978 = vmatpush1.bf16.msra.mxu1 %v4018_v16  ;;  %v1791_v16 = vld [vmem:[%s6243_s6 + $0x10] sm:$0xff] }
  0x94   :  { %587 = vmatprep.subr.bf16.mxu1 %v4023_v17  ;;  %3835 = vmatprep.subr.bf16.mxu0 %v4051_v48  ;;  %v1794_v17 = vld [vmem:[%s6243_s6 + $0x28] sm:$0xff] }
  0x95   :  { %929 = vperm.xlu1 %3994, %v171_v51   ;;  %926 = vperm.xlu0 %3993, %v170_v52   ;;  %v1803_v51 = vld [vmem:[%s6243_s6 + $0x70] sm:$0xff] }
  0x96   :  { %507 = vmatmul.mubr.bf16.vlgmr.msra.gmra.mrb[0].mxu0 %v4775_v20  ;;  %547 = vmatmul.mubr.bf16.vlgmr.msra.gmra.mrb[0].mxu1 %v4777_v21 }
  0x97   :  { %588 = vmatpush1.bf16.msra.mxu1 %v4021_v22  ;;  %516 = vmatprep.mubr.bf16.mxu0 %v6264_v0  ;;  %v1805_v22 = vld [vmem:[%s6244_s7] sm:$0xff] }
  0x98   :  { %589 = vmatprep.subr.bf16.mxu1 %v4026_v23  ;;  %556 = vmatprep.mubr.bf16.mxu1 %v6264_v0  ;;  %v1808_v23 = vld [vmem:[%s6244_s7 + $0x18] sm:$0xff] }
  0x99   :  { %3836 = vmatpush3.bf16.msra.mxu0 %v4051_v48  ;;  %1021 = vperm.xlu1 %3994, %v183_v56   ;;  %v1820_v48 = vld [vmem:[%s6244_s7 + $0x78] sm:$0xff] }
  0x9a   :  { %3837 = vmatprep.subr.bf16.mxu0 %v4052_v55  ;;  %1018 = vperm.xlu0 %3993, %v182_v57   ;;  %v4062_v56 = vld [vmem:[#allocation5 + $0x18] sm:$0xff]  }
  0x9b   :  { %590 = vmatpush1.bf16.msra.mxu1 %v4024_v26  ;;  %v1798_v26 = vld [vmem:[%s6243_s6 + $0x48] sm:$0xff] }
  0x9c   :  { %591 = vmatprep.subr.bf16.mxu1 %v4031_v27  ;;  %v1797_v27 = vld [vmem:[%s6243_s6 + $0x40] sm:$0xff] }
  0x9d   :  { %3838 = vmatpush3.bf16.msra.mxu0 %v4052_v55  ;;  %1027 = vperm.xlu1 %3994, %v185_v60   ;;  %v246_v55 = vlaneseq }
  0x9e   :  { %517 = vmatmul.mubr.bf16.gmra.mrb[4].mxu0 %v4801_v28  ;;  %557 = vmatmul.mubr.bf16.gmra.mrb[4].mxu1 %v4803_v29 }
  0x9f   :  { %592 = vmatpush1.bf16.msra.mxu1 %v4029_v32  ;;  %526 = vmatprep.mubr.bf16.mxu0 %v6264_v0  ;;  %v1812_v32 = vld [vmem:[%s6244_s7 + $0x38] sm:$0xff]  ;;  %v5054_v57 = vand.u32 127, %v246_v55 }
  0xa0   :  { %593 = vmatprep.subr.bf16.mxu1 %v4034_v33  ;;  %566 = vmatprep.mubr.bf16.mxu1 %v6264_v0  ;;  %v1811_v33 = vld [vmem:[%s6244_s7 + $0x30] sm:$0xff] }
  0xa1   :  { %3839 = vmatprep.subr.bf16.mxu0 %v4053_v59  ;;  %1024 = vperm.xlu0 %3993, %v184_v61   ;;  %v4063_v61 = vld [vmem:[#allocation5 + $0x20] sm:$0xff]  }
  0xa2   :  { %3840 = vmatpush3.bf16.msra.mxu0 %v4053_v59  ;;  %935 = vperm.xlu1 %3994, %v173_v62  }
  0xa3   :  { %594 = vmatpush1.bf16.msra.mxu1 %v4032_v36  ;;  %3841 = vmatprep.subr.bf16.mxu0 %v4054_v25  ;;  %v1799_v36 = vld [vmem:[%s6243_s6 + $0x50] sm:$0xff] }
  0xa4   :  { %595 = vmatprep.subr.bf16.mxu1 %v4039_v37  ;;  %v4058_v37 = vld [vmem:[#allocation8 + $0x38] sm:$0xff]  }
  0xa5   :  { %932 = vperm.xlu0 %3993, %v172_v63   ;;  %v4064_v63 = vld [vmem:[#allocation5 + $0x28] sm:$0xff]  }
  0xa6   :  { %527 = vmatmul.mubr.bf16.gmra.mrb[8].mxu0 %v4833_v38  ;;  %567 = vmatmul.mubr.bf16.gmra.mrb[8].mxu1 %v4835_v39 }
  0xa7   :  { %596 = vmatpush1.bf16.msra.mxu1 %v4037_v42  ;;  %536 = vmatprep.mubr.bf16.mxu0 %v6264_v0  ;;  %v1816_v42 = vld [vmem:[%s6244_s7 + $0x58] sm:$0xff] }
  0xa8   :  { %597 = vmatprep.subr.bf16.mxu1 %v4042_v43  ;;  %576 = vmatprep.mubr.bf16.mxu1 %v6264_v0  ;;  %v1815_v43 = vld [vmem:[%s6244_s7 + $0x50] sm:$0xff] }
  0xa9   :  { %1033 = vperm.xlu1 %3994, %v187_v1   ;;  %1030 = vperm.xlu0 %3993, %v186_v2  }
  0xaa   :  { %3842 = vmatpush3.bf16.msra.mxu0 %v4054_v25 }
  0xab   :  { %598 = vmatpush1.bf16.msra.mxu1 %v4040_v44  ;;  %v1802_v44 = vld [vmem:[%s6243_s6 + $0x68] sm:$0xff] }
  0xac   :  { %599 = vmatprep.subr.bf16.mxu1 %v4047_v45  ;;  %v1801_v45 = vld [vmem:[%s6243_s6 + $0x60] sm:$0xff] }
  0xad   :  { %1039 = vperm.xlu1 %3994, %v189_v3   ;;  %1036 = vperm.xlu0 %3993, %v188_v4  }
  0xae   :  { %537 = vmatmul.mubr.bf16.gmra.mrb[12].mxu0 %v4865_v49  ;;  %577 = vmatmul.mubr.bf16.gmra.mrb[12].mxu1 %v4867_v50 }
  0xaf   :  { %600 = vmatpush1.bf16.msra.mxu1 %v4045_v53  ;;  %619 = vmatprep.mubr.bf16.mxu1 %v6264_v0 }
  0xb0   :  { %601 = vmatprep.subr.bf16.mxu1 %v4050_v54  ;;  %3851 = vmatprep.mubr.bf16.mxu0 %v4059_v40  ;;  %v4061_v54 = vld [vmem:[#allocation5 + $0x10] sm:$0xff]  }
  0xb1   :  { %941 = vperm.xlu1 %3994, %v175_v5   ;;  %938 = vperm.xlu0 %3993, %v174_v6  }
  0xb3   :  { %602 = vmatpush1.bf16.msra.mxu1 %v4048_v58 }
  0xb5   :  { %1045 = vperm.xlu1 %3994, %v191_v7   ;;  %1042 = vperm.xlu0 %3993, %v190_v8   ;;  %v4065_v7 = vld [vmem:[#allocation5 + $0x30] sm:$0xff]   ;;  %v4066_v8 = vld [vmem:[#allocation5 + $0x38] sm:$0xff]  }
  0xb6   :  { %620 = vmatmul.mubr.bf16.vlgmr.msra.gmra.mrb[16].mxu1 %v4775_v20  ;;  %v1795_v20 = vld [vmem:[%s6243_s6 + $0x30] sm:$0xff] }
  0xb7   :  { %629 = vmatprep.mubr.bf16.mxu1 %v6264_v0 }
  0xb9   :  { %1051 = vperm.xlu1 %3994, %v193_v9   ;;  %1048 = vperm.xlu0 %3993, %v192_v10  }
  0xbd   :  { %947 = vperm.xlu1 %3994, %v177_v11   ;;  %944 = vperm.xlu0 %3993, %v176_v12  }
  0xbe   :  { %630 = vmatmul.mubr.bf16.gmra.mrb[20].mxu1 %v4801_v28  ;;  %v4055_v28 = vld [vmem:[#allocation8 + $0x20] sm:$0xff]  }
  0xbf   :  { %639 = vmatprep.mubr.bf16.mxu1 %v6264_v0  ;;  %3843 = vmatprep.subr.bf16.mxu0 %v4055_v28 }
  0xc0   :  { %3844 = vmatpush3.bf16.msra.mxu0 %v4055_v28 }
  0xc1   :  { %2490 = vperm.xlu1 %3994, %v1790_v13   ;;  %2487 = vperm.xlu0 %3993, %v1789_v14  }
  0xc2   :  { %3845 = vmatprep.subr.bf16.mxu0 %v4056_v31 }
  0xc4   :  { %3846 = vmatpush3.bf16.msra.mxu0 %v4056_v31 }
  0xc5   :  { %2496 = vperm.xlu1 %3994, %v1792_v15   ;;  %2493 = vperm.xlu0 %3993, %v1791_v16   ;;  %v6266_v15 = vmov 1.0|1.0  }
  0xc6   :  { %640 = vmatmul.mubr.bf16.gmra.mrb[24].mxu1 %v4833_v38  ;;  %3847 = vmatprep.subr.bf16.mxu0 %v4057_v34  ;;  %v1814_v38 = vld [vmem:[%s6244_s7 + $0x48] sm:$0xff] }
  0xc7   :  { %649 = vmatprep.mubr.bf16.mxu1 %v6264_v0 }
  0xc8   :  { %3848 = vmatpush3.bf16.msra.mxu0 %v4057_v34 }
  0xc9   :  { %2502 = vperm.xlu1 %3994, %v1794_v17   ;;  %2499 = vperm.xlu0 %3993, %v1793_v18  }
  0xca   :  { %3849 = vmatprep.subr.bf16.mxu0 %v4058_v37 }
  0xcc   :  { %3850 = vmatpush3.bf16.msra.mxu0 %v4058_v37 }
  0xcd   :  { %2508 = vperm.xlu1 %3994, %v1796_v19   ;;  %2505 = vperm.xlu0 %3993, %v1795_v20  }
  0xce   :  { %650 = vmatmul.mubr.bf16.gmra.mrb[28].mxu1 %v4865_v49  ;;  %v1819_v49 = vld [vmem:[%s6244_s7 + $0x70] sm:$0xff] }
  0xcf   :  { %659 = vmatprep.mubr.bf16.mxu1 %v6264_v0  ;;  %3852 = vmatmul.mubr.bf16.vlgmr.msra.gmra.mrb[16].mxu0 %v4060_v41 }
  0xd0   :  { %3855 = vmatprep.mubr.bf16.mxu0 %v4061_v54 }
  0xd1   :  { %2591 = vperm.xlu0 %3993, %v1805_v22  }
  0xd5   :  { %2597 = vperm.xlu0 %3993, %v1807_v24  }
  0xd6   :  { %660 = vmatmul.mubr.bf16.gmra.mrb[32].mxu1 %v4777_v21  ;;  %v1806_v21 = vld [vmem:[%s6244_s7 + $0x8] sm:$0xff] }
  0xd7   :  { %669 = vmatprep.mubr.bf16.mxu1 %v6264_v0  ;;  %2594 = vperm.xlu1 %3994, %v1806_v21  }
  0xd8   :  { %3856 = vmatmul.mubr.bf16.gmra.mrb[20].mxu0 %v4062_v56 }
  0xd9   :  { %2511 = vperm.xlu0 %3993, %v1797_v27   ;;  %3859 = vmatprep.mubr.bf16.mxu0 %v4063_v61 }
  0xdb   :  { %2600 = vperm.xlu1 %3994, %v1808_v23   ;;  %v4078_v23 = vld [vmem:[%s6250_s13 + $0x64] ss:$16 sps:$4 sm:$0xff]  }
  0xdd   :  { %2603 = vperm.xlu0 %3993, %v1809_v30   ;;  %v4082_v30 = vld [vmem:[%s6250_s13 + $0xa0] ss:$16 sps:$4 sm:$0xff]  }
  0xde   :  { %670 = vmatmul.mubr.bf16.gmra.mrb[36].mxu1 %v4803_v29  ;;  %v1810_v29 = vld [vmem:[%s6244_s7 + $0x28] sm:$0xff] }
  0xdf   :  { %679 = vmatprep.mubr.bf16.mxu1 %v6264_v0  ;;  %2514 = vperm.xlu1 %3994, %v1798_v26  }
  0xe0   :  { %3860 = vmatmul.mubr.bf16.gmra.mrb[24].mxu0 %v4064_v63 }
  0xe1   :  { %2609 = vperm.xlu0 %3993, %v1811_v33   ;;  %3863 = vmatprep.mubr.bf16.mxu0 %v4065_v7 }
  0xe3   :  { %2606 = vperm.xlu1 %3994, %v1810_v29  }
  0xe5   :  { %2517 = vperm.xlu0 %3993, %v1799_v36  }
  0xe6   :  { %680 = vmatmul.mubr.bf16.gmra.mrb[40].mxu1 %v4835_v39  ;;  %v1813_v39 = vld [vmem:[%s6244_s7 + $0x40] sm:$0xff] }
  0xe7   :  { %689 = vmatprep.mubr.bf16.mxu1 %v6264_v0  ;;  %2612 = vperm.xlu1 %3994, %v1812_v32  }
  0xe8   :  { %3864 = vmatmul.mubr.bf16.gmra.mrb[28].mxu0 %v4066_v8 }
  0xe9   :  { %2615 = vperm.xlu0 %3993, %v1813_v39   ;;  %v6304_v39 = vmov 0 }
  0xeb   :  { %2520 = vperm.xlu1 %3994, %v1800_v35  }
  0xed   :  { %2621 = vperm.xlu0 %3993, %v1815_v43  }
  0xee   :  { %690 = vmatmul.mubr.bf16.gmra.mrb[44].mxu1 %v4867_v50  ;;  %v1804_v50 = vld [vmem:[%s6243_s6 + $0x78] sm:$0xff] }
  0xef   :  { %1234 = vmatprep.mubr.bf16.mxu1 %v6264_v0  ;;  %2618 = vperm.xlu1 %3994, %v1814_v38  }
  0xf1   :  { %2523 = vperm.xlu0 %3993, %v1801_v45   ;;  %v6310_v45 = vmov 0 }
  0xf3   :  { %2624 = vperm.xlu1 %3994, %v1816_v42   ;;  %v6307_v42 = vmov 0 }
  0xf5   :  { %2627 = vperm.xlu0 %3993, %v1817_v47  }
  0xf7   :  { %2526 = vperm.xlu1 %3994, %v1802_v44  }
  0xf9   :  { %2633 = vperm.xlu0 %3993, %v1819_v49   ;;  %v6313_v49 = vmov 0 }
  0xfb   :  { %2630 = vperm.xlu1 %3994, %v1818_v46  }
  0xfc   :  { %v909_v52 = vpop.permute.xlu1 %908  ;;  %v903_v53 = vpop.permute.xlu0 %902 }
  0xfd   :  { %2529 = vperm.xlu0 %3993, %v1803_v51   ;;  %vm951_vm0 = vcmp.eq.s32.totalorder %v5054_v57, %v909_v52  ;;  %vm949_vm1 = vcmp.eq.s32.totalorder %v5054_v57, %v903_v53  ;;  %v5168_v53 = vld [vmem:[%s6247_s10] sm:$0xf] }
  0xff   :  { %2636 = vperm.xlu1 %3994, %v1820_v48   ;;  %v5152_v48 = vshrl.u32 %v246_v55, 7 }
 0x100   :  { %v912_v58 = vpop.permute.xlu1 %911  ;;  %v906_v59 = vpop.permute.xlu0 %905 }
 0x101   :  { %vm952_vm2 = vcmp.eq.s32.totalorder %v5054_v57, %v912_v58  ;;  %vm950_vm3 = vcmp.eq.s32.totalorder %v5054_v57, %v906_v59  ;;  %v6263_v52 = vsub.s32 1, %v5152_v48 }
 0x102   :  { %vm5060_vm4 = vmpackc.low %vm952_vm2, %vm951_vm0 }
 0x103   :  { %2532 = vperm.xlu1 %3994, %v1804_v50   ;;  %vm5064_vm5 = vmpackc.low %vm950_vm3, %vm949_vm1  ;;  %v5179_v58 = vrot.slane %v5168_v53, %v6263_v52 }
 0x104   :  { %v918_v1 = vpop.permute.xlu1 %917  ;;  %v915_v2 = vpop.permute.xlu0 %914 }
 0x105   :  { %vm954_vm6 = vcmp.eq.s32.totalorder %v5054_v57, %v918_v1  ;;  %vm953_vm7 = vcmp.eq.s32.totalorder %v5054_v57, %v915_v2 }
 0x106   :  { %vm5070_vm8 = vmpackc.low %vm954_vm6, %vm953_vm7 }
 0x108   :  { %v924_v4 = vpop.permute.xlu1 %923  ;;  %v921_v5 = vpop.permute.xlu0 %920 }
 0x109   :  { %vm956_vm9 = vcmp.eq.s32.totalorder %v5054_v57, %v924_v4  ;;  %vm955_vm10 = vcmp.eq.s32.totalorder %v5054_v57, %v921_v5 }
 0x10a   :  { %vm5076_vm11 = vmpackc.low %vm956_vm9, %vm955_vm10 }
 0x10c   :  { %v1010_v9 = vpop.permute.xlu1 %1009  ;;  %v1007_v10 = vpop.permute.xlu0 %1006 }
 0x10d   :  { %vm1054_vm12 = vcmp.eq.s32.totalorder %v5054_v57, %v1010_v9  ;;  %vm1053_vm13 = vcmp.eq.s32.totalorder %v5054_v57, %v1007_v10 }
 0x10e   :  { %vm3561_vm14 = vmpackc.low %vm1054_vm12, %vm1053_vm13 }
 0x10f   :  { %3883 = vmatprep.mubr.msk.bf16.mxu0 %vm3561_vm14, %v6266_v15 }
 0x110   :  { %v5082_v11 = vpop.permute.xlu1 %1015  ;;  %v5084_v12 = vpop.permute.xlu0 %1012 }
 0x114   :  { %v930_v13 = vpop.permute.xlu1 %929  ;;  %v927_v14 = vpop.permute.xlu0 %926 }
 0x115   :  { %vm958_vm15 = vcmp.eq.s32.totalorder %v5054_v57, %v930_v13  ;;  %vm957_vm0 = vcmp.eq.s32.totalorder %v5054_v57, %v927_v14 }
 0x116   :  { %vm5089_vm1 = vmpackc.low %vm958_vm15, %vm957_vm0 }
 0x118   :  { %v5093_v17 = vpop.permute.xlu1 %1021 }
 0x119   :  { %v5095_v18 = vpop.permute.xlu0 %1018 }
 0x11c   :  { %v5097_v19 = vpop.permute.xlu1 %1027 }
 0x120   :  { %v5099_v20 = vpop.permute.xlu0 %1024 }
 0x121   :  { %v936_v21 = vpop.permute.xlu1 %935 }
 0x122   :  { %vm960_vm2 = vcmp.eq.s32.totalorder %v5054_v57, %v936_v21 }
 0x124   :  { %v933_v22 = vpop.permute.xlu0 %932 }
 0x125   :  { %vm959_vm3 = vcmp.eq.s32.totalorder %v5054_v57, %v933_v22 }
 0x126   :  { %vm5103_vm6 = vmpackc.low %vm960_vm2, %vm959_vm3 }
 0x128   :  { %v5107_v24 = vpop.permute.xlu1 %1033  ;;  %v5109_v25 = vpop.permute.xlu0 %1030 }
 0x12c   :  { %v5111_v26 = vpop.permute.xlu1 %1039  ;;  %v5113_v27 = vpop.permute.xlu0 %1036 }
 0x130   :  { %v942_v28 = vpop.permute.xlu1 %941  ;;  %v939_v29 = vpop.permute.xlu0 %938 }
 0x131   :  { %vm962_vm7 = vcmp.eq.s32.totalorder %v5054_v57, %v942_v28  ;;  %vm961_vm9 = vcmp.eq.s32.totalorder %v5054_v57, %v939_v29  ;;  %v6320_v28 = vmov 0 }
 0x132   :  { %vm5117_vm10 = vmpackc.low %vm962_vm7, %vm961_vm9 }
 0x134   :  { %v5121_v31 = vpop.permute.xlu1 %1045  ;;  %v5123_v32 = vpop.permute.xlu0 %1042 }
 0x138   :  { %v5125_v33 = vpop.permute.xlu1 %1051  ;;  %v5127_v34 = vpop.permute.xlu0 %1048 }
 0x13c   :  { %v5129_v35 = vpop.permute.xlu1 %947  ;;  %v5131_v36 = vpop.permute.xlu0 %944 }
 0x140   :  { %v2491_v37 = vpop.permute.xlu1 %2490  ;;  %v2488_v38 = vpop.permute.xlu0 %2487 }
 0x141   :  { %vm2535_vm12 = vcmp.eq.s32.totalorder %v5054_v57, %v2491_v37  ;;  %vm2534_vm13 = vcmp.eq.s32.totalorder %v5054_v57, %v2488_v38 }
 0x142   :  { %vm5135_vm14 = vmpackc.low %vm2535_vm12, %vm2534_vm13 }
 0x143   :  { %v6305_v39 = vsel %vm5135_vm14, 4294967295, %v6304_v39 }
 0x144   :  { %6306 = vst [vmem:[#allocation20_spill] sm:$0xff] %v6305_v39  ;;  %v2497_v40 = vpop.permute.xlu1 %2496  ;;  %v2494_v41 = vpop.permute.xlu0 %2493 }
 0x145   :  { %vm2537_vm15 = vcmp.eq.s32.totalorder %v5054_v57, %v2497_v40  ;;  %vm2536_vm0 = vcmp.eq.s32.totalorder %v5054_v57, %v2494_v41 }
 0x146   :  { %vm5141_vm2 = vmpackc.low %vm2537_vm15, %vm2536_vm0 }
 0x147   :  { %v6308_v42 = vsel %vm5141_vm2, 4294967295, %v6307_v42 }
 0x148   :  { %6309 = vst [vmem:[#allocation21_spill] sm:$0xff] %v6308_v42  ;;  %v2503_v43 = vpop.permute.xlu1 %2502  ;;  %v2500_v44 = vpop.permute.xlu0 %2499 }
 0x149   :  { %vm2539_vm3 = vcmp.eq.s32.totalorder %v5054_v57, %v2503_v43  ;;  %vm2538_vm7 = vcmp.eq.s32.totalorder %v5054_v57, %v2500_v44 }
 0x14a   :  { %vm5147_vm9 = vmpackc.low %vm2539_vm3, %vm2538_vm7 }
 0x14b   :  { %v6311_v45 = vsel %vm5147_vm9, 4294967295, %v6310_v45 }
 0x14c   :  { %6312 = vst [vmem:[#allocation22_spill] sm:$0xff] %v6311_v45  ;;  %v2509_v46 = vpop.permute.xlu1 %2508  ;;  %v2506_v47 = vpop.permute.xlu0 %2505 }
 0x14d   :  { %vm2541_vm12 = vcmp.eq.s32.totalorder %v5054_v57, %v2509_v46  ;;  %vm2540_vm13 = vcmp.eq.s32.totalorder %v5054_v57, %v2506_v47 }
 0x14e   :  { %vm5156_vm15 = vmpackc.low %vm2541_vm12, %vm2540_vm13 }
 0x14f   :  { %v6314_v49 = vsel %vm5156_vm15, 4294967295, %v6313_v49 }
 0x150   :  { %6315 = vst [vmem:[#allocation23_spill] sm:$0xff] %v6314_v49  ;;  %v5162_v51 = vpop.permute.xlu0 %2591 }
 0x154   :  { %v5172_v55 = vpop.permute.xlu0 %2597 }
 0x156   :  { %v5160_v50 = vpop.permute.xlu1 %2594 }
 0x158   :  { %v2512_v14 = vpop.permute.xlu0 %2511 }
 0x159   :  { %vm2542_vm3 = vcmp.eq.s32.totalorder %v5054_v57, %v2512_v14 }
 0x15a   :  { %v5170_v54 = vpop.permute.xlu1 %2600 }
 0x15e   :  { %v2515_v13 = vpop.permute.xlu1 %2514 }
 0x15f   :  { %vm2543_vm0 = vcmp.eq.s32.totalorder %v5054_v57, %v2515_v13 }
 0x160   :  { %vm5195_vm7 = vmpackc.low %vm2543_vm0, %vm2542_vm3 }
 0x161   :  { %v6321_v28 = vsel %vm5195_vm7, 4294967295, %v6320_v28  ;;  %vm1055_vm7 = vcmp.eq.s32.totalorder %v5054_v57, %v5084_v12 }
 0x162   :  { %6322 = vst [vmem:[#allocation28_spill] sm:$0xff] %v6321_v28 }
 0x169   :  { %v5174_v56 = vpop.f32.mrb[0].mxu1  ;;  %v5181_v59 = vpop.f32.mrb[0].mxu0 }
 0x16a   :  { %6316 = vst [vmem:[#allocation24_spill] sm:$0xff] %v5174_v56  ;;  %6317 = vst [vmem:[#allocation25_spill] sm:$0xff] %v5181_v59  ;;  %v550_v61 = vpop.f32.mrb[1].mxu1  ;;  %v510_v63 = vpop.f32.mrb[1].mxu0 }
 0x16b   :  { %v5183_v1 = vpop.f32.mrb[2].mxu1  ;;  %v511_v2 = vadd.f32 %v510_v63, %v5179_v58  ;;  %v5186_v4 = vpop.f32.mrb[2].mxu0  ;;  %v551_v8 = vadd.f32 %v550_v61, %v5179_v58 }
 0x16c   :  { %6318 = vst [vmem:[#allocation26_spill] sm:$0xff] %v5183_v1  ;;  %6319 = vst [vmem:[#allocation27_spill] sm:$0xff] %v5186_v4  ;;  %v554_v5 = vpop.f32.mrb[3].mxu1  ;;  %v514_v7 = vpop.f32.mrb[3].mxu0 }
 0x16d   :  { %v555_v9 = vadd.f32 %v554_v5, %v5179_v58  ;;  %v515_v10 = vadd.f32 %v514_v7, %v5179_v58 }
 0x16f   :  { %v5193_v21 = vpack.c.bf16 %v555_v9, %v551_v8  ;;  %v1315_v22 = vpack.c.bf16 %v515_v10, %v511_v2  ;;  %v5213_v8 = vpop.permute.xlu1 %2606  ;;  %v5215_v9 = vpop.permute.xlu0 %2603 }
 0x171   :  { %v5199_v29 = vpop.f32.mrb[4].mxu1  ;;  %v5201_v37 = vpop.f32.mrb[4].mxu0  ;;  %3867 = vmatprep.subr.bf16.mxu0 %v1315_v22 }
 0x172   :  { %6323 = vst [vmem:[#allocation29_spill] sm:$0xff] %v5199_v29  ;;  %6324 = vst [vmem:[#allocation30_spill] sm:$0xff] %v5201_v37  ;;  %v560_v38 = vpop.f32.mrb[5].mxu1  ;;  %v520_v40 = vpop.f32.mrb[5].mxu0  ;;  %3868 = vmatpush3.bf16.msra.mxu0 %v1315_v22 }
 0x173   :  { %v5203_v41 = vpop.f32.mrb[6].mxu1  ;;  %v521_v43 = vadd.f32 %v520_v40, %v5179_v58  ;;  %v5206_v44 = vpop.f32.mrb[6].mxu0  ;;  %v561_v61 = vadd.f32 %v560_v38, %v5179_v58 }
 0x174   :  { %6325 = vst [vmem:[#allocation31_spill] sm:$0xff] %v5203_v41  ;;  %6326 = vst [vmem:[#allocation32_spill] sm:$0xff] %v5206_v44  ;;  %v564_v46 = vpop.f32.mrb[7].mxu1  ;;  %v524_v47 = vpop.f32.mrb[7].mxu0 }
 0x175   :  { %v565_v63 = vadd.f32 %v564_v46, %v5179_v58  ;;  %v525_v2 = vadd.f32 %v524_v47, %v5179_v58  ;;  %v5231_v15 = vpop.permute.xlu1 %2612 }
 0x177   :  { %v5211_v5 = vpack.c.bf16 %v565_v63, %v561_v61  ;;  %v1316_v7 = vpack.c.bf16 %v525_v2, %v521_v43 }
 0x179   :  { %v5217_v10 = vpop.f32.mrb[8].mxu1  ;;  %v5219_v13 = vpop.f32.mrb[8].mxu0  ;;  %3869 = vmatprep.subr.bf16.mxu0 %v1316_v7 }
 0x17a   :  { %6327 = vst [vmem:[#allocation33_spill] sm:$0xff] %v5217_v10  ;;  %6328 = vst [vmem:[#allocation34_spill] sm:$0xff] %v5219_v13  ;;  %v570_v14 = vpop.f32.mrb[9].mxu1  ;;  %v530_v22 = vpop.f32.mrb[9].mxu0  ;;  %3870 = vmatpush3.bf16.msra.mxu0 %v1316_v7  ;;  %v6335_v10 = vmov 0 }
 0x17b   :  { %v5221_v38 = vpop.f32.mrb[10].mxu1  ;;  %v531_v40 = vadd.f32 %v530_v22, %v5179_v58  ;;  %v5224_v46 = vpop.f32.mrb[10].mxu0  ;;  %v571_v61 = vadd.f32 %v570_v14, %v5179_v58 }
 0x17c   :  { %6329 = vst [vmem:[#allocation35_spill] sm:$0xff] %v5221_v38  ;;  %6330 = vst [vmem:[#allocation36_spill] sm:$0xff] %v5224_v46  ;;  %v574_v47 = vpop.f32.mrb[11].mxu1  ;;  %v534_v43 = vpop.f32.mrb[11].mxu0 }
 0x17d   :  { %v575_v63 = vadd.f32 %v574_v47, %v5179_v58  ;;  %v535_v2 = vadd.f32 %v534_v43, %v5179_v58  ;;  %v5233_v7 = vpop.permute.xlu0 %2609  ;;  %v2521_v38 = vpop.permute.xlu1 %2520 }
 0x17e   :  { %vm2545_vm12 = vcmp.eq.s32.totalorder %v5054_v57, %v2521_v38 }
 0x17f   :  { %v5229_v52 = vpack.c.bf16 %v575_v63, %v571_v61  ;;  %v1317_v0 = vpack.c.bf16 %v535_v2, %v531_v40  ;;  %v6273_v63 = vsub.s32 2, %v5152_v48 }
 0x181   :  { %v5235_v28 = vpop.f32.mrb[12].mxu0  ;;  %v5237_v22 = vpop.f32.mrb[12].mxu1  ;;  %3871 = vmatprep.subr.bf16.mxu0 %v1317_v0 }
 0x182   :  { %6331 = vst [vmem:[#allocation37_spill] sm:$0xff] %v5235_v28  ;;  %6332 = vst [vmem:[#allocation38_spill] sm:$0xff] %v5237_v22  ;;  %v540_v49 = vpop.f32.mrb[13].mxu0  ;;  %v580_v45 = vpop.f32.mrb[13].mxu1  ;;  %3872 = vmatpush3.bf16.msra.mxu0 %v1317_v0  ;;  %v6275_v22 = vsub.s32 3, %v5152_v48 }
 0x183   :  { %v541_v14 = vadd.f32 %v540_v49, %v5179_v58  ;;  %v5240_v47 = vpop.f32.mrb[14].mxu0  ;;  %v5242_v43 = vpop.f32.mrb[14].mxu1  ;;  %v581_v2 = vadd.f32 %v580_v45, %v5179_v58  ;;  %v5258_v45 = vrot.slane %v5168_v53, %v6273_v63 }
 0x184   :  { %6333 = vst [vmem:[#allocation39_spill] sm:$0xff] %v5240_v47  ;;  %6334 = vst [vmem:[#allocation40_spill] sm:$0xff] %v5242_v43  ;;  %v544_v61 = vpop.f32.mrb[15].mxu0  ;;  %v584_v40 = vpop.f32.mrb[15].mxu1 }
 0x185   :  { %v545_v42 = vadd.f32 %v544_v61, %v5179_v58  ;;  %v585_v39 = vadd.f32 %v584_v40, %v5179_v58  ;;  %v2518_v0 = vpop.permute.xlu0 %2517  ;;  %v5263_v61 = vrot.slane %v5168_v53, %v6275_v22  ;;  %v5265_v38 = vpop.permute.xlu1 %2618 }
 0x186   :  { %vm2544_vm13 = vcmp.eq.s32.totalorder %v5054_v57, %v2518_v0 }
 0x187   :  { %v1318_v49 = vpack.c.bf16 %v545_v42, %v541_v14  ;;  %v1322_v43 = vpack.c.bf16 %v585_v39, %v581_v2  ;;  %vm5251_vm0 = vmpackc.low %vm2545_vm12, %vm2544_vm13 }
 0x188   :  { %v6336_v10 = vsel %vm5251_vm0, 4294967295, %v6335_v10  ;;  %vm1056_vm0 = vcmp.eq.s32.totalorder %v5054_v57, %v5082_v11 }
 0x189   :  { %6337 = vst [vmem:[#allocation41_spill] sm:$0xff] %v6336_v10  ;;  %v621_v58 = vpop.f32.mrb[16].mxu1  ;;  %3873 = vmatprep.subr.bf16.mxu0 %v1318_v49  ;;  %v5267_v39 = vpop.permute.xlu0 %2615 }
 0x18a   :  { %v623_v42 = vpop.f32.mrb[17].mxu1  ;;  %3874 = vmatpush3.bf16.msra.mxu0 %v1318_v49  ;;  %v622_v40 = vadd.f32 %v621_v58, %v5258_v45  ;;  %v5274_v53 = vpop.permute.xlu1 %2624 }
 0x18b   :  { %v625_v14 = vpop.f32.mrb[18].mxu1  ;;  %3875 = vmatprep.subr.bf16.mxu0 %v5193_v21  ;;  %v624_v63 = vadd.f32 %v623_v42, %v5263_v61 }
 0x18c   :  { %v626_v2 = vadd.f32 %v625_v14, %v5258_v45  ;;  %v627_v0 = vpop.f32.mrb[19].mxu1 }
 0x18d   :  { %v628_v10 = vadd.f32 %v627_v0, %v5263_v61  ;;  %v5277_v49 = vpop.permute.xlu0 %2621 }
 0x18e   :  { %v1186_v22 = vpack.c.bf16 %v626_v2, %v622_v40  ;;  %3876 = vmatpush3.bf16.msra.mxu0 %v5193_v21  ;;  %6338 = vst [vmem:[#allocation42_spill] sm:$0xff] %v5277_v49  ;;  %v2527_v58 = vpop.permute.xlu1 %2526 }
 0x18f   :  { %v1187_v41 = vpack.c.bf16 %v628_v10, %v624_v63  ;;  %3877 = vmatprep.subr.bf16.mxu0 %v5211_v5  ;;  %vm2547_vm3 = vcmp.eq.s32.totalorder %v5054_v57, %v2527_v58 }
 0x191   :  { %v631_v29 = vpop.f32.mrb[20].mxu1  ;;  %1202 = vmatprep.subr.bf16.mxu1 %v1187_v41  ;;  %v2524_v42 = vpop.permute.xlu0 %2523  ;;  %v6339_v41 = vmov 0 }
 0x192   :  { %v633_v1 = vpop.f32.mrb[21].mxu1  ;;  %1203 = vmatpush1.bf16.msra.mxu1 %v1186_v22  ;;  %3878 = vmatpush3.bf16.msra.mxu0 %v5211_v5  ;;  %vm2546_vm12 = vcmp.eq.s32.totalorder %v5054_v57, %v2524_v42  ;;  %v632_v21 = vadd.f32 %v631_v29, %v5258_v45  ;;  %v6342_v42 = vmov 1.0|1.0  }
 0x193   :  { %v635_v14 = vpop.f32.mrb[22].mxu1  ;;  %3879 = vmatprep.subr.bf16.mxu0 %v5229_v52  ;;  %vm5286_vm13 = vmpackc.low %vm2547_vm3, %vm2546_vm12  ;;  %v634_v22 = vadd.f32 %v633_v1, %v5263_v61  ;;  %vm1058_vm3 = vcmp.eq.s32.totalorder %v5054_v57, %v5093_v17  ;;  %vm1057_vm12 = vcmp.eq.s32.totalorder %v5054_v57, %v5095_v18 }
 0x194   :  { %v636_v10 = vadd.f32 %v635_v14, %v5258_v45  ;;  %v637_v63 = vpop.f32.mrb[23].mxu1  ;;  %v6340_v41 = vsel %vm5286_vm13, 4294967295, %v6339_v41  ;;  %vm3563_vm13 = vmpackc.low %vm1056_vm0, %vm1055_vm7  ;;  %vm1060_vm7 = vcmp.eq.s32.totalorder %v5054_v57, %v5097_v19  ;;  %vm1059_vm0 = vcmp.eq.s32.totalorder %v5054_v57, %v5099_v20 }
 0x195   :  { %6341 = vst [vmem:[#allocation43_spill] sm:$0xff] %v6340_v41  ;;  %v638_v5 = vadd.f32 %v637_v63, %v5263_v61  ;;  %vm3565_vm15 = vmpackc.low %vm1058_vm3, %vm1057_vm12  ;;  %vm1062_vm3 = vcmp.eq.s32.totalorder %v5054_v57, %v5107_v24  ;;  %vm1061_vm12 = vcmp.eq.s32.totalorder %v5054_v57, %v5109_v25 }
 0x196   :  { %v1188_v40 = vpack.c.bf16 %v636_v10, %v632_v21  ;;  %3880 = vmatpush3.bf16.msra.mxu0 %v5229_v52  ;;  %vm3567_vm9 = vmpackc.low %vm1060_vm7, %vm1059_vm0  ;;  %vm1063_vm7 = vcmp.eq.s32.totalorder %v5054_v57, %v5113_v27  ;;  %vm1066_vm0 = vcmp.eq.s32.totalorder %v5054_v57, %v5121_v31 }
 0x197   :  { %v1189_v29 = vpack.c.bf16 %v638_v5, %v634_v22  ;;  %3881 = vmatprep.subr.bf16.mxu0 %v1322_v43 }
 0x199   :  { %v641_v1 = vpop.f32.mrb[24].mxu1  ;;  %1204 = vmatprep.subr.bf16.mxu1 %v1189_v29 }
 0x19a   :  { %v643_v2 = vpop.f32.mrb[25].mxu1  ;;  %1205 = vmatpush1.bf16.msra.mxu1 %v1188_v40  ;;  %3882 = vmatpush3.bf16.msra.mxu0 %v1322_v43  ;;  %v642_v11 = vadd.f32 %v641_v1, %v5258_v45 }
 0x19b   :  { %v645_v52 = vpop.f32.mrb[26].mxu1  ;;  %v644_v58 = vadd.f32 %v643_v2, %v5263_v61 }
 0x19c   :  { %v646_v12 = vadd.f32 %v645_v52, %v5258_v45  ;;  %v647_v0 = vpop.f32.mrb[27].mxu1 }
 0x19d   :  { %v648_v17 = vadd.f32 %v647_v0, %v5263_v61  ;;  %3884 = vmatmul.mubr.msk.bf16.vlgmr.msra.gmra.mrb[32].mxu0 %vm3563_vm13, %v6342_v42  ;;  %vm3569_vm13 = vmpackc.low %vm1062_vm3, %vm1061_vm12  ;;  %vm1065_vm3 = vcmp.eq.s32.totalorder %v5054_v57, %v5123_v32 }
 0x19e   :  { %v1190_v18 = vpack.c.bf16 %v646_v12, %v642_v11  ;;  %3887 = vmatprep.mubr.msk.bf16.mxu0 %vm3565_vm15, %v6342_v42  ;;  %vm1064_vm15 = vcmp.eq.s32.totalorder %v5054_v57, %v5111_v26 }
 0x19f   :  { %v1191_v43 = vpack.c.bf16 %v648_v17, %v644_v58  ;;  %vm3571_vm12 = vmpackc.low %vm1064_vm15, %vm1063_vm7  ;;  %vm1067_vm15 = vcmp.eq.s32.totalorder %v5054_v57, %v5127_v34  ;;  %v6343_v34 = vmov 0  }
 0x1a1   :  { %v651_v14 = vpop.f32.mrb[28].mxu1  ;;  %1206 = vmatprep.subr.bf16.mxu1 %v1191_v43 }
 0x1a2   :  { %v653_v21 = vpop.f32.mrb[29].mxu1  ;;  %1207 = vmatpush1.bf16.msra.mxu1 %v1190_v18  ;;  %v652_v63 = vadd.f32 %v651_v14, %v5258_v45 }
 0x1a3   :  { %v655_v10 = vpop.f32.mrb[30].mxu1  ;;  %v654_v20 = vadd.f32 %v653_v21, %v5263_v61 }
 0x1a4   :  { %v656_v19 = vadd.f32 %v655_v10, %v5258_v45  ;;  %v657_v22 = vpop.f32.mrb[31].mxu1 }
 0x1a5   :  { %v658_v5 = vadd.f32 %v657_v22, %v5263_v61  ;;  %3888 = vmatmul.mubr.msk.bf16.gmra.mrb[36].mxu0 %vm3567_vm9, %v6342_v42  ;;  %vm3573_vm9 = vmpackc.low %vm1066_vm0, %vm1065_vm3 }
 0x1a6   :  { %v1192_v24 = vpack.c.bf16 %v656_v19, %v652_v63  ;;  %3891 = vmatprep.mubr.msk.bf16.mxu0 %vm3569_vm13, %v6342_v42  ;;  %vm1068_vm13 = vcmp.eq.s32.totalorder %v5054_v57, %v5125_v33 }
 0x1a7   :  { %v1193_v25 = vpack.c.bf16 %v658_v5, %v654_v20  ;;  %vm3575_vm7 = vmpackc.low %vm1068_vm13, %vm1067_vm15 }
 0x1a9   :  { %v661_v40 = vpop.f32.mrb[32].mxu1  ;;  %1208 = vmatprep.subr.bf16.mxu1 %v1193_v25 }
 0x1aa   :  { %v663_v29 = vpop.f32.mrb[33].mxu1  ;;  %1209 = vmatpush1.bf16.msra.mxu1 %v1192_v24  ;;  %v662_v2 = vadd.f32 %v661_v40, %v5258_v45 }
 0x1ab   :  { %v665_v1 = vpop.f32.mrb[34].mxu1  ;;  %v664_v27 = vadd.f32 %v663_v29, %v5263_v61 }
 0x1ac   :  { %v666_v26 = vadd.f32 %v665_v1, %v5258_v45  ;;  %v667_v52 = vpop.f32.mrb[35].mxu1 }
 0x1ad   :  { %v668_v11 = vadd.f32 %v667_v52, %v5263_v61  ;;  %3892 = vmatmul.mubr.msk.bf16.gmra.mrb[40].mxu0 %vm3571_vm12, %v6342_v42 }
 0x1ae   :  { %v1194_v31 = vpack.c.bf16 %v666_v26, %v662_v2  ;;  %3895 = vmatprep.mubr.msk.bf16.mxu0 %vm3573_vm9, %v6342_v42 }
 0x1af   :  { %v1195_v32 = vpack.c.bf16 %v668_v11, %v664_v27 }
 0x1b1   :  { %v671_v12 = vpop.f32.mrb[36].mxu1  ;;  %1210 = vmatprep.subr.bf16.mxu1 %v1195_v32 }
 0x1b2   :  { %v673_v0 = vpop.f32.mrb[37].mxu1  ;;  %1211 = vmatpush1.bf16.msra.mxu1 %v1194_v31  ;;  %v672_v17 = vadd.f32 %v671_v12, %v5258_v45 }
 0x1b3   :  { %v675_v58 = vpop.f32.mrb[38].mxu1  ;;  %v674_v14 = vadd.f32 %v673_v0, %v5263_v61 }
 0x1b4   :  { %v676_v18 = vadd.f32 %v675_v58, %v5258_v45  ;;  %v677_v43 = vpop.f32.mrb[39].mxu1 }
 0x1b5   :  { %v678_v21 = vadd.f32 %v677_v43, %v5263_v61  ;;  %3896 = vmatmul.mubr.msk.bf16.gmra.mrb[44].mxu0 %vm3575_vm7, %v6342_v42  ;;  %v5369_v43 = vpop.f32.mrb[16].mxu0 }
 0x1b6   :  { %v1196_v33 = vpack.c.bf16 %v676_v18, %v672_v17  ;;  %1596 = vmatprep.mubr.bf16.mxu0 %v6343_v34  ;;  %v4069_v17 = vld [vmem:[%s6250_s13 + $0x4] ss:$16 sps:$4 sm:$0xff]   ;;  %v4067_v18 = vld [vmem:[%s6250_s13] ss:$16 sps:$4 sm:$0xff]  }
 0x1b7   :  { %v1197_v10 = vpack.c.bf16 %v678_v21, %v674_v14  ;;  %v5371_v14 = vpop.f32.mrb[17].mxu0 }
 0x1b8   :  { %v5373_v21 = vpop.f32.mrb[18].mxu0 }
 0x1b9   :  { %v681_v63 = vpop.f32.mrb[40].mxu1  ;;  %1212 = vmatprep.subr.bf16.mxu1 %v1197_v10  ;;  %v5378_v62 = vpop.f32.mrb[19].mxu0 }
 0x1ba   :  { %v683_v19 = vpop.f32.mrb[41].mxu1  ;;  %1213 = vmatpush1.bf16.msra.mxu1 %v1196_v33  ;;  %v682_v20 = vadd.f32 %v681_v63, %v5258_v45  ;;  %v5389_v33 = vpop.f32.mrb[20].mxu0 }
 0x1bb   :  { %v685_v22 = vpop.f32.mrb[42].mxu1  ;;  %v684_v25 = vadd.f32 %v683_v19, %v5263_v61  ;;  %v5391_v60 = vpop.f32.mrb[21].mxu0 }
 0x1bc   :  { %v686_v5 = vadd.f32 %v685_v22, %v5258_v45  ;;  %v687_v24 = vpop.f32.mrb[43].mxu1  ;;  %v5393_v10 = vpop.f32.mrb[22].mxu0 }
 0x1bd   :  { %v688_v40 = vadd.f32 %v687_v24, %v5263_v61  ;;  %v5395_v63 = vpop.f32.mrb[23].mxu0 }
 0x1be   :  { %v1198_v29 = vpack.c.bf16 %v686_v5, %v682_v20  ;;  %v5401_v3 = vpop.f32.mrb[24].mxu0  ;;  %v4073_v20 = vld [vmem:[%s6250_s13 + $0x40] ss:$16 sps:$4 sm:$0xff]   ;;  %v4075_v5 = vld [vmem:[%s6250_s13 + $0x44] ss:$16 sps:$4 sm:$0xff]  }
 0x1bf   :  { %v1199_v1 = vpack.c.bf16 %v688_v40, %v684_v25  ;;  %v5403_v6 = vpop.f32.mrb[25].mxu0 }
 0x1c0   :  { %v5405_v19 = vpop.f32.mrb[26].mxu0 }
 0x1c1   :  { %v691_v2 = vpop.f32.mrb[44].mxu1  ;;  %1214 = vmatprep.subr.bf16.mxu1 %v1199_v1  ;;  %v5407_v22 = vpop.f32.mrb[27].mxu0  ;;  %v4079_v1 = vld [vmem:[%s6250_s13 + $0x80] ss:$16 sps:$4 sm:$0xff]  }
 0x1c2   :  { %v693_v26 = vpop.f32.mrb[45].mxu1  ;;  %1215 = vmatpush1.bf16.msra.mxu1 %v1198_v29  ;;  %v692_v27 = vadd.f32 %v691_v2, %v5258_v45  ;;  %v5419_v16 = vpop.f32.mrb[28].mxu0  ;;  %v4076_v29 = vld [vmem:[%s6250_s13 + $0x60] ss:$16 sps:$4 sm:$0xff]   ;;  %v4081_v2 = vld [vmem:[%s6250_s13 + $0x84] ss:$16 sps:$4 sm:$0xff]  }
 0x1c3   :  { %v695_v52 = vpop.f32.mrb[46].mxu1  ;;  %v694_v32 = vadd.f32 %v693_v26, %v5263_v61  ;;  %v5421_v24 = vpop.f32.mrb[29].mxu0  ;;  %v4085_v26 = vld [vmem:[%s6250_s13 + $0xc0] ss:$16 sps:$4 sm:$0xff]  }
 0x1c4   :  { %v696_v11 = vadd.f32 %v695_v52, %v5258_v45  ;;  %v697_v31 = vpop.f32.mrb[47].mxu1  ;;  %v4072_v45 = vld [vmem:[%s6250_s13 + $0x24] ss:$16 sps:$4 sm:$0xff]   ;;  %v5423_v25 = vpop.f32.mrb[30].mxu0 }
 0x1c5   :  { %v698_v12 = vadd.f32 %v697_v31, %v5263_v61  ;;  %v4070_v61 = vld [vmem:[%s6250_s13 + $0x20] ss:$16 sps:$4 sm:$0xff]   ;;  %v5425_v40 = vpop.f32.mrb[31].mxu0  ;;  %v4090_v52 = vld [vmem:[%s6250_s13 + $0xe4] ss:$16 sps:$4 sm:$0xff]  }
 0x1c6   :  { %v1200_v0 = vpack.c.bf16 %v696_v11, %v692_v27  ;;  %v4088_v27 = vld [vmem:[%s6250_s13 + $0xe0] ss:$16 sps:$4 sm:$0xff]  }
 0x1c7   :  { %v1201_v58 = vpack.c.bf16 %v698_v12, %v694_v32 }
 0x1c9   :  { %1216 = vmatprep.subr.bf16.mxu1 %v1201_v58 }
 0x1ca   :  { %1217 = vmatpush1.bf16.msra.mxu1 %v1200_v0 }
 0x1cb   :  { %2061 = vmatprep.subr.bf16.mxu1 %v4069_v17 }
 0x1cd   :  { %3546 = vmatmul.mubr.msk.bf16.vlgmr.msra.gmra.mrb[48].mxu1 %vm5064_vm5, %v6342_v42  ;;  %vm963_vm5 = vcmp.eq.s32.totalorder %v5054_v57, %v5131_v36  ;;  %v4087_v36 = vld [vmem:[%s6250_s13 + $0xc4] ss:$16 sps:$4 sm:$0xff]  }
 0x1ce   :  { %1244 = vmatprep.mubr.bf16.mxu1 %v6343_v34  ;;  %2062 = vmatpush1.bf16.msra.mxu1 %v4067_v18 }
 0x1cf   :  { %2063 = vmatprep.subr.bf16.mxu1 %v4072_v45 }
 0x1d2   :  { %2064 = vmatpush1.bf16.msra.mxu1 %v4070_v61 }
 0x1d3   :  { %2065 = vmatprep.subr.bf16.mxu1 %v4075_v5 }
 0x1d5   :  { %3548 = vmatmul.mubr.msk.bf16.gmra.mrb[52].mxu1 %vm5060_vm4, %v6342_v42  ;;  %vm964_vm4 = vcmp.eq.s32.totalorder %v5054_v57, %v5129_v35  ;;  %v4084_v35 = vld [vmem:[%s6250_s13 + $0xa4] ss:$16 sps:$4 sm:$0xff]  }
 0x1d6   :  { %1254 = vmatprep.mubr.bf16.mxu1 %v6343_v34  ;;  %2066 = vmatpush1.bf16.msra.mxu1 %v4073_v20 }
 0x1d7   :  { %2067 = vmatprep.subr.bf16.mxu1 %v4078_v23 }
 0x1da   :  { %2068 = vmatpush1.bf16.msra.mxu1 %v4076_v29 }
 0x1db   :  { %2069 = vmatprep.subr.bf16.mxu1 %v4081_v2 }
 0x1dd   :  { %3550 = vmatmul.mubr.msk.bf16.gmra.mrb[56].mxu1 %vm5070_vm8, %v6342_v42  ;;  %vm3559_vm8 = vmpackc.low %vm964_vm4, %vm963_vm5 }
 0x1de   :  { %1264 = vmatprep.mubr.bf16.mxu1 %v6343_v34  ;;  %2070 = vmatpush1.bf16.msra.mxu1 %v4079_v1 }
 0x1df   :  { %2071 = vmatprep.subr.bf16.mxu1 %v4084_v35 }
 0x1e2   :  { %2072 = vmatpush1.bf16.msra.mxu1 %v4082_v30  ;;  %v5490_v30 = vld [vmem:[%s6249_s12] ss:$0 sm:$0xff] }
 0x1e3   :  { %2073 = vmatprep.subr.bf16.mxu1 %v4087_v36  ;;  %v837_v36 = vadd.f32 %v5490_v30, %v5371_v14  ;;  %v840_v41 = vadd.f32 %v5490_v30, %v5378_v62  ;;  %v845_v14 = vadd.f32 %v5369_v43, %v5490_v30  ;;  %v853_v43 = vadd.f32 %v5490_v30, %v5391_v60 }
 0x1e5   :  { %3552 = vmatmul.mubr.msk.bf16.gmra.mrb[60].mxu1 %vm5076_vm11, %v6342_v42 }
 0x1e6   :  { %1274 = vmatprep.mubr.bf16.mxu1 %v6343_v34  ;;  %2074 = vmatpush1.bf16.msra.mxu1 %v4085_v26 }
 0x1e7   :  { %2075 = vmatprep.subr.bf16.mxu1 %v4090_v52 }
 0x1ea   :  { %2076 = vmatpush1.bf16.msra.mxu1 %v4088_v27 }
 0x1ed   :  { %3554 = vmatmul.mubr.msk.bf16.gmra.mrb[64].mxu1 %vm5089_vm1, %v6342_v42 }
 0x1ee   :  { %1284 = vmatprep.mubr.bf16.mxu1 %v6343_v34 }
 0x1f5   :  { %3556 = vmatmul.mubr.msk.bf16.gmra.mrb[68].mxu1 %vm5103_vm6, %v6342_v42 }
 0x1f6   :  { %1294 = vmatprep.mubr.bf16.mxu1 %v6343_v34 }
 0x1fd   :  { %3558 = vmatmul.mubr.msk.bf16.gmra.mrb[72].mxu1 %vm5117_vm10, %v6342_v42 }
 0x1fe   :  { %1304 = vmatprep.mubr.bf16.mxu1 %v6343_v34 }
 0x205   :  { %3560 = vmatmul.mubr.msk.bf16.gmra.mrb[76].mxu1 %vm3559_vm8, %v6342_v42 }
 0x206   :  { %2093 = vmatprep.mubr.bf16.mxu1 %v6343_v34 }
 0x270   :  { %v3885_v11 = vpop.f32.mrb[32].mxu0 }
 0x271   :  { %v1357_v31 = vpop.f32.mrb[33].mxu0 }
 0x272   :  { %v3886_v32 = vpop.f32.mrb[34].mxu0 }
 0x273   :  { %v1360_v12 = vpop.f32.mrb[35].mxu0 }
 0x278   :  { %v5467_v0 = vpop.f32.mrb[36].mxu0 }
 0x279   :  { %v1373_v58 = vpop.f32.mrb[37].mxu0 }
 0x27a   :  { %v5469_v17 = vpop.f32.mrb[38].mxu0 }
 0x27b   :  { %v1376_v18 = vpop.f32.mrb[39].mxu0 }
 0x280   :  { %v5471_v45 = vpop.f32.mrb[40].mxu0 }
 0x281   :  { %v5473_v61 = vpop.f32.mrb[41].mxu0 }
 0x282   :  { %v5475_v20 = vpop.f32.mrb[42].mxu0 }
 0x283   :  { %v5477_v5 = vpop.f32.mrb[43].mxu0 }
 0x288   :  { %v5479_v29 = vpop.f32.mrb[44].mxu0 }
 0x289   :  { %v5481_v23 = vpop.f32.mrb[45].mxu0 }
 0x28a   :  { %v5483_v1 = vpop.f32.mrb[46].mxu0 }
 0x28b   :  { %v5485_v2 = vpop.f32.mrb[47].mxu0 }
 0x2a0   :  { %v1236_v35 = vpop.f32.mrb[48].mxu1 }
 0x2a1   :  { %v1358_v26 = vadd.f32 %v1357_v31, %v1236_v35  ;;  %v5494_v52 = vpop.f32.mrb[49].mxu1 }
 0x2a2   :  { %v1240_v27 = vpop.f32.mrb[50].mxu1 }
 0x2a3   :  { %v1420_v56 = vadd.f32 %v1358_v26, %v837_v36  ;;  %v1361_v47 = vadd.f32 %v1360_v12, %v1240_v27  ;;  %v5498_v28 = vpop.f32.mrb[51].mxu1  ;;  %v848_v12 = vadd.f32 %v5373_v21, %v5490_v30 }
 0x2a5   :  { %v3577_v46 = vmul.f32 -1.442695, %v1420_v56  ;;  %v1421_v13 = vadd.f32 %v1361_v47, %v840_v41  ;;  %v1757_v44 = vmax.f32 %v1420_v56, 0.0 }
 0x2a7   :  { %4131 = vpow2.f32 %v3577_v46  ;;  %v3578_v37 = vmul.f32 -1.442695, %v1421_v13  ;;  %v1758_v4 = vmax.f32 %v1421_v13, 0.0 }
 0x2a8   :  { %v1246_v59 = vpop.f32.mrb[52].mxu1 }
 0x2a9   :  { %4133 = vpow2.f32 %v3578_v37  ;;  %v5502_v31 = vpack.c.bf16 %v1758_v4, %v1757_v44  ;;  %v1366_v35 = vadd.f32 %v3885_v11, %v1246_v59  ;;  %v5504_v49 = vpop.f32.mrb[53].mxu1 }
 0x2aa   :  { %v1250_v62 = vpop.f32.mrb[54].mxu1 }
 0x2ab   :  { %v1422_v36 = vadd.f32 %v1366_v35, %v845_v14  ;;  %v1369_v47 = vadd.f32 %v3886_v32, %v1250_v62  ;;  %v5508_v46 = vpop.f32.mrb[55].mxu1  ;;  %2094 = vmatmul.mubr.bf16.vlgmr.msra.gmra.mrb[80].mxu1 %v5502_v31  ;;  %v856_v35 = vadd.f32 %v5490_v30, %v5395_v63  ;;  %v861_v63 = vadd.f32 %v5389_v33, %v5490_v30 }
 0x2ac   :  { %2103 = vmatprep.mubr.bf16.mxu1 %v6343_v34 }
 0x2ad   :  { %v3579_v56 = vmul.f32 -1.442695, %v1422_v36  ;;  %v1423_v13 = vadd.f32 %v1369_v47, %v848_v12  ;;  %v1759_v4 = vmax.f32 %v1422_v36, 0.0 }
 0x2af   :  { %4135 = vpow2.f32 %v3579_v56  ;;  %v3580_v37 = vmul.f32 -1.442695, %v1423_v13  ;;  %v1760_v59 = vmax.f32 %v1423_v13, 0.0 }
 0x2b0   :  { %v1256_v44 = vpop.f32.mrb[56].mxu1 }
 0x2b1   :  { %v4132_v41 = vpop.eup %4131  ;;  %4137 = vpow2.f32 %v3580_v37  ;;  %v1374_v21 = vadd.f32 %v1373_v58, %v1256_v44  ;;  %v5514_v11 = vpop.f32.mrb[57].mxu1  ;;  %v5516_v32 = vpack.c.bf16 %v1760_v59, %v1759_v4 }
 0x2b2   :  { %v1484_v26 = vadd.f32 1.0, %v4132_v41  ;;  %v1260_v27 = vpop.f32.mrb[58].mxu1 }
 0x2b3   :  { %v4134_v14 = vpop.eup %4133  ;;  %v1424_v62 = vadd.f32 %v1374_v21, %v853_v43  ;;  %v1377_v12 = vadd.f32 %v1376_v18, %v1260_v27  ;;  %v5520_v36 = vpop.f32.mrb[59].mxu1  ;;  %2104 = vmatmul.mubr.bf16.gmra.mrb[84].mxu1 %v5516_v32  ;;  %v864_v27 = vadd.f32 %v5393_v10, %v5490_v30 }
 0x2b4   :  { %4139 = vrcp.f32 %v1484_v26  ;;  %v1485_v60 = vadd.f32 1.0, %v4134_v14  ;;  %2113 = vmatprep.mubr.bf16.mxu1 %v6343_v34 }
 0x2b5   :  { %v3581_v58 = vmul.f32 -1.442695, %v1424_v62  ;;  %v1425_v47 = vadd.f32 %v1377_v12, %v856_v35  ;;  %v1761_v56 = vmax.f32 %v1424_v62, 0.0 }
 0x2b6   :  { %4141 = vrcp.f32 %v1485_v60 }
 0x2b7   :  { %4143 = vpow2.f32 %v3581_v58  ;;  %v3582_v13 = vmul.f32 -1.442695, %v1425_v47  ;;  %v1762_v4 = vmax.f32 %v1425_v47, 0.0 }
 0x2b8   :  { %v1266_v37 = vpop.f32.mrb[60].mxu1 }
 0x2b9   :  { %v4136_v59 = vpop.eup %4135  ;;  %4145 = vpow2.f32 %v3582_v13  ;;  %v1382_v18 = vadd.f32 %v5467_v0, %v1266_v37  ;;  %v5527_v44 = vpop.f32.mrb[61].mxu1  ;;  %v5529_v41 = vpack.c.bf16 %v1762_v4, %v1761_v56 }
 0x2ba   :  { %v1486_v43 = vadd.f32 1.0, %v4136_v59  ;;  %v1270_v21 = vpop.f32.mrb[62].mxu1 }
 0x2bb   :  { %v4138_v26 = vpop.eup %4137  ;;  %v1426_v14 = vadd.f32 %v1382_v18, %v861_v63  ;;  %v1385_v35 = vadd.f32 %v5469_v17, %v1270_v21  ;;  %v5534_v62 = vpop.f32.mrb[63].mxu1  ;;  %2114 = vmatmul.mubr.bf16.gmra.mrb[88].mxu1 %v5529_v41  ;;  %v869_v17 = vadd.f32 %v5490_v30, %v5403_v6 }
 0x2bc   :  { %4147 = vrcp.f32 %v1486_v43  ;;  %v1487_v33 = vadd.f32 1.0, %v4138_v26  ;;  %2123 = vmatprep.mubr.bf16.mxu1 %v6343_v34 }
 0x2bd   :  { %v3583_v0 = vmul.f32 -1.442695, %v1426_v14  ;;  %v1427_v12 = vadd.f32 %v1385_v35, %v864_v27  ;;  %v1763_v13 = vmax.f32 %v1426_v14, 0.0  ;;  %v872_v35 = vadd.f32 %v5490_v30, %v5407_v22 }
 0x2be   :  { %v4140_v60 = vpop.eup %4139  ;;  %4149 = vrcp.f32 %v1487_v33 }
 0x2bf   :  { %v1532_v58 = vmul.f32 %v4140_v60, %v5494_v52  ;;  %4151 = vpow2.f32 %v3583_v0  ;;  %v3584_v47 = vmul.f32 -1.442695, %v1427_v12  ;;  %v1764_v10 = vmax.f32 %v1427_v12, 0.0 }
 0x2c0   :  { %v4142_v56 = vpop.eup %4141  ;;  %v1276_v4 = vpop.f32.mrb[64].mxu1 }
 0x2c1   :  { %v4144_v37 = vpop.eup %4143  ;;  %v1533_v59 = vmul.f32 %v4142_v56, %v5498_v28  ;;  %4153 = vpow2.f32 %v3584_v47  ;;  %v1390_v63 = vadd.f32 %v5473_v61, %v1276_v4  ;;  %v5543_v18 = vpop.f32.mrb[65].mxu1  ;;  %v1549_v43 = vpack.c.bf16 %v4142_v56, %v4140_v60 }
 0x2c2   :  { %v1488_v21 = vadd.f32 1.0, %v4144_v37  ;;  %v1280_v52 = vpop.f32.mrb[66].mxu1  ;;  %v5545_v26 = vpack.c.bf16 %v1764_v10, %v1763_v13  ;;  %v877_v10 = vadd.f32 %v5401_v3, %v5490_v30 }
 0x2c3   :  { %v4146_v27 = vpop.eup %4145  ;;  %v1548_v6 = vpack.c.bf16 %v1533_v59, %v1532_v58  ;;  %v1428_v14 = vadd.f32 %v1390_v63, %v869_v17  ;;  %v1393_v33 = vadd.f32 %v5477_v5, %v1280_v52  ;;  %v5550_v0 = vpop.f32.mrb[67].mxu1  ;;  %1564 = vmatprep.subr.bf16.mxu0 %v1549_v43 }
 0x2c4   :  { %4155 = vrcp.f32 %v1488_v21  ;;  %v1489_v28 = vadd.f32 1.0, %v4146_v27  ;;  %2124 = vmatmul.mubr.bf16.gmra.mrb[92].mxu1 %v5545_v26  ;;  %v880_v27 = vadd.f32 %v5405_v19, %v5490_v30 }
 0x2c5   :  { %v3585_v61 = vmul.f32 -1.442695, %v1428_v14  ;;  %v1429_v12 = vadd.f32 %v1393_v33, %v872_v35  ;;  %1565 = vmatpush1.bf16.msra.mxu0 %v1548_v6  ;;  %2133 = vmatprep.mubr.bf16.mxu1 %v6343_v34  ;;  %v1765_v56 = vmax.f32 %v1428_v14, 0.0 }
 0x2c6   :  { %v4148_v60 = vpop.eup %4147  ;;  %4157 = vrcp.f32 %v1489_v28 }
 0x2c7   :  { %v1534_v22 = vmul.f32 %v4148_v60, %v5504_v49  ;;  %4159 = vpow2.f32 %v3585_v61  ;;  %v3586_v58 = vmul.f32 -1.442695, %v1429_v12  ;;  %v1766_v47 = vmax.f32 %v1429_v12, 0.0 }
 0x2c8   :  { %v4150_v5 = vpop.eup %4149  ;;  %v1286_v17 = vpop.f32.mrb[68].mxu1 }
 0x2c9   :  { %v4152_v13 = vpop.eup %4151  ;;  %v1535_v4 = vmul.f32 %v4150_v5, %v5508_v46  ;;  %4161 = vpow2.f32 %v3586_v58  ;;  %v1398_v37 = vadd.f32 %v5471_v45, %v1286_v17  ;;  %v5559_v59 = vpop.f32.mrb[69].mxu1  ;;  %v1551_v63 = vpack.c.bf16 %v4150_v5, %v4148_v60 }
 0x2ca   :  { %v1490_v43 = vadd.f32 1.0, %v4152_v13  ;;  %v1290_v49 = vpop.f32.mrb[70].mxu1  ;;  %v5561_v21 = vpack.c.bf16 %v1766_v47, %v1765_v56  ;;  %v885_v60 = vadd.f32 %v5490_v30, %v5421_v24 }
 0x2cb   :  { %v4154_v52 = vpop.eup %4153  ;;  %v1550_v3 = vpack.c.bf16 %v1535_v4, %v1534_v22  ;;  %v1430_v35 = vadd.f32 %v1398_v37, %v877_v10  ;;  %v1401_v6 = vadd.f32 %v5475_v20, %v1290_v49  ;;  %v5566_v14 = vpop.f32.mrb[71].mxu1  ;;  %1566 = vmatprep.subr.bf16.mxu0 %v1551_v63  ;;  %v888_v63 = vadd.f32 %v5490_v30, %v5425_v40 }
 0x2cc   :  { %4163 = vrcp.f32 %v1490_v43  ;;  %v1491_v45 = vadd.f32 1.0, %v4154_v52  ;;  %2134 = vmatmul.mubr.bf16.gmra.mrb[96].mxu1 %v5561_v21 }
 0x2cd   :  { %v3587_v46 = vmul.f32 -1.442695, %v1430_v35  ;;  %v1431_v33 = vadd.f32 %v1401_v6, %v880_v27  ;;  %1567 = vmatpush1.bf16.msra.mxu0 %v1550_v3  ;;  %2143 = vmatprep.mubr.bf16.mxu1 %v6343_v34  ;;  %v1767_v22 = vmax.f32 %v1430_v35, 0.0 }
 0x2ce   :  { %v4156_v28 = vpop.eup %4155  ;;  %4165 = vrcp.f32 %v1491_v45  ;;  %v893_v45 = vadd.f32 %v5419_v16, %v5490_v30 }
 0x2cf   :  { %v1536_v19 = vmul.f32 %v4156_v28, %v5514_v11  ;;  %4167 = vpow2.f32 %v3587_v46  ;;  %v3588_v61 = vmul.f32 -1.442695, %v1431_v33  ;;  %v1768_v12 = vmax.f32 %v1431_v33, 0.0 }
 0x2d0   :  { %v4158_v20 = vpop.eup %4157  ;;  %v1296_v58 = vpop.f32.mrb[72].mxu1 }
 0x2d1   :  { %v4160_v47 = vpop.eup %4159  ;;  %v1537_v5 = vmul.f32 %v4158_v20, %v5520_v36  ;;  %4169 = vpow2.f32 %v3588_v61  ;;  %v1406_v10 = vadd.f32 %v5481_v23, %v1296_v58  ;;  %v5575_v56 = vpop.f32.mrb[73].mxu1  ;;  %v1553_v17 = vpack.c.bf16 %v4158_v20, %v4156_v28 }
 0x2d2   :  { %v1492_v13 = vadd.f32 1.0, %v4160_v47  ;;  %v1300_v11 = vpop.f32.mrb[74].mxu1  ;;  %v5577_v4 = vpack.c.bf16 %v1768_v12, %v1767_v22  ;;  %v896_v47 = vadd.f32 %v5423_v25, %v5490_v30 }
 0x2d3   :  { %v4162_v37 = vpop.eup %4161  ;;  %v1552_v24 = vpack.c.bf16 %v1537_v5, %v1536_v19  ;;  %v1432_v43 = vadd.f32 %v1406_v10, %v885_v60  ;;  %v1409_v49 = vadd.f32 %v5485_v2, %v1300_v11  ;;  %v5582_v52 = vpop.f32.mrb[75].mxu1  ;;  %1568 = vmatprep.subr.bf16.mxu0 %v1553_v17 }
 0x2d4   :  { %4171 = vrcp.f32 %v1492_v13  ;;  %v1493_v23 = vadd.f32 1.0, %v4162_v37  ;;  %2144 = vmatmul.mubr.bf16.gmra.mrb[100].mxu1 %v5577_v4 }
 0x2d5   :  { %v3589_v36 = vmul.f32 -1.442695, %v1432_v43  ;;  %v1433_v27 = vadd.f32 %v1409_v49, %v888_v63  ;;  %1569 = vmatpush1.bf16.msra.mxu0 %v1552_v24  ;;  %2153 = vmatprep.mubr.bf16.mxu1 %v6343_v34  ;;  %v1769_v46 = vmax.f32 %v1432_v43, 0.0 }
 0x2d6   :  { %v4164_v3 = vpop.eup %4163  ;;  %4173 = vrcp.f32 %v1493_v23 }
 0x2d7   :  { %v1538_v40 = vmul.f32 %v4164_v3, %v5527_v44  ;;  %4175 = vpow2.f32 %v3589_v36  ;;  %v3590_v35 = vmul.f32 -1.442695, %v1433_v27  ;;  %v1770_v6 = vmax.f32 %v1433_v27, 0.0 }
 0x2d8   :  { %v4166_v2 = vpop.eup %4165  ;;  %v1306_v33 = vpop.f32.mrb[76].mxu1 }
 0x2d9   :  { %v4168_v28 = vpop.eup %4167  ;;  %v1539_v19 = vmul.f32 %v4166_v2, %v5534_v62  ;;  %4177 = vpow2.f32 %v3590_v35  ;;  %v1414_v61 = vadd.f32 %v5479_v29, %v1306_v33  ;;  %v5591_v12 = vpop.f32.mrb[77].mxu1  ;;  %v1555_v20 = vpack.c.bf16 %v4166_v2, %v4164_v3 }
 0x2da   :  { %v1494_v60 = vadd.f32 1.0, %v4168_v28  ;;  %v1310_v44 = vpop.f32.mrb[78].mxu1  ;;  %v5593_v22 = vpack.c.bf16 %v1770_v6, %v1769_v46 }
 0x2db   :  { %v4170_v58 = vpop.eup %4169  ;;  %v1554_v16 = vpack.c.bf16 %v1539_v19, %v1538_v40  ;;  %v1434_v5 = vadd.f32 %v1414_v61, %v893_v45  ;;  %v1417_v10 = vadd.f32 %v5483_v1, %v1310_v44  ;;  %v1312_v17 = vpop.f32.mrb[79].mxu1  ;;  %1570 = vmatprep.subr.bf16.mxu0 %v1555_v20 }
 0x2dc   :  { %4179 = vrcp.f32 %v1494_v60  ;;  %v1495_v62 = vadd.f32 1.0, %v4170_v58  ;;  %2154 = vmatmul.mubr.bf16.gmra.mrb[104].mxu1 %v5593_v22 }
 0x2dd   :  { %v3591_v29 = vmul.f32 -1.442695, %v1434_v5  ;;  %v1435_v13 = vadd.f32 %v1417_v10, %v896_v47  ;;  %1571 = vmatpush1.bf16.msra.mxu0 %v1554_v16  ;;  %2163 = vmatprep.mubr.bf16.mxu1 %v6343_v34  ;;  %v1771_v37 = vmax.f32 %v1434_v5, 0.0  ;;  %v5610_v47 = vadd.s32 8, %v5152_v48  ;;  %v5616_v5 = vld [vmem:[%s6242_s5] ss:$0 sm:$0xff] }
 0x2de   :  { %v4172_v11 = vpop.eup %4171  ;;  %4181 = vrcp.f32 %v1495_v62  ;;  %vm1130_vm11 = vcmp.eq.s32.totalorder %v5152_v48, %v5616_v5 }
 0x2df   :  { %v1540_v25 = vmul.f32 %v4172_v11, %v5543_v18  ;;  %4183 = vpow2.f32 %v3591_v29  ;;  %v3592_v30 = vmul.f32 -1.442695, %v1435_v13  ;;  %v1772_v63 = vmax.f32 %v1435_v13, 0.0 }
 0x2e0   :  { %v4174_v1 = vpop.eup %4173  ;;  %vm1131_vm1 = vcmp.eq.s32.totalorder %v5610_v47, %v5616_v5  ;;  %v5632_v13 = vadd.s32 24, %v5152_v48 }
 0x2e1   :  { %v4176_v24 = vpop.eup %4175  ;;  %v1541_v43 = vmul.f32 %v4174_v1, %v5550_v0  ;;  %4185 = vpow2.f32 %v3592_v30  ;;  %v1557_v49 = vpack.c.bf16 %v4174_v1, %v4172_v11  ;;  %v5602_v23 = vpack.c.bf16 %v1772_v63, %v1771_v37  ;;  %vm3593_vm6 = vmpackc.low %vm1131_vm1, %vm1130_vm11  ;;  %v4096_v11 = vld [vmem:[%s6250_s13 + $0x2c] ss:$16 sps:$4 sm:$0xff]   ;;  %v4094_v37 = vld [vmem:[%s6250_s13 + $0x28] ss:$16 sps:$4 sm:$0xff]  }
 0x2e2   :  { %v1496_v36 = vadd.f32 1.0, %v4176_v24  ;;  %vm1133_vm0 = vcmp.eq.s32.totalorder %v5632_v13, %v5616_v5  ;;  %v4097_v30 = vld [vmem:[%s6250_s13 + $0x48] ss:$16 sps:$4 sm:$0xff]   ;;  %v5653_v63 = vadd.s32 32, %v5152_v48  ;;  %v5656_v1 = vadd.s32 40, %v5152_v48 }
 0x2e3   :  { %v4178_v27 = vpop.eup %4177  ;;  %v1556_v3 = vpack.c.bf16 %v1541_v43, %v1540_v25  ;;  %1572 = vmatprep.subr.bf16.mxu0 %v1557_v49  ;;  %v4099_v25 = vld [vmem:[%s6250_s13 + $0x4c] ss:$16 sps:$4 sm:$0xff]   ;;  %v4100_v43 = vld [vmem:[%s6250_s13 + $0x68] ss:$16 sps:$4 sm:$0xff]  }
 0x2e4   :  { %4187 = vrcp.f32 %v1496_v36  ;;  %v1497_v40 = vadd.f32 1.0, %v4178_v27  ;;  %2164 = vmatmul.mubr.bf16.gmra.mrb[108].mxu1 %v5602_v23  ;;  %v4102_v24 = vld [vmem:[%s6250_s13 + $0x6c] ss:$16 sps:$4 sm:$0xff]   ;;  %vm1134_vm12 = vcmp.eq.s32.totalorder %v5653_v63, %v5616_v5  ;;  %vm1135_vm9 = vcmp.eq.s32.totalorder %v5656_v1, %v5616_v5  ;;  %v4103_v36 = vld [vmem:[%s6250_s13 + $0x88] ss:$16 sps:$4 sm:$0xff]  }
 0x2e5   :  { %1573 = vmatpush1.bf16.msra.mxu0 %v1556_v3  ;;  %v4105_v49 = vld [vmem:[%s6250_s13 + $0x8c] ss:$16 sps:$4 sm:$0xff]   ;;  %vm3597_vm13 = vmpackc.low %vm1135_vm9, %vm1134_vm12  ;;  %v5677_v27 = vadd.s32 48, %v5152_v48  ;;  %v5680_v3 = vadd.s32 56, %v5152_v48 }
 0x2e6   :  { %v4180_v18 = vpop.eup %4179  ;;  %4189 = vrcp.f32 %v1497_v40  ;;  %v4108_v40 = vld [vmem:[%s6250_s13 + $0xac] ss:$16 sps:$4 sm:$0xff]  }
 0x2e7   :  { %v1542_v35 = vmul.f32 %v4180_v18, %v5559_v59  ;;  %vm1136_vm15 = vcmp.eq.s32.totalorder %v5677_v27, %v5616_v5  ;;  %vm1137_vm7 = vcmp.eq.s32.totalorder %v5680_v3, %v5616_v5 }
 0x2e8   :  { %v4182_v6 = vpop.eup %4181  ;;  %vm3599_vm4 = vmpackc.low %vm1137_vm7, %vm1136_vm15  ;;  %vm2639_vm7 = vcmp.eq.s32.totalorder %v5054_v57, %v5160_v50  ;;  %v6347_v50 = vsub.s32 1, %v5152_v48 }
 0x2e9   :  { %v4184_v2 = vpop.eup %4183  ;;  %v1543_v0 = vmul.f32 %v4182_v6, %v5566_v14  ;;  %v1559_v45 = vpack.c.bf16 %v4182_v6, %v4180_v18  ;;  %v4106_v18 = vld [vmem:[%s6250_s13 + $0xa8] ss:$16 sps:$4 sm:$0xff]  }
 0x2ea   :  { %v1498_v46 = vadd.f32 1.0, %v4184_v2  ;;  %v4109_v6 = vld [vmem:[%s6250_s13 + $0xc8] ss:$16 sps:$4 sm:$0xff]   ;;  %v5701_v2 = vadd.s32 64, %v5152_v48 }
 0x2eb   :  { %v4186_v33 = vpop.eup %4185  ;;  %v1558_v28 = vpack.c.bf16 %v1543_v0, %v1542_v35  ;;  %1574 = vmatprep.subr.bf16.mxu0 %v1559_v45  ;;  %v4111_v35 = vld [vmem:[%s6250_s13 + $0xcc] ss:$16 sps:$4 sm:$0xff]   ;;  %v5704_v0 = vadd.s32 72, %v5152_v48 }
 0x2ec   :  { %4191 = vrcp.f32 %v1498_v46  ;;  %v1499_v19 = vadd.f32 1.0, %v4186_v33  ;;  %v4114_v45 = vld [vmem:[%s6250_s13 + $0xec] ss:$16 sps:$4 sm:$0xff]   ;;  %v4112_v46 = vld [vmem:[%s6250_s13 + $0xe8] ss:$16 sps:$4 sm:$0xff]   ;;  %vm1138_vm5 = vcmp.eq.s32.totalorder %v5701_v2, %v5616_v5  ;;  %v5719_v33 = vadd.s32 80, %v5152_v48 }
 0x2ed   :  { %1575 = vmatpush1.bf16.msra.mxu0 %v1558_v28  ;;  %vm1139_vm8 = vcmp.eq.s32.totalorder %v5704_v0, %v5616_v5  ;;  %v5722_v28 = vadd.s32 88, %v5152_v48 }
 0x2ee   :  { %v4188_v61 = vpop.eup %4187  ;;  %4193 = vrcp.f32 %v1499_v19  ;;  %vm3601_vm11 = vmpackc.low %vm1139_vm8, %vm1138_vm5  ;;  %vm1140_vm1 = vcmp.eq.s32.totalorder %v5719_v33, %v5616_v5  ;;  %v5731_v19 = vadd.s32 96, %v5152_v48  ;;  %vm2641_vm8 = vcmp.eq.s32.totalorder %v5054_v57, %v5170_v54  ;;  %v4129_v54 = vld [vmem:[#allocation7 + $0x30] sm:$0xff]  }
 0x2ef   :  { %v1544_v20 = vmul.f32 %v4188_v61, %v5575_v56 }
 0x2f0   :  { %v4190_v60 = vpop.eup %4189 }
 0x2f1   :  { %v1545_v44 = vmul.f32 %v4190_v60, %v5582_v52  ;;  %v1561_v59 = vpack.c.bf16 %v4190_v60, %v4188_v61  ;;  %v4093_v52 = vld [vmem:[%s6250_s13 + $0xc] ss:$16 sps:$4 sm:$0xff]   ;;  %v5734_v61 = vadd.s32 104, %v5152_v48  ;;  %v5746_v60 = vadd.s32 120, %v5152_v48 }
 0x2f3   :  { %v1560_v58 = vpack.c.bf16 %v1545_v44, %v1544_v20  ;;  %1576 = vmatprep.subr.bf16.mxu0 %v1561_v59  ;;  %v5743_v20 = vadd.s32 112, %v5152_v48  ;;  %6345 = vst [vmem:[#allocation45_spill] sm:$0xff] %v5746_v60  ;;  %v4117_v59 = vld [vmem:[#allocation10 + $0x10] sm:$0xff]  }
 0x2f5   :  { %1577 = vmatpush1.bf16.msra.mxu0 %v1560_v58  ;;  %6344 = vst [vmem:[#allocation44_spill] sm:$0xff] %v5743_v20  ;;  %vm1144_vm9 = vcmp.eq.s32.totalorder %v5743_v20, %v5616_v5 }
 0x2f6   :  { %v4192_v14 = vpop.eup %4191 }
 0x2f7   :  { %v1546_v16 = vmul.f32 %v4192_v14, %v5591_v12  ;;  %v4091_v12 = vld [vmem:[%s6250_s13 + $0x8] ss:$16 sps:$4 sm:$0xff]  }
 0x2f8   :  { %v4194_v10 = vpop.eup %4193 }
 0x2f9   :  { %v1547_v56 = vmul.f32 %v4194_v10, %v1312_v17  ;;  %v1563_v62 = vpack.c.bf16 %v4194_v10, %v4192_v14  ;;  %v5629_v17 = vadd.s32 16, %v5152_v48 }
 0x2fb   :  { %v1562_v29 = vpack.c.bf16 %v1547_v56, %v1546_v16  ;;  %1578 = vmatprep.subr.bf16.mxu0 %v1563_v62  ;;  %vm1132_vm10 = vcmp.eq.s32.totalorder %v5629_v17, %v5616_v5  ;;  %v4118_v16 = vld [vmem:[#allocation10 + $0x18] sm:$0xff]  }
 0x2fc   :  { %vm3595_vm3 = vmpackc.low %vm1133_vm0, %vm1132_vm10  ;;  %vm1142_vm0 = vcmp.eq.s32.totalorder %v5731_v19, %v5616_v5 }
 0x2fd   :  { %1579 = vmatpush1.bf16.msra.mxu0 %v1562_v29  ;;  %v4119_v29 = vld [vmem:[#allocation10 + $0x20] sm:$0xff]  }
 0x2fe   :  { %2174 = vmatprep.subr.bf16.mxu0 %v4093_v52 }
 0x300   :  { %3594 = vmatmul.mubr.msk.bf16.vlgmr.msra.gmra.mrb[48].mxu0 %vm3593_vm6, %v6342_v42  ;;  %vm1141_vm6 = vcmp.eq.s32.totalorder %v5722_v28, %v5616_v5 }
 0x301   :  { %2175 = vmatpush1.bf16.msra.mxu0 %v4091_v12  ;;  %1606 = vmatprep.mubr.bf16.mxu0 %v6343_v34  ;;  %vm3603_vm10 = vmpackc.low %vm1141_vm6, %vm1140_vm1  ;;  %vm2643_vm1 = vcmp.eq.s32.totalorder %v5054_v57, %v5213_v8  ;;  %vm2642_vm6 = vcmp.eq.s32.totalorder %v5054_v57, %v5215_v9  ;;  %v2631_v8 = vpop.permute.xlu1 %2630  ;;  %v2628_v9 = vpop.permute.xlu0 %2627 }
 0x302   :  { %2176 = vmatprep.subr.bf16.mxu0 %v4096_v11 }
 0x305   :  { %2177 = vmatpush1.bf16.msra.mxu0 %v4094_v37  ;;  %v4120_v37 = vld [vmem:[#allocation10 + $0x28] sm:$0xff]  }
 0x306   :  { %2178 = vmatprep.subr.bf16.mxu0 %v4099_v25 }
 0x308   :  { %3596 = vmatmul.mubr.msk.bf16.gmra.mrb[52].mxu0 %vm3595_vm3, %v6342_v42  ;;  %vm1143_vm3 = vcmp.eq.s32.totalorder %v5734_v61, %v5616_v5 }
 0x309   :  { %1616 = vmatprep.mubr.bf16.mxu0 %v6343_v34  ;;  %2179 = vmatpush1.bf16.msra.mxu0 %v4097_v30  ;;  %vm3605_vm12 = vmpackc.low %vm1143_vm3, %vm1142_vm0  ;;  %vm2645_vm3 = vcmp.eq.s32.totalorder %v5054_v57, %v5231_v15  ;;  %v6363_v15 = vld [vmem:[#allocation42_spill] sm:$0xff] }
 0x30a   :  { %2180 = vmatprep.subr.bf16.mxu0 %v4102_v24  ;;  %vm3727_vm0 = vmpackc.low %vm2643_vm1, %vm2642_vm6 }
 0x30d   :  { %2181 = vmatpush1.bf16.msra.mxu0 %v4100_v43 }
 0x30e   :  { %2182 = vmatprep.subr.bf16.mxu0 %v4105_v49 }
 0x310   :  { %3598 = vmatmul.mubr.msk.bf16.gmra.mrb[56].mxu0 %vm3597_vm13, %v6342_v42  ;;  %vm1145_vm13 = vcmp.eq.s32.totalorder %v5746_v60, %v5616_v5 }
 0x311   :  { %1626 = vmatprep.mubr.bf16.mxu0 %v6343_v34  ;;  %2183 = vmatpush1.bf16.msra.mxu0 %v4103_v36  ;;  %vm3607_vm15 = vmpackc.low %vm1145_vm13, %vm1144_vm9  ;;  %v4121_v36 = vld [vmem:[#allocation10 + $0x30] sm:$0xff]   ;;  %vm2647_vm9 = vcmp.eq.s32.totalorder %v5054_v57, %v5265_v38  ;;  %vm2646_vm13 = vcmp.eq.s32.totalorder %v5054_v57, %v5267_v39  ;;  %v2637_v39 = vpop.permute.xlu1 %2636 }
 0x312   :  { %2184 = vmatprep.subr.bf16.mxu0 %v4108_v40 }
 0x315   :  { %2185 = vmatpush1.bf16.msra.mxu0 %v4106_v18  ;;  %v4122_v18 = vld [vmem:[#allocation10 + $0x38] sm:$0xff]  }
 0x316   :  { %2186 = vmatprep.subr.bf16.mxu0 %v4111_v35 }
 0x318   :  { %3600 = vmatmul.mubr.msk.bf16.gmra.mrb[60].mxu0 %vm3599_vm4, %v6342_v42  ;;  %vm2638_vm4 = vcmp.eq.s32.totalorder %v5054_v57, %v5162_v51  ;;  %v4116_v51 = vld [vmem:[#allocation10 + $0x8] sm:$0xff]  }
 0x319   :  { %1636 = vmatprep.mubr.bf16.mxu0 %v6343_v34  ;;  %2187 = vmatpush1.bf16.msra.mxu0 %v4109_v6  ;;  %vm3723_vm5 = vmpackc.low %vm2639_vm7, %vm2638_vm4  ;;  %vm2649_vm4 = vcmp.eq.s32.totalorder %v5054_v57, %v5274_v53 }
 0x31a   :  { %2188 = vmatprep.subr.bf16.mxu0 %v4114_v45  ;;  %vm3731_vm7 = vmpackc.low %vm2647_vm9, %vm2646_vm13 }
 0x31d   :  { %2189 = vmatpush1.bf16.msra.mxu0 %v4112_v46 }
 0x320   :  { %3602 = vmatmul.mubr.msk.bf16.gmra.mrb[64].mxu0 %vm3601_vm11, %v6342_v42  ;;  %vm2640_vm11 = vcmp.eq.s32.totalorder %v5054_v57, %v5172_v55  ;;  %v4130_v55 = vld [vmem:[#allocation7 + $0x38] sm:$0xff]  }
 0x321   :  { %1646 = vmatprep.mubr.bf16.mxu0 %v6343_v34 }
 0x328   :  { %3604 = vmatmul.mubr.msk.bf16.gmra.mrb[68].mxu0 %vm3603_vm10, %v6342_v42  ;;  %vm3725_vm10 = vmpackc.low %vm2641_vm8, %vm2640_vm11  ;;  %vm2651_vm8 = vcmp.eq.s32.totalorder %v5054_v57, %v2631_v8  ;;  %vm2650_vm11 = vcmp.eq.s32.totalorder %v5054_v57, %v2628_v9 }
 0x329   :  { %1656 = vmatprep.mubr.bf16.mxu0 %v6343_v34  ;;  %vm3735_vm6 = vmpackc.low %vm2651_vm8, %vm2650_vm11 }
 0x330   :  { %3606 = vmatmul.mubr.msk.bf16.gmra.mrb[72].mxu0 %vm3605_vm12, %v6342_v42  ;;  %vm2644_vm12 = vcmp.eq.s32.totalorder %v5054_v57, %v5233_v7 }
 0x331   :  { %1666 = vmatprep.mubr.bf16.mxu0 %v6343_v34 }
 0x338   :  { %3608 = vmatmul.mubr.msk.bf16.gmra.mrb[76].mxu0 %vm3607_vm15, %v6342_v42  ;;  %vm3729_vm15 = vmpackc.low %vm2645_vm3, %vm2644_vm12 }
 0x339   :  { %2206 = vmatprep.mubr.bf16.mxu0 %v6343_v34 }
 0x340   :  { %2207 = vmatmul.mubr.bf16.vlgmr.msra.gmra.mrb[80].mxu0 %v5502_v31  ;;  %v4115_v31 = vld [vmem:[#allocation10] sm:$0xff]  }
 0x341   :  { %2216 = vmatprep.mubr.bf16.mxu0 %v6343_v34  ;;  %3899 = vmatprep.subr.bf16.mxu1 %v4115_v31 }
 0x342   :  { %3900 = vmatpush3.bf16.msra.mxu1 %v4115_v31  ;;  %v4123_v31 = vld [vmem:[#allocation7] sm:$0xff]  }
 0x343   :  { %3901 = vmatprep.subr.bf16.mxu1 %v4116_v51  ;;  %3915 = vmatprep.mubr.bf16.mxu1 %v4123_v31 }
 0x346   :  { %3902 = vmatpush3.bf16.msra.mxu1 %v4116_v51 }
 0x347   :  { %3903 = vmatprep.subr.bf16.mxu1 %v4117_v59 }
 0x348   :  { %2217 = vmatmul.mubr.bf16.gmra.mrb[84].mxu0 %v5516_v32  ;;  %v5779_v32 = vld [vmem:[%s6251_s14] sm:$0xf] }
 0x349   :  { %2226 = vmatprep.mubr.bf16.mxu0 %v6343_v34 }
 0x34a   :  { %3904 = vmatpush3.bf16.msra.mxu1 %v4117_v59 }
 0x34b   :  { %3905 = vmatprep.subr.bf16.mxu1 %v4118_v16 }
 0x34e   :  { %3906 = vmatpush3.bf16.msra.mxu1 %v4118_v16 }
 0x34f   :  { %3907 = vmatprep.subr.bf16.mxu1 %v4119_v29 }
 0x350   :  { %2227 = vmatmul.mubr.bf16.gmra.mrb[88].mxu0 %v5529_v41 }
 0x351   :  { %2236 = vmatprep.mubr.bf16.mxu0 %v6343_v34 }
 0x352   :  { %3908 = vmatpush3.bf16.msra.mxu1 %v4119_v29 }
 0x353   :  { %3909 = vmatprep.subr.bf16.mxu1 %v4120_v37 }
 0x356   :  { %3910 = vmatpush3.bf16.msra.mxu1 %v4120_v37 }
 0x357   :  { %3911 = vmatprep.subr.bf16.mxu1 %v4121_v36 }
 0x358   :  { %2237 = vmatmul.mubr.bf16.gmra.mrb[92].mxu0 %v5545_v26  ;;  %v5786_v26 = vrot.slane %v5779_v32, %v6347_v50 }
 0x359   :  { %2246 = vmatprep.mubr.bf16.mxu0 %v6343_v34 }
 0x35a   :  { %3912 = vmatpush3.bf16.msra.mxu1 %v4121_v36 }
 0x35b   :  { %3913 = vmatprep.subr.bf16.mxu1 %v4122_v18 }
 0x35e   :  { %3914 = vmatpush3.bf16.msra.mxu1 %v4122_v18 }
 0x360   :  { %2247 = vmatmul.mubr.bf16.gmra.mrb[96].mxu0 %v5561_v21 }
 0x361   :  { %2256 = vmatprep.mubr.bf16.mxu0 %v6343_v34 }
 0x368   :  { %2257 = vmatmul.mubr.bf16.gmra.mrb[100].mxu0 %v5577_v4 }
 0x369   :  { %2266 = vmatprep.mubr.bf16.mxu0 %v6343_v34 }
 0x370   :  { %2267 = vmatmul.mubr.bf16.gmra.mrb[104].mxu0 %v5593_v22 }
 0x371   :  { %2276 = vmatprep.mubr.bf16.mxu0 %v6343_v34 }
 0x378   :  { %2277 = vmatmul.mubr.bf16.gmra.mrb[108].mxu0 %v5602_v23 }
 0x379   :  { %3947 = vmatprep.mubr.msk.bf16.mxu0 %vm3723_vm5, %v6342_v42  ;;  %vm2648_vm5 = vcmp.eq.s32.totalorder %v5054_v57, %v6363_v15 }
 0x37a   :  { %vm3733_vm1 = vmpackc.low %vm2649_vm4, %vm2648_vm5 }
 0x37e   :  { %v5781_v41 = vpop.f32.mrb[80].mxu1 }
 0x37f   :  { %6346 = vst [vmem:[#allocation46_spill] sm:$0xff] %v5781_v41  ;;  %v2097_v21 = vpop.f32.mrb[81].mxu1 }
 0x380   :  { %v5788_v4 = vpop.f32.mrb[82].mxu1  ;;  %v2098_v23 = vadd.f32 %v2097_v21, %v5786_v26  ;;  %v4124_v21 = vld [vmem:[#allocation7 + $0x8] sm:$0xff]  }
 0x381   :  { %6348 = vst [vmem:[#allocation47_spill] sm:$0xff] %v5788_v4  ;;  %v2101_v22 = vpop.f32.mrb[83].mxu1  ;;  %3916 = vmatmul.mubr.bf16.vlgmr.msra.gmra.mrb[112].mxu1 %v4124_v21 }
 0x382   :  { %v2102_v44 = vadd.f32 %v2101_v22, %v5786_v26 }
 0x384   :  { %v2883_v58 = vpack.c.bf16 %v2102_v44, %v2098_v23 }
 0x386   :  { %v5792_v14 = vpop.f32.mrb[84].mxu1  ;;  %3931 = vmatprep.subr.bf16.mxu0 %v2883_v58 }
 0x387   :  { %6349 = vst [vmem:[#allocation48_spill] sm:$0xff] %v5792_v14  ;;  %v2107_v5 = vpop.f32.mrb[85].mxu1  ;;  %3932 = vmatpush3.bf16.msra.mxu0 %v2883_v58 }
 0x388   :  { %v5794_v10 = vpop.f32.mrb[86].mxu1  ;;  %v2108_v62 = vadd.f32 %v2107_v5, %v5786_v26 }
 0x389   :  { %6350 = vst [vmem:[#allocation49_spill] sm:$0xff] %v5794_v10  ;;  %v2111_v56 = vpop.f32.mrb[87].mxu1 }
 0x38a   :  { %v2112_v52 = vadd.f32 %v2111_v56, %v5786_v26 }
 0x38c   :  { %v2884_v12 = vpack.c.bf16 %v2112_v52, %v2108_v62 }
 0x38e   :  { %v5798_v11 = vpop.f32.mrb[88].mxu1  ;;  %3933 = vmatprep.subr.bf16.mxu0 %v2884_v12 }
 0x38f   :  { %6351 = vst [vmem:[#allocation50_spill] sm:$0xff] %v5798_v11  ;;  %v2117_v25 = vpop.f32.mrb[89].mxu1  ;;  %3934 = vmatpush3.bf16.msra.mxu0 %v2884_v12 }
 0x390   :  { %v5800_v30 = vpop.f32.mrb[90].mxu1  ;;  %v2118_v43 = vadd.f32 %v2117_v25, %v5786_v26 }
 0x391   :  { %6352 = vst [vmem:[#allocation51_spill] sm:$0xff] %v5800_v30  ;;  %v2121_v24 = vpop.f32.mrb[91].mxu1 }
 0x392   :  { %v2122_v49 = vadd.f32 %v2121_v24, %v5786_v26 }
 0x394   :  { %v2885_v40 = vpack.c.bf16 %v2122_v49, %v2118_v43 }
 0x396   :  { %3935 = vmatprep.subr.bf16.mxu0 %v2885_v40 }
 0x397   :  { %v5804_v35 = vpop.f32.mrb[92].mxu1  ;;  %3936 = vmatpush3.bf16.msra.mxu0 %v2885_v40 }
 0x398   :  { %6353 = vst [vmem:[#allocation52_spill] sm:$0xff] %v5804_v35  ;;  %v2127_v6 = vpop.f32.mrb[93].mxu1 }
 0x399   :  { %v5806_v45 = vpop.f32.mrb[94].mxu1  ;;  %v2128_v50 = vadd.f32 %v2127_v6, %v5786_v26 }
 0x39a   :  { %6354 = vst [vmem:[#allocation53_spill] sm:$0xff] %v5806_v45  ;;  %v2131_v46 = vpop.f32.mrb[95].mxu1 }
 0x39b   :  { %v2132_v51 = vadd.f32 %v2131_v46, %v5786_v26 }
 0x39d   :  { %v2886_v22 = vpack.c.bf16 %v2132_v51, %v2128_v50 }
 0x39f   :  { %v5810_v23 = vpop.f32.mrb[96].mxu1  ;;  %3937 = vmatprep.subr.bf16.mxu0 %v2886_v22 }
 0x3a0   :  { %6355 = vst [vmem:[#allocation54_spill] sm:$0xff] %v5810_v23  ;;  %v2137_v44 = vpop.f32.mrb[97].mxu1  ;;  %3938 = vmatpush3.bf16.msra.mxu0 %v2886_v22  ;;  %v4125_v22 = vld [vmem:[#allocation7 + $0x10] sm:$0xff]  }
 0x3a1   :  { %v5812_v59 = vpop.f32.mrb[98].mxu1  ;;  %v2138_v16 = vadd.f32 %v2137_v44, %v5786_v26  ;;  %3919 = vmatprep.mubr.bf16.mxu1 %v4125_v22 }
 0x3a2   :  { %6356 = vst [vmem:[#allocation55_spill] sm:$0xff] %v5812_v59  ;;  %v2141_v58 = vpop.f32.mrb[99].mxu1 }
 0x3a3   :  { %v2142_v5 = vadd.f32 %v2141_v58, %v5786_v26 }
 0x3a5   :  { %v2887_v56 = vpack.c.bf16 %v2142_v5, %v2138_v16  ;;  %v4126_v16 = vld [vmem:[#allocation7 + $0x18] sm:$0xff]  }
 0x3a6   :  { %3920 = vmatmul.mubr.bf16.gmra.mrb[116].mxu1 %v4126_v16 }
 0x3a7   :  { %v5816_v62 = vpop.f32.mrb[100].mxu1  ;;  %3939 = vmatprep.subr.bf16.mxu0 %v2887_v56 }
 0x3a8   :  { %6357 = vst [vmem:[#allocation56_spill] sm:$0xff] %v5816_v62  ;;  %v2147_v52 = vpop.f32.mrb[101].mxu1  ;;  %3940 = vmatpush3.bf16.msra.mxu0 %v2887_v56  ;;  %v4128_v56 = vld [vmem:[#allocation7 + $0x28] sm:$0xff]  }
 0x3a9   :  { %v5818_v29 = vpop.f32.mrb[102].mxu1  ;;  %v2148_v37 = vadd.f32 %v2147_v52, %v5786_v26 }
 0x3aa   :  { %6358 = vst [vmem:[#allocation57_spill] sm:$0xff] %v5818_v29  ;;  %v2151_v12 = vpop.f32.mrb[103].mxu1 }
 0x3ab   :  { %v2152_v25 = vadd.f32 %v2151_v12, %v5786_v26  ;;  %v2634_v12 = vpop.permute.xlu0 %2633 }
 0x3ad   :  { %v2888_v24 = vpack.c.bf16 %v2152_v25, %v2148_v37 }
 0x3af   :  { %v5822_v43 = vpop.f32.mrb[104].mxu1  ;;  %3941 = vmatprep.subr.bf16.mxu0 %v2888_v24 }
 0x3b0   :  { %6359 = vst [vmem:[#allocation58_spill] sm:$0xff] %v5822_v43  ;;  %v2157_v49 = vpop.f32.mrb[105].mxu1  ;;  %3942 = vmatpush3.bf16.msra.mxu0 %v2888_v24 }
 0x3b1   :  { %v5824_v36 = vpop.f32.mrb[106].mxu1  ;;  %v2158_v18 = vadd.f32 %v2157_v49, %v5786_v26  ;;  %v6277_v49 = vsub.s32 0, %v5152_v48 }
 0x3b2   :  { %6360 = vst [vmem:[#allocation59_spill] sm:$0xff] %v5824_v36  ;;  %v2161_v40 = vpop.f32.mrb[107].mxu1  ;;  %v6029_v36 = vld [vmem:[%s6253_s16] ss:$0 sm:$0xff] }
 0x3b3   :  { %v2162_v6 = vadd.f32 %v2161_v40, %v5786_v26 }
 0x3b5   :  { %v2889_v46 = vpack.c.bf16 %v2162_v6, %v2158_v18 }
 0x3b7   :  { %v5828_v31 = vpop.f32.mrb[108].mxu1  ;;  %3943 = vmatprep.subr.bf16.mxu0 %v2889_v46 }
 0x3b8   :  { %6361 = vst [vmem:[#allocation60_spill] sm:$0xff] %v5828_v31  ;;  %v2167_v50 = vpop.f32.mrb[109].mxu1  ;;  %3944 = vmatpush3.bf16.msra.mxu0 %v2889_v46 }
 0x3b9   :  { %v5830_v51 = vpop.f32.mrb[110].mxu1  ;;  %v2168_v44 = vadd.f32 %v2167_v50, %v5786_v26 }
 0x3ba   :  { %6362 = vst [vmem:[#allocation61_spill] sm:$0xff] %v5830_v51  ;;  %v2171_v21 = vpop.f32.mrb[111].mxu1 }
 0x3bb   :  { %v2172_v58 = vadd.f32 %v2171_v21, %v5786_v26  ;;  %v4127_v26 = vld [vmem:[#allocation7 + $0x20] sm:$0xff]  }
 0x3bc   :  { %3923 = vmatprep.mubr.bf16.mxu1 %v4127_v26  ;;  %v4323_v21 = vld [vmem:[%s6247_s10] sm:$0xf] }
 0x3bd   :  { %v2890_v5 = vpack.c.bf16 %v2172_v58, %v2168_v44  ;;  %3924 = vmatmul.mubr.bf16.gmra.mrb[120].mxu1 %v4128_v56  ;;  %v5873_v22 = vrot.slane %v4323_v21, %v6277_v49  ;;  %v6364_v58 = vld [vmem:[#allocation25_spill] sm:$0xff] }
 0x3be   :  { %3927 = vmatprep.mubr.bf16.mxu1 %v4129_v54  ;;  %v6365_v54 = vld [vmem:[#allocation27_spill] sm:$0xff] }
 0x3bf   :  { %3945 = vmatprep.subr.bf16.mxu0 %v2890_v5  ;;  %v509_v16 = vadd.f32 %v6364_v58, %v5873_v22 }
 0x3c0   :  { %3946 = vmatpush3.bf16.msra.mxu0 %v2890_v5 }
 0x3c3   :  { %3948 = vmatmul.mubr.msk.bf16.vlgmr.msra.gmra.mrb[112].mxu0 %vm3725_vm10, %v6342_v42  ;;  %vm2653_vm10 = vcmp.eq.s32.totalorder %v5054_v57, %v2637_v39 }
 0x3c4   :  { %3951 = vmatprep.mubr.msk.bf16.mxu0 %vm3727_vm0, %v6342_v42  ;;  %vm2652_vm0 = vcmp.eq.s32.totalorder %v5054_v57, %v2634_v12 }
 0x3c5   :  { %3928 = vmatmul.mubr.bf16.gmra.mrb[124].mxu1 %v4130_v55  ;;  %vm3737_vm3 = vmpackc.low %vm2653_vm10, %vm2652_vm0  ;;  %v513_v55 = vadd.f32 %v6365_v54, %v5873_v22 }
 0x3c6   :  { %2802 = vmatprep.mubr.bf16.mxu1 %v6343_v34 }
 0x3cb   :  { %3952 = vmatmul.mubr.msk.bf16.gmra.mrb[116].mxu0 %vm3729_vm15, %v6342_v42 }
 0x3cc   :  { %3955 = vmatprep.mubr.msk.bf16.mxu0 %vm3731_vm7, %v6342_v42 }
 0x3d3   :  { %3956 = vmatmul.mubr.msk.bf16.gmra.mrb[120].mxu0 %vm3733_vm1, %v6342_v42  ;;  %v1598_v7 = vpop.f32.mrb[48].mxu0 }
 0x3d4   :  { %3959 = vmatprep.mubr.msk.bf16.mxu0 %vm3735_vm6, %v6342_v42  ;;  %v1600_v38 = vpop.f32.mrb[49].mxu0 }
 0x3d5   :  { %v1677_v52 = vadd.f32 1e-06, %v1600_v38  ;;  %v1602_v53 = vpop.f32.mrb[50].mxu0 }
 0x3d6   :  { %v1604_v37 = vpop.f32.mrb[51].mxu0 }
 0x3d7   :  { %4195 = vrcp.f32 %v1677_v52  ;;  %v1678_v25 = vadd.f32 1e-06, %v1604_v37 }
 0x3d9   :  { %4197 = vrcp.f32 %v1678_v25 }
 0x3db   :  { %3960 = vmatmul.mubr.msk.bf16.gmra.mrb[124].mxu0 %vm3737_vm3, %v6342_v42  ;;  %v1608_v24 = vpop.f32.mrb[52].mxu0 }
 0x3dc   :  { %v1610_v40 = vpop.f32.mrb[53].mxu0  ;;  %3164 = vmatprep.mubr.bf16.mxu0 %v6343_v34 }
 0x3dd   :  { %v1679_v18 = vadd.f32 1e-06, %v1610_v40  ;;  %v1612_v6 = vpop.f32.mrb[54].mxu0 }
 0x3de   :  { %v1614_v46 = vpop.f32.mrb[55].mxu0 }
 0x3df   :  { %4199 = vrcp.f32 %v1679_v18  ;;  %v1680_v50 = vadd.f32 1e-06, %v1614_v46 }
 0x3e1   :  { %v4196_v44 = vpop.eup %4195  ;;  %4201 = vrcp.f32 %v1680_v50 }
 0x3e2   :  { %v1709_v5 = vmul.f32 %v4196_v44, %v1598_v7  ;;  %v6366_v7 = vld [vmem:[#allocation30_spill] sm:$0xff] }
 0x3e3   :  { %v4198_v26 = vpop.eup %4197  ;;  %v1618_v56 = vpop.f32.mrb[56].mxu0  ;;  %v519_v46 = vadd.f32 %v6366_v7, %v5873_v22 }
 0x3e4   :  { %v1725_v15 = vadd.f32 %v1709_v5, %v509_v16  ;;  %v1710_v8 = vmul.f32 %v4198_v26, %v1602_v53  ;;  %v1620_v9 = vpop.f32.mrb[57].mxu0  ;;  %v6367_v53 = vld [vmem:[#allocation32_spill] sm:$0xff] }
 0x3e5   :  { %v1681_v38 = vadd.f32 1e-06, %v1620_v9  ;;  %v1622_v39 = vpop.f32.mrb[58].mxu0  ;;  %v523_v58 = vadd.f32 %v6367_v53, %v5873_v22 }
 0x3e6   :  { %v1741_v52 = vmax.f32 %v1725_v15, 0.0  ;;  %v1726_v12 = vadd.f32 %v1710_v8, %v513_v55  ;;  %v1624_v37 = vpop.f32.mrb[59].mxu0 }
 0x3e7   :  { %4203 = vrcp.f32 %v1681_v38  ;;  %v1682_v25 = vadd.f32 1e-06, %v1624_v37 }
 0x3e8   :  { %3341 = vst [vmem:[#allocation11] sm:$0xff] %v1741_v52  ;;  %v1742_v40 = vmax.f32 %v1726_v12, 0.0 }
 0x3e9   :  { %v4200_v18 = vpop.eup %4199  ;;  %4205 = vrcp.f32 %v1682_v25 }
 0x3ea   :  { %3342 = vst [vmem:[#allocation11 + $0x8] sm:$0xff] %v1742_v40  ;;  %v1711_v50 = vmul.f32 %v4200_v18, %v1608_v24  ;;  %v6368_v24 = vld [vmem:[#allocation34_spill] sm:$0xff] }
 0x3eb   :  { %v4202_v21 = vpop.eup %4201  ;;  %v1628_v44 = vpop.f32.mrb[60].mxu0  ;;  %v529_v37 = vadd.f32 %v6368_v24, %v5873_v22 }
 0x3ec   :  { %v1727_v16 = vadd.f32 %v1711_v50, %v519_v46  ;;  %v1712_v5 = vmul.f32 %v4202_v21, %v1612_v6  ;;  %v1630_v26 = vpop.f32.mrb[61].mxu0  ;;  %v6369_v6 = vld [vmem:[#allocation36_spill] sm:$0xff] }
 0x3ed   :  { %v1683_v54 = vadd.f32 1e-06, %v1630_v26  ;;  %v1632_v55 = vpop.f32.mrb[62].mxu0  ;;  %v533_v7 = vadd.f32 %v6369_v6, %v5873_v22 }
 0x3ee   :  { %v1743_v15 = vmax.f32 %v1727_v16, 0.0  ;;  %v1728_v8 = vadd.f32 %v1712_v5, %v523_v58  ;;  %v1634_v9 = vpop.f32.mrb[63].mxu0 }
 0x3ef   :  { %4207 = vrcp.f32 %v1683_v54  ;;  %v1684_v38 = vadd.f32 1e-06, %v1634_v9 }
 0x3f0   :  { %3343 = vst [vmem:[#allocation11 + $0x10] sm:$0xff] %v1743_v15  ;;  %v1744_v52 = vmax.f32 %v1728_v8, 0.0 }
 0x3f1   :  { %v4204_v12 = vpop.eup %4203  ;;  %4209 = vrcp.f32 %v1684_v38 }
 0x3f2   :  { %3344 = vst [vmem:[#allocation11 + $0x18] sm:$0xff] %v1744_v52  ;;  %v1713_v25 = vmul.f32 %v4204_v12, %v1618_v56  ;;  %v6370_v56 = vld [vmem:[#allocation37_spill] sm:$0xff] }
 0x3f3   :  { %v4206_v40 = vpop.eup %4205  ;;  %v1638_v18 = vpop.f32.mrb[64].mxu0  ;;  %v539_v9 = vadd.f32 %v6370_v56, %v5873_v22 }
 0x3f4   :  { %v1729_v46 = vadd.f32 %v1713_v25, %v529_v37  ;;  %v1714_v50 = vmul.f32 %v4206_v40, %v1622_v39  ;;  %v1640_v21 = vpop.f32.mrb[65].mxu0  ;;  %v6371_v39 = vld [vmem:[#allocation39_spill] sm:$0xff] }
 0x3f5   :  { %v1685_v53 = vadd.f32 1e-06, %v1640_v21  ;;  %v1642_v58 = vpop.f32.mrb[66].mxu0  ;;  %v543_v24 = vadd.f32 %v6371_v39, %v5873_v22 }
 0x3f6   :  { %v1745_v16 = vmax.f32 %v1729_v46, 0.0  ;;  %v1730_v5 = vadd.f32 %v1714_v50, %v533_v7  ;;  %v1644_v26 = vpop.f32.mrb[67].mxu0 }
 0x3f7   :  { %4211 = vrcp.f32 %v1685_v53  ;;  %v1686_v54 = vadd.f32 1e-06, %v1644_v26 }
 0x3f8   :  { %3345 = vst [vmem:[#allocation11 + $0x20] sm:$0xff] %v1745_v16  ;;  %v1746_v15 = vmax.f32 %v1730_v5, 0.0 }
 0x3f9   :  { %v4208_v8 = vpop.eup %4207  ;;  %4213 = vrcp.f32 %v1686_v54 }
 0x3fa   :  { %3346 = vst [vmem:[#allocation11 + $0x28] sm:$0xff] %v1746_v15  ;;  %v1715_v38 = vmul.f32 %v4208_v8, %v1628_v44  ;;  %v6372_v44 = vld [vmem:[#allocation24_spill] sm:$0xff] }
 0x3fb   :  { %v4210_v52 = vpop.eup %4209  ;;  %v1648_v12 = vpop.f32.mrb[68].mxu0  ;;  %v549_v26 = vadd.f32 %v6372_v44, %v5873_v22 }
 0x3fc   :  { %v1731_v37 = vadd.f32 %v1715_v38, %v539_v9  ;;  %v1716_v25 = vmul.f32 %v4210_v52, %v1632_v55  ;;  %v1650_v40 = vpop.f32.mrb[69].mxu0  ;;  %v6373_v55 = vld [vmem:[#allocation26_spill] sm:$0xff] }
 0x3fd   :  { %v1687_v6 = vadd.f32 1e-06, %v1650_v40  ;;  %v1652_v7 = vpop.f32.mrb[70].mxu0  ;;  %v553_v56 = vadd.f32 %v6373_v55, %v5873_v22 }
 0x3fe   :  { %v1747_v46 = vmax.f32 %v1731_v37, 0.0  ;;  %v1732_v50 = vadd.f32 %v1716_v25, %v543_v24  ;;  %v1654_v21 = vpop.f32.mrb[71].mxu0 }
 0x3ff   :  { %4215 = vrcp.f32 %v1687_v6  ;;  %v1688_v53 = vadd.f32 1e-06, %v1654_v21 }
 0x400   :  { %3347 = vst [vmem:[#allocation11 + $0x30] sm:$0xff] %v1747_v46  ;;  %v1748_v16 = vmax.f32 %v1732_v50, 0.0 }
 0x401   :  { %v4212_v5 = vpop.eup %4211  ;;  %4217 = vrcp.f32 %v1688_v53 }
 0x402   :  { %3348 = vst [vmem:[#allocation11 + $0x38] sm:$0xff] %v1748_v16  ;;  %v1717_v54 = vmul.f32 %v4212_v5, %v1638_v18  ;;  %v6374_v18 = vld [vmem:[#allocation29_spill] sm:$0xff] }
 0x403   :  { %v4214_v15 = vpop.eup %4213  ;;  %v1658_v8 = vpop.f32.mrb[72].mxu0  ;;  %v559_v21 = vadd.f32 %v6374_v18, %v5873_v22 }
 0x404   :  { %v1733_v9 = vadd.f32 %v1717_v54, %v549_v26  ;;  %v1718_v38 = vmul.f32 %v4214_v15, %v1642_v58  ;;  %v1660_v52 = vpop.f32.mrb[73].mxu0  ;;  %v6375_v58 = vld [vmem:[#allocation31_spill] sm:$0xff] }
 0x405   :  { %v1689_v39 = vadd.f32 1e-06, %v1660_v52  ;;  %v1662_v24 = vpop.f32.mrb[74].mxu0  ;;  %v563_v44 = vadd.f32 %v6375_v58, %v5873_v22 }
 0x406   :  { %v1749_v37 = vmax.f32 %v1733_v9, 0.0  ;;  %v1734_v25 = vadd.f32 %v1718_v38, %v553_v56  ;;  %v1664_v40 = vpop.f32.mrb[75].mxu0 }
 0x407   :  { %4219 = vrcp.f32 %v1689_v39  ;;  %v1690_v6 = vadd.f32 1e-06, %v1664_v40 }
 0x408   :  { %3349 = vst [vmem:[#allocation11 + $0x40] sm:$0xff] %v1749_v37  ;;  %v1750_v46 = vmax.f32 %v1734_v25, 0.0 }
 0x409   :  { %v4216_v50 = vpop.eup %4215  ;;  %4221 = vrcp.f32 %v1690_v6 }
 0x40a   :  { %3350 = vst [vmem:[#allocation11 + $0x48] sm:$0xff] %v1750_v46  ;;  %v1719_v53 = vmul.f32 %v4216_v50, %v1648_v12  ;;  %v6376_v12 = vld [vmem:[#allocation33_spill] sm:$0xff]  ;;  %v6377_v46 = vsub.s32 2, %v5152_v48 }
 0x40b   :  { %v4218_v16 = vpop.eup %4217  ;;  %v1668_v5 = vpop.f32.mrb[76].mxu0  ;;  %v569_v40 = vadd.f32 %v6376_v12, %v5873_v22 }
 0x40c   :  { %v1735_v26 = vadd.f32 %v1719_v53, %v559_v21  ;;  %v1720_v54 = vmul.f32 %v4218_v16, %v1652_v7  ;;  %v1670_v15 = vpop.f32.mrb[77].mxu0  ;;  %v5904_v7 = vrot.slane %v5779_v32, %v6377_v46  ;;  %v6378_v21 = vsub.s32 3, %v5152_v48  ;;  %v6379_v16 = vld [vmem:[#allocation35_spill] sm:$0xff] }
 0x40d   :  { %v1691_v55 = vadd.f32 1e-06, %v1670_v15  ;;  %v1672_v56 = vpop.f32.mrb[78].mxu0  ;;  %v573_v58 = vadd.f32 %v6379_v16, %v5873_v22 }
 0x40e   :  { %v1751_v9 = vmax.f32 %v1735_v26, 0.0  ;;  %v1736_v38 = vadd.f32 %v1720_v54, %v563_v44  ;;  %v1674_v52 = vpop.f32.mrb[79].mxu0  ;;  %v5909_v53 = vrot.slane %v5779_v32, %v6378_v21 }
 0x40f   :  { %4223 = vrcp.f32 %v1691_v55  ;;  %v1692_v39 = vadd.f32 1e-06, %v1674_v52 }
 0x410   :  { %3351 = vst [vmem:[#allocation11 + $0x50] sm:$0xff] %v1751_v9  ;;  %v1752_v37 = vmax.f32 %v1736_v38, 0.0 }
 0x411   :  { %v4220_v25 = vpop.eup %4219  ;;  %4225 = vrcp.f32 %v1692_v39 }
 0x412   :  { %3352 = vst [vmem:[#allocation11 + $0x58] sm:$0xff] %v1752_v37  ;;  %v1721_v6 = vmul.f32 %v4220_v25, %v1658_v8 }
 0x413   :  { %v4222_v50 = vpop.eup %4221  ;;  %v2208_v18 = vpop.f32.mrb[80].mxu0 }
 0x414   :  { %v1737_v44 = vadd.f32 %v1721_v6, %v569_v40  ;;  %v1722_v26 = vmul.f32 %v4222_v50, %v1662_v24  ;;  %v2210_v54 = vpop.f32.mrb[81].mxu0  ;;  %v2209_v9 = vadd.f32 %v2208_v18, %v5904_v7  ;;  %v6380_v24 = vld [vmem:[#allocation38_spill] sm:$0xff]  ;;  %v6381_v18 = vld [vmem:[#allocation40_spill] sm:$0xff] }
 0x415   :  { %v2212_v15 = vpop.f32.mrb[82].mxu0  ;;  %v2211_v39 = vadd.f32 %v2210_v54, %v5909_v53  ;;  %v579_v40 = vadd.f32 %v6380_v24, %v5873_v22  ;;  %v583_v16 = vadd.f32 %v6381_v18, %v5873_v22 }
 0x416   :  { %v1753_v8 = vmax.f32 %v1737_v44, 0.0  ;;  %v1738_v55 = vadd.f32 %v1722_v26, %v573_v58  ;;  %v2213_v38 = vadd.f32 %v2212_v15, %v5904_v7  ;;  %v2214_v52 = vpop.f32.mrb[83].mxu0 }
 0x417   :  { %v2215_v37 = vadd.f32 %v2214_v52, %v5909_v53 }
 0x418   :  { %3353 = vst [vmem:[#allocation11 + $0x60] sm:$0xff] %v1753_v8  ;;  %v1754_v32 = vmax.f32 %v1738_v55, 0.0  ;;  %v2754_v25 = vpack.c.bf16 %v2213_v38, %v2209_v9 }
 0x419   :  { %v4224_v12 = vpop.eup %4223  ;;  %v2755_v46 = vpack.c.bf16 %v2215_v37, %v2211_v39 }
 0x41a   :  { %3354 = vst [vmem:[#allocation11 + $0x68] sm:$0xff] %v1754_v32  ;;  %v1723_v6 = vmul.f32 %v4224_v12, %v1668_v5 }
 0x41b   :  { %v4226_v50 = vpop.eup %4225  ;;  %v2218_v21 = vpop.f32.mrb[84].mxu0  ;;  %2770 = vmatprep.subr.bf16.mxu1 %v2755_v46 }
 0x41c   :  { %v1739_v58 = vadd.f32 %v1723_v6, %v579_v40  ;;  %v1724_v44 = vmul.f32 %v4226_v50, %v1672_v56  ;;  %v2220_v26 = vpop.f32.mrb[85].mxu0  ;;  %2771 = vmatpush1.bf16.msra.mxu1 %v2754_v25  ;;  %v2219_v55 = vadd.f32 %v2218_v21, %v5904_v7 }
 0x41d   :  { %v2222_v54 = vpop.f32.mrb[86].mxu0  ;;  %v2221_v5 = vadd.f32 %v2220_v26, %v5909_v53 }
 0x41e   :  { %v1755_v15 = vmax.f32 %v1739_v58, 0.0  ;;  %v1740_v8 = vadd.f32 %v1724_v44, %v583_v16  ;;  %v2223_v9 = vadd.f32 %v2222_v54, %v5904_v7  ;;  %v2224_v38 = vpop.f32.mrb[87].mxu0 }
 0x41f   :  { %v2225_v52 = vadd.f32 %v2224_v38, %v5909_v53 }
 0x420   :  { %3355 = vst [vmem:[#allocation11 + $0x70] sm:$0xff] %v1755_v15  ;;  %v1756_v39 = vmax.f32 %v1740_v8, 0.0  ;;  %v2756_v37 = vpack.c.bf16 %v2223_v9, %v2219_v55 }
 0x421   :  { %v2757_v22 = vpack.c.bf16 %v2225_v52, %v2221_v5 }
 0x422   :  { %3356 = vst [vmem:[#allocation11 + $0x78] sm:$0xff] %v1756_v39 }
 0x423   :  { %v2228_v56 = vpop.f32.mrb[88].mxu0  ;;  %2772 = vmatprep.subr.bf16.mxu1 %v2757_v22 }
 0x424   :  { %v2230_v32 = vpop.f32.mrb[89].mxu0  ;;  %2773 = vmatpush1.bf16.msra.mxu1 %v2756_v37  ;;  %v2229_v12 = vadd.f32 %v2228_v56, %v5904_v7 }
 0x425   :  { %v2232_v25 = vpop.f32.mrb[90].mxu0  ;;  %v2231_v40 = vadd.f32 %v2230_v32, %v5909_v53 }
 0x426   :  { %v2233_v46 = vadd.f32 %v2232_v25, %v5904_v7  ;;  %v2234_v24 = vpop.f32.mrb[91].mxu0 }
 0x427   :  { %v2235_v6 = vadd.f32 %v2234_v24, %v5909_v53 }
 0x428   :  { %v2758_v50 = vpack.c.bf16 %v2233_v46, %v2229_v12 }
 0x429   :  { %v2759_v21 = vpack.c.bf16 %v2235_v6, %v2231_v40 }
 0x42b   :  { %v2238_v18 = vpop.f32.mrb[92].mxu0  ;;  %2774 = vmatprep.subr.bf16.mxu1 %v2759_v21 }
 0x42c   :  { %v2240_v16 = vpop.f32.mrb[93].mxu0  ;;  %2775 = vmatpush1.bf16.msra.mxu1 %v2758_v50  ;;  %v2239_v44 = vadd.f32 %v2238_v18, %v5904_v7 }
 0x42d   :  { %v2242_v58 = vpop.f32.mrb[94].mxu0  ;;  %v2241_v15 = vadd.f32 %v2240_v16, %v5909_v53 }
 0x42e   :  { %v2243_v26 = vadd.f32 %v2242_v58, %v5904_v7  ;;  %v2244_v54 = vpop.f32.mrb[95].mxu0 }
 0x42f   :  { %v2245_v8 = vadd.f32 %v2244_v54, %v5909_v53 }
 0x430   :  { %v2760_v55 = vpack.c.bf16 %v2243_v26, %v2239_v44 }
 0x431   :  { %v2761_v9 = vpack.c.bf16 %v2245_v8, %v2241_v15 }
 0x433   :  { %v2248_v38 = vpop.f32.mrb[96].mxu0  ;;  %2776 = vmatprep.subr.bf16.mxu1 %v2761_v9 }
 0x434   :  { %v2250_v5 = vpop.f32.mrb[97].mxu0  ;;  %2777 = vmatpush1.bf16.msra.mxu1 %v2760_v55  ;;  %v2249_v39 = vadd.f32 %v2248_v38, %v5904_v7 }
 0x435   :  { %v2252_v52 = vpop.f32.mrb[98].mxu0  ;;  %v2251_v56 = vadd.f32 %v2250_v5, %v5909_v53 }
 0x436   :  { %v2253_v37 = vadd.f32 %v2252_v52, %v5904_v7  ;;  %v2254_v22 = vpop.f32.mrb[99].mxu0 }
 0x437   :  { %v2255_v32 = vadd.f32 %v2254_v22, %v5909_v53 }
 0x438   :  { %v2762_v25 = vpack.c.bf16 %v2253_v37, %v2249_v39 }
 0x439   :  { %v2763_v12 = vpack.c.bf16 %v2255_v32, %v2251_v56 }
 0x43b   :  { %v2258_v46 = vpop.f32.mrb[100].mxu0  ;;  %2778 = vmatprep.subr.bf16.mxu1 %v2763_v12 }
 0x43c   :  { %v2260_v24 = vpop.f32.mrb[101].mxu0  ;;  %2779 = vmatpush1.bf16.msra.mxu1 %v2762_v25  ;;  %v2259_v6 = vadd.f32 %v2258_v46, %v5904_v7 }
 0x43d   :  { %v2262_v40 = vpop.f32.mrb[102].mxu0  ;;  %v2261_v18 = vadd.f32 %v2260_v24, %v5909_v53 }
 0x43e   :  { %v2263_v50 = vadd.f32 %v2262_v40, %v5904_v7  ;;  %v2264_v21 = vpop.f32.mrb[103].mxu0 }
 0x43f   :  { %v2265_v16 = vadd.f32 %v2264_v21, %v5909_v53 }
 0x440   :  { %v2764_v58 = vpack.c.bf16 %v2263_v50, %v2259_v6 }
 0x441   :  { %v2765_v44 = vpack.c.bf16 %v2265_v16, %v2261_v18 }
 0x443   :  { %v2268_v26 = vpop.f32.mrb[104].mxu0  ;;  %2780 = vmatprep.subr.bf16.mxu1 %v2765_v44 }
 0x444   :  { %v2270_v54 = vpop.f32.mrb[105].mxu0  ;;  %2781 = vmatpush1.bf16.msra.mxu1 %v2764_v58  ;;  %v2269_v8 = vadd.f32 %v2268_v26, %v5904_v7  ;;  %v6388_v26 = vld [vmem:[#allocation28_spill] sm:$0xff] }
 0x445   :  { %v2272_v15 = vpop.f32.mrb[106].mxu0  ;;  %v2271_v38 = vadd.f32 %v2270_v54, %v5909_v53  ;;  %v6390_v54 = vld [vmem:[#allocation41_spill] sm:$0xff] }
 0x446   :  { %v2273_v55 = vadd.f32 %v2272_v15, %v5904_v7  ;;  %v2274_v9 = vpop.f32.mrb[107].mxu0  ;;  %v6392_v15 = vld [vmem:[#allocation43_spill] sm:$0xff] }
 0x447   :  { %v2275_v5 = vadd.f32 %v2274_v9, %v5909_v53  ;;  %vm6393_vm13 = vnez %v6392_v15 }
 0x448   :  { %v2766_v52 = vpack.c.bf16 %v2273_v55, %v2269_v8  ;;  %v2533_v8 = vpop.permute.xlu1 %2532  ;;  %v2530_v55 = vpop.permute.xlu0 %2529 }
 0x449   :  { %v2767_v39 = vpack.c.bf16 %v2275_v5, %v2271_v38  ;;  %vm2549_vm15 = vcmp.eq.s32.totalorder %v5054_v57, %v2533_v8  ;;  %vm2548_vm7 = vcmp.eq.s32.totalorder %v5054_v57, %v2530_v55 }
 0x44a   :  { %vm3721_vm4 = vmpackc.low %vm2549_vm15, %vm2548_vm7 }
 0x44b   :  { %v2278_v37 = vpop.f32.mrb[108].mxu0  ;;  %2782 = vmatprep.subr.bf16.mxu1 %v2767_v39 }
 0x44c   :  { %v2280_v22 = vpop.f32.mrb[109].mxu0  ;;  %2783 = vmatpush1.bf16.msra.mxu1 %v2766_v52  ;;  %v2279_v32 = vadd.f32 %v2278_v37, %v5904_v7 }
 0x44d   :  { %v2282_v56 = vpop.f32.mrb[110].mxu0  ;;  %v2281_v46 = vadd.f32 %v2280_v22, %v5909_v53 }
 0x44e   :  { %v2283_v25 = vadd.f32 %v2282_v56, %v5904_v7  ;;  %v2284_v12 = vpop.f32.mrb[111].mxu0  ;;  %v6384_v7 = vld [vmem:[#allocation22_spill] sm:$0xff] }
 0x44f   :  { %v2285_v24 = vadd.f32 %v2284_v12, %v5909_v53  ;;  %vm6385_vm12 = vnez %v6384_v7  ;;  %v6386_v53 = vld [vmem:[#allocation23_spill] sm:$0xff] }
 0x450   :  { %v2768_v40 = vpack.c.bf16 %v2283_v25, %v2279_v32  ;;  %vm6387_vm9 = vnez %v6386_v53 }
 0x451   :  { %v2769_v6 = vpack.c.bf16 %v2285_v24, %v2281_v46 }
 0x453   :  { %2784 = vmatprep.subr.bf16.mxu1 %v2769_v6 }
 0x454   :  { %2785 = vmatpush1.bf16.msra.mxu1 %v2768_v40  ;;  %v3917_v18 = vpop.f32.mrb[112].mxu1 }
 0x455   :  { %v2423_v16 = vpop.f32.mrb[113].mxu1 }
 0x456   :  { %v5965_v58 = vpop.f32.mrb[114].mxu1  ;;  %v2424_v29 = vadd.f32 %v6029_v36, %v2423_v16  ;;  %v2432_v16 = vadd.f32 %v3917_v18, %v6029_v36 }
 0x457   :  { %3708 = vmatmul.mubr.msk.bf16.vlgmr.msra.gmra.mrb[128].mxu1 %vm5135_vm14, %v6342_v42  ;;  %v2426_v44 = vpop.f32.mrb[115].mxu1  ;;  %vm6389_vm14 = vnez %v6388_v26 }
 0x458   :  { %2812 = vmatprep.mubr.bf16.mxu1 %v6343_v34  ;;  %v2427_v45 = vadd.f32 %v6029_v36, %v2426_v44 }
 0x45f   :  { %3710 = vmatmul.mubr.msk.bf16.gmra.mrb[132].mxu1 %vm5141_vm2, %v6342_v42  ;;  %vm6391_vm2 = vnez %v6390_v54 }
 0x460   :  { %2822 = vmatprep.mubr.bf16.mxu1 %v6343_v34 }
 0x467   :  { %3712 = vmatmul.mubr.msk.bf16.gmra.mrb[136].mxu1 %vm6385_vm12, %v6342_v42 }
 0x468   :  { %2832 = vmatprep.mubr.bf16.mxu1 %v6343_v34 }
 0x46f   :  { %3714 = vmatmul.mubr.msk.bf16.gmra.mrb[140].mxu1 %vm6387_vm9, %v6342_v42 }
 0x470   :  { %2842 = vmatprep.mubr.bf16.mxu1 %v6343_v34 }
 0x477   :  { %3716 = vmatmul.mubr.msk.bf16.gmra.mrb[144].mxu1 %vm6389_vm14, %v6342_v42 }
 0x478   :  { %2852 = vmatprep.mubr.bf16.mxu1 %v6343_v34 }
 0x479   :  { %v5982_v9 = vpop.f32.mrb[116].mxu1 }
 0x47a   :  { %v5984_v38 = vpop.f32.mrb[117].mxu1 }
 0x47b   :  { %v5986_v5 = vpop.f32.mrb[118].mxu1 }
 0x47c   :  { %v5988_v52 = vpop.f32.mrb[119].mxu1 }
 0x47f   :  { %3718 = vmatmul.mubr.msk.bf16.gmra.mrb[148].mxu1 %vm6391_vm2, %v6342_v42 }
 0x480   :  { %2862 = vmatprep.mubr.bf16.mxu1 %v6343_v34 }
 0x487   :  { %3720 = vmatmul.mubr.msk.bf16.gmra.mrb[152].mxu1 %vm6393_vm13, %v6342_v42 }
 0x488   :  { %2872 = vmatprep.mubr.bf16.mxu1 %v6343_v34 }
 0x48f   :  { %3722 = vmatmul.mubr.msk.bf16.gmra.mrb[156].mxu1 %vm3721_vm4, %v6342_v42 }
 0x490   :  { %v5990_v56 = vpop.f32.mrb[120].mxu1 }
 0x491   :  { %v5992_v25 = vpop.f32.mrb[121].mxu1 }
 0x492   :  { %v5994_v57 = vpop.f32.mrb[122].mxu1 }
 0x493   :  { %v5996_v12 = vpop.f32.mrb[123].mxu1 }
 0x496   :  { %v3949_v39 = vpop.f32.mrb[112].mxu0 }
 0x497   :  { %v2925_v37 = vpop.f32.mrb[113].mxu0 }
 0x498   :  { %v3950_v22 = vpop.f32.mrb[114].mxu0  ;;  %v6002_v6 = vpop.f32.mrb[124].mxu1 }
 0x499   :  { %v2928_v32 = vpop.f32.mrb[115].mxu0  ;;  %v6004_v21 = vpop.f32.mrb[125].mxu1 }
 0x49a   :  { %v6006_v7 = vpop.f32.mrb[126].mxu1 }
 0x49b   :  { %v6008_v53 = vpop.f32.mrb[127].mxu1 }
 0x49e   :  { %v5998_v46 = vpop.f32.mrb[116].mxu0 }
 0x49f   :  { %v2941_v24 = vpop.f32.mrb[117].mxu0 }
 0x4a0   :  { %v6000_v40 = vpop.f32.mrb[118].mxu0 }
 0x4a1   :  { %v2944_v50 = vpop.f32.mrb[119].mxu0 }
 0x4a6   :  { %v6010_v26 = vpop.f32.mrb[120].mxu0 }
 0x4a7   :  { %v6012_v54 = vpop.f32.mrb[121].mxu0 }
 0x4a8   :  { %v6014_v15 = vpop.f32.mrb[122].mxu0 }
 0x4a9   :  { %v6016_v8 = vpop.f32.mrb[123].mxu0 }
 0x4ae   :  { %v6018_v55 = vpop.f32.mrb[124].mxu0 }
 0x4af   :  { %v6020_v49 = vpop.f32.mrb[125].mxu0 }
 0x4b0   :  { %v6022_v51 = vpop.f32.mrb[126].mxu0 }
 0x4b1   :  { %v6024_v31 = vpop.f32.mrb[127].mxu0 }
 0x52a   :  { %v2804_v43 = vpop.f32.mrb[128].mxu1 }
 0x52b   :  { %v2926_v62 = vadd.f32 %v2925_v37, %v2804_v43  ;;  %v6032_v59 = vpop.f32.mrb[129].mxu1 }
 0x52c   :  { %v2808_v23 = vpop.f32.mrb[130].mxu1 }
 0x52d   :  { %v2988_v35 = vadd.f32 %v2926_v62, %v2424_v29  ;;  %v2929_v30 = vadd.f32 %v2928_v32, %v2808_v23  ;;  %v6035_v11 = vpop.f32.mrb[131].mxu1  ;;  %v2435_v23 = vadd.f32 %v5965_v58, %v6029_v36 }
 0x52f   :  { %v3739_v10 = vmul.f32 -1.442695, %v2988_v35  ;;  %v3325_v14 = vmax.f32 %v2988_v35, 0.0  ;;  %v2989_v4 = vadd.f32 %v2929_v30, %v2427_v45 }
 0x531   :  { %4227 = vpow2.f32 %v3739_v10  ;;  %3373 = vst [vmem:[#allocation14] sm:$0xff] %v3325_v14  ;;  %v3740_v41 = vmul.f32 -1.442695, %v2989_v4  ;;  %v3326_v60 = vmax.f32 %v2989_v4, 0.0 }
 0x532   :  { %v2814_v20 = vpop.f32.mrb[132].mxu1 }
 0x533   :  { %4229 = vpow2.f32 %v3740_v41  ;;  %3374 = vst [vmem:[#allocation14 + $0x8] sm:$0xff] %v3326_v60  ;;  %v2934_v43 = vadd.f32 %v3949_v39, %v2814_v20  ;;  %v6038_v37 = vpop.f32.mrb[133].mxu1  ;;  %v2440_v20 = vadd.f32 %v6029_v36, %v5984_v38 }
 0x534   :  { %v2818_v44 = vpop.f32.mrb[134].mxu1 }
 0x535   :  { %v2990_v62 = vadd.f32 %v2934_v43, %v2432_v16  ;;  %v2937_v29 = vadd.f32 %v3950_v22, %v2818_v44  ;;  %v6042_v35 = vpop.f32.mrb[135].mxu1  ;;  %v2443_v16 = vadd.f32 %v6029_v36, %v5988_v52 }
 0x537   :  { %v3741_v10 = vmul.f32 -1.442695, %v2990_v62  ;;  %v3327_v14 = vmax.f32 %v2990_v62, 0.0  ;;  %v2991_v30 = vadd.f32 %v2937_v29, %v2435_v23 }
 0x539   :  { %4231 = vpow2.f32 %v3741_v10  ;;  %3375 = vst [vmem:[#allocation14 + $0x10] sm:$0xff] %v3327_v14  ;;  %v3742_v4 = vmul.f32 -1.442695, %v2991_v30  ;;  %v3328_v45 = vmax.f32 %v2991_v30, 0.0 }
 0x53a   :  { %v2824_v41 = vpop.f32.mrb[136].mxu1 }
 0x53b   :  { %v4228_v60 = vpop.eup %4227  ;;  %4233 = vpow2.f32 %v3742_v4  ;;  %3376 = vst [vmem:[#allocation14 + $0x18] sm:$0xff] %v3328_v45  ;;  %v2942_v18 = vadd.f32 %v2941_v24, %v2824_v41  ;;  %v6046_v58 = vpop.f32.mrb[137].mxu1  ;;  %v2448_v45 = vadd.f32 %v5982_v9, %v6029_v36 }
 0x53c   :  { %v3052_v39 = vadd.f32 1.0, %v4228_v60  ;;  %v2828_v22 = vpop.f32.mrb[138].mxu1 }
 0x53d   :  { %v4230_v32 = vpop.eup %4229  ;;  %v2992_v43 = vadd.f32 %v2942_v18, %v2440_v20  ;;  %v2945_v44 = vadd.f32 %v2944_v50, %v2828_v22  ;;  %v6050_v23 = vpop.f32.mrb[139].mxu1  ;;  %v2451_v18 = vadd.f32 %v5986_v5, %v6029_v36  ;;  %v2456_v5 = vadd.f32 %v6029_v36, %v5992_v25 }
 0x53e   :  { %4235 = vrcp.f32 %v3052_v39  ;;  %v3053_v62 = vadd.f32 1.0, %v4230_v32 }
 0x53f   :  { %v3743_v29 = vmul.f32 -1.442695, %v2992_v43  ;;  %v3329_v10 = vmax.f32 %v2992_v43, 0.0  ;;  %v2993_v38 = vadd.f32 %v2945_v44, %v2443_v16 }
 0x540   :  { %4237 = vrcp.f32 %v3053_v62 }
 0x541   :  { %4239 = vpow2.f32 %v3743_v29  ;;  %3377 = vst [vmem:[#allocation14 + $0x20] sm:$0xff] %v3329_v10  ;;  %v3744_v24 = vmul.f32 -1.442695, %v2993_v38  ;;  %v3330_v14 = vmax.f32 %v2993_v38, 0.0 }
 0x542   :  { %v2834_v30 = vpop.f32.mrb[140].mxu1 }
 0x543   :  { %v4232_v4 = vpop.eup %4231  ;;  %4241 = vpow2.f32 %v3744_v24  ;;  %3378 = vst [vmem:[#allocation14 + $0x28] sm:$0xff] %v3330_v14  ;;  %v2950_v52 = vadd.f32 %v5998_v46, %v2834_v30  ;;  %v6055_v50 = vpop.f32.mrb[141].mxu1 }
 0x544   :  { %v3054_v41 = vadd.f32 1.0, %v4232_v4  ;;  %v2838_v60 = vpop.f32.mrb[142].mxu1 }
 0x545   :  { %v4234_v20 = vpop.eup %4233  ;;  %v2994_v39 = vadd.f32 %v2950_v52, %v2448_v45  ;;  %v2953_v22 = vadd.f32 %v6000_v40, %v2838_v60  ;;  %v6060_v32 = vpop.f32.mrb[143].mxu1  ;;  %v2459_v60 = vadd.f32 %v6029_v36, %v5996_v12 }
 0x546   :  { %4243 = vrcp.f32 %v3054_v41  ;;  %v3055_v16 = vadd.f32 1.0, %v4234_v20 }
 0x547   :  { %v3745_v9 = vmul.f32 -1.442695, %v2994_v39  ;;  %v3331_v43 = vmax.f32 %v2994_v39, 0.0  ;;  %v2995_v44 = vadd.f32 %v2953_v22, %v2451_v18 }
 0x548   :  { %v4236_v62 = vpop.eup %4235  ;;  %4245 = vrcp.f32 %v3055_v16 }
 0x549   :  { %v3100_v46 = vmul.f32 %v4236_v62, %v6032_v59  ;;  %4247 = vpow2.f32 %v3745_v9  ;;  %3379 = vst [vmem:[#allocation14 + $0x30] sm:$0xff] %v3331_v43  ;;  %v3746_v29 = vmul.f32 -1.442695, %v2995_v44  ;;  %v3332_v10 = vmax.f32 %v2995_v44, 0.0 }
 0x54a   :  { %v4238_v38 = vpop.eup %4237  ;;  %v2844_v40 = vpop.f32.mrb[144].mxu1 }
 0x54b   :  { %v4240_v24 = vpop.eup %4239  ;;  %v3101_v14 = vmul.f32 %v4238_v38, %v6035_v11  ;;  %4249 = vpow2.f32 %v3746_v29  ;;  %3380 = vst [vmem:[#allocation14 + $0x38] sm:$0xff] %v3332_v10  ;;  %v2958_v30 = vadd.f32 %v6012_v54, %v2844_v40  ;;  %v6067_v4 = vpop.f32.mrb[145].mxu1  ;;  %v3117_v45 = vpack.c.bf16 %v4238_v38, %v4236_v62 }
 0x54c   :  { %v3056_v59 = vadd.f32 1.0, %v4240_v24  ;;  %v2848_v52 = vpop.f32.mrb[146].mxu1 }
 0x54d   :  { %v4242_v41 = vpop.eup %4241  ;;  %v3116_v20 = vpack.c.bf16 %v3101_v14, %v3100_v46  ;;  %v2996_v18 = vadd.f32 %v2958_v30, %v2456_v5  ;;  %v2961_v25 = vadd.f32 %v6016_v8, %v2848_v52  ;;  %v6072_v39 = vpop.f32.mrb[147].mxu1  ;;  %3132 = vmatprep.subr.bf16.mxu0 %v3117_v45  ;;  %v2464_v8 = vadd.f32 %v5990_v56, %v6029_v36 }
 0x54e   :  { %4251 = vrcp.f32 %v3056_v59  ;;  %v3057_v11 = vadd.f32 1.0, %v4242_v41  ;;  %v2467_v30 = vadd.f32 %v5994_v57, %v6029_v36 }
 0x54f   :  { %v3747_v22 = vmul.f32 -1.442695, %v2996_v18  ;;  %v3333_v54 = vmax.f32 %v2996_v18, 0.0  ;;  %v2997_v16 = vadd.f32 %v2961_v25, %v2459_v60  ;;  %3133 = vmatpush1.bf16.msra.mxu0 %v3116_v20 }
 0x550   :  { %v4244_v9 = vpop.eup %4243  ;;  %4253 = vrcp.f32 %v3057_v11 }
 0x551   :  { %v3102_v43 = vmul.f32 %v4244_v9, %v6038_v37  ;;  %4255 = vpow2.f32 %v3747_v22  ;;  %3381 = vst [vmem:[#allocation14 + $0x40] sm:$0xff] %v3333_v54  ;;  %v3748_v12 = vmul.f32 -1.442695, %v2997_v16  ;;  %v3334_v44 = vmax.f32 %v2997_v16, 0.0 }
 0x552   :  { %v4246_v62 = vpop.eup %4245  ;;  %v2854_v46 = vpop.f32.mrb[148].mxu1 }
 0x553   :  { %v4248_v29 = vpop.eup %4247  ;;  %v3103_v10 = vmul.f32 %v4246_v62, %v6042_v35  ;;  %4257 = vpow2.f32 %v3748_v12  ;;  %3382 = vst [vmem:[#allocation14 + $0x48] sm:$0xff] %v3334_v44  ;;  %v2966_v38 = vadd.f32 %v6010_v26, %v2854_v46  ;;  %v6079_v5 = vpop.f32.mrb[149].mxu1  ;;  %v3119_v40 = vpack.c.bf16 %v4246_v62, %v4244_v9 }
 0x554   :  { %v3058_v37 = vadd.f32 1.0, %v4248_v29  ;;  %v2858_v24 = vpop.f32.mrb[150].mxu1 }
 0x555   :  { %v4250_v14 = vpop.eup %4249  ;;  %v3118_v45 = vpack.c.bf16 %v3103_v10, %v3102_v43  ;;  %v2998_v59 = vadd.f32 %v2966_v38, %v2464_v8  ;;  %v2969_v56 = vadd.f32 %v6014_v15, %v2858_v24  ;;  %v6084_v52 = vpop.f32.mrb[151].mxu1  ;;  %3134 = vmatprep.subr.bf16.mxu0 %v3119_v40  ;;  %v2472_v15 = vadd.f32 %v6029_v36, %v6004_v21 }
 0x556   :  { %4259 = vrcp.f32 %v3058_v37  ;;  %v3059_v35 = vadd.f32 1.0, %v4250_v14  ;;  %v2475_v8 = vadd.f32 %v6029_v36, %v6008_v53 }
 0x557   :  { %v3749_v41 = vmul.f32 -1.442695, %v2998_v59  ;;  %v3335_v26 = vmax.f32 %v2998_v59, 0.0  ;;  %v2999_v60 = vadd.f32 %v2969_v56, %v2467_v30  ;;  %3135 = vmatpush1.bf16.msra.mxu0 %v3118_v45 }
 0x558   :  { %v4252_v20 = vpop.eup %4251  ;;  %4261 = vrcp.f32 %v3059_v35 }
 0x559   :  { %v3104_v18 = vmul.f32 %v4252_v20, %v6046_v58  ;;  %4263 = vpow2.f32 %v3749_v41  ;;  %3383 = vst [vmem:[#allocation14 + $0x50] sm:$0xff] %v3335_v26  ;;  %v3750_v57 = vmul.f32 -1.442695, %v2999_v60  ;;  %v3336_v25 = vmax.f32 %v2999_v60, 0.0 }
 0x55a   :  { %v4254_v11 = vpop.eup %4253  ;;  %v2864_v22 = vpop.f32.mrb[152].mxu1 }
 0x55b   :  { %v4256_v54 = vpop.eup %4255  ;;  %v3105_v16 = vmul.f32 %v4254_v11, %v6050_v23  ;;  %4265 = vpow2.f32 %v3750_v57  ;;  %3384 = vst [vmem:[#allocation14 + $0x58] sm:$0xff] %v3336_v25  ;;  %v2974_v9 = vadd.f32 %v6020_v49, %v2864_v22  ;;  %v6091_v43 = vpop.f32.mrb[153].mxu1  ;;  %v3121_v12 = vpack.c.bf16 %v4254_v11, %v4252_v20 }
 0x55c   :  { %v3060_v58 = vadd.f32 1.0, %v4256_v54  ;;  %v2868_v44 = vpop.f32.mrb[154].mxu1 }
 0x55d   :  { %v4258_v62 = vpop.eup %4257  ;;  %v3120_v46 = vpack.c.bf16 %v3105_v16, %v3104_v18  ;;  %v3000_v29 = vadd.f32 %v2974_v9, %v2472_v15  ;;  %v2977_v21 = vadd.f32 %v6024_v31, %v2868_v44  ;;  %v6096_v10 = vpop.f32.mrb[155].mxu1  ;;  %3136 = vmatprep.subr.bf16.mxu0 %v3121_v12  ;;  %v2480_v31 = vadd.f32 %v6002_v6, %v6029_v36 }
 0x55e   :  { %4267 = vrcp.f32 %v3060_v58  ;;  %v3061_v23 = vadd.f32 1.0, %v4258_v62  ;;  %v2483_v18 = vadd.f32 %v6006_v7, %v6029_v36 }
 0x55f   :  { %v3751_v38 = vmul.f32 -1.442695, %v3000_v29  ;;  %v3337_v49 = vmax.f32 %v3000_v29, 0.0  ;;  %v3001_v40 = vadd.f32 %v2977_v21, %v2475_v8  ;;  %3137 = vmatpush1.bf16.msra.mxu0 %v3120_v46 }
 0x560   :  { %v4260_v37 = vpop.eup %4259  ;;  %4269 = vrcp.f32 %v3061_v23 }
 0x561   :  { %v3106_v24 = vmul.f32 %v4260_v37, %v6055_v50  ;;  %4271 = vpow2.f32 %v3751_v38  ;;  %3385 = vst [vmem:[#allocation14 + $0x60] sm:$0xff] %v3337_v49  ;;  %v3752_v53 = vmul.f32 -1.442695, %v3001_v40  ;;  %v3338_v14 = vmax.f32 %v3001_v40, 0.0 }
 0x562   :  { %v4262_v30 = vpop.eup %4261  ;;  %v2874_v45 = vpop.f32.mrb[156].mxu1 }
 0x563   :  { %v4264_v59 = vpop.eup %4263  ;;  %v3107_v56 = vmul.f32 %v4262_v30, %v6060_v32  ;;  %4273 = vpow2.f32 %v3752_v53  ;;  %3386 = vst [vmem:[#allocation14 + $0x68] sm:$0xff] %v3338_v14  ;;  %v2982_v35 = vadd.f32 %v6018_v55, %v2874_v45  ;;  %v2876_v41 = vpop.f32.mrb[157].mxu1  ;;  %v3123_v26 = vpack.c.bf16 %v4262_v30, %v4260_v37 }
 0x564   :  { %v3062_v60 = vadd.f32 1.0, %v4264_v59  ;;  %v2878_v50 = vpop.f32.mrb[158].mxu1 }
 0x565   :  { %v4266_v20 = vpop.eup %4265  ;;  %v3122_v57 = vpack.c.bf16 %v3107_v56, %v3106_v24  ;;  %v3002_v25 = vadd.f32 %v2982_v35, %v2480_v31  ;;  %v2985_v6 = vadd.f32 %v6022_v51, %v2878_v50  ;;  %v2880_v11 = vpop.f32.mrb[159].mxu1  ;;  %3138 = vmatprep.subr.bf16.mxu0 %v3123_v26  ;;  %v3690_v56 = vld [vmem:[%s6245_s8] ss:$0 sm:$0xff]  ;;  %s4520_s8 = smov [#allocation11]  }
 0x566   :  { %4275 = vrcp.f32 %v3062_v60  ;;  %v3063_v32 = vadd.f32 1.0, %v4266_v20  ;;  %vm2698_vm5 = vcmp.eq.s32.totalorder %v5152_v48, %v3690_v56  ;;  %vm2699_vm8 = vcmp.eq.s32.totalorder %v5610_v47, %v3690_v56  ;;  %v6394_v47 = vld [vmem:[#allocation44_spill] sm:$0xff]  ;;  %s3394_s3 = sshll.u32 %s4520_s8, 4  ;;  %s3395_s3 = int_to_ptr.vmem [resolvable:$true] %s3394_s3 }
 0x567   :  { %v3753_v15 = vmul.f32 -1.442695, %v3002_v25  ;;  %v3339_v22 = vmax.f32 %v3002_v25, 0.0  ;;  %v3003_v54 = vadd.f32 %v2985_v6, %v2483_v18  ;;  %3139 = vmatpush1.bf16.msra.mxu0 %v3122_v57  ;;  %vm3755_vm11 = vmpackc.low %vm2699_vm8, %vm2698_vm5  ;;  %vm2700_vm1 = vcmp.eq.s32.totalorder %v5629_v17, %v3690_v56  ;;  %v6395_v17 = vld [vmem:[#allocation45_spill] sm:$0xff]  ;;  %s4435_s4 = scalar_lea.vmem %s3395_s3, 2048  ;;  %p4440_p13 = scmp.lt.s32.totalorder %s3395_s3, %s3395_s3 }
 0x568   :  { %v4268_v55 = vpop.eup %4267  ;;  %4277 = vrcp.f32 %v3063_v32  ;;  %vm2701_vm6 = vcmp.eq.s32.totalorder %v5632_v13, %v3690_v56  ;;  %vm2702_vm0 = vcmp.eq.s32.totalorder %v5653_v63, %v3690_v56  ;;  %vm2703_vm3 = vcmp.eq.s32.totalorder %v5656_v1, %v3690_v56  ;;  %p4436_p12 = scmp.ne.s32.totalorder %s3395_s3, %s4435_s4  ;;  %p4441_p0 = scmp.lt.s32.totalorder %s4435_s4, %s4435_s4 }
 0x569   :  { %v3108_v16 = vmul.f32 %v4268_v55, %v6067_v4  ;;  %4279 = vpow2.f32 %v3753_v15  ;;  %3387 = vst [vmem:[#allocation14 + $0x70] sm:$0xff] %v3339_v22  ;;  %v3754_v9 = vmul.f32 -1.442695, %v3003_v54  ;;  %v3340_v36 = vmax.f32 %v3003_v54, 0.0  ;;  %vm3757_vm10 = vmpackc.low %vm2701_vm6, %vm2700_vm1 }
 0x56a   :  { %v4270_v7 = vpop.eup %4269  ;;  %vm3759_vm12 = vmpackc.low %vm2703_vm3, %vm2702_vm0  ;;  %vm2704_vm9 = vcmp.eq.s32.totalorder %v5677_v27, %v3690_v56  ;;  %vm2705_vm14 = vcmp.eq.s32.totalorder %v5680_v3, %v3690_v56  ;;  %vm2706_vm13 = vcmp.eq.s32.totalorder %v5701_v2, %v3690_v56  ;;  %vm2707_vm15 = vcmp.eq.s32.totalorder %v5704_v0, %v3690_v56  ;;  %p4442_p1 = por %p4441_p0, %p4440_p13 }
 0x56b   :  { %v4272_v12 = vpop.eup %4271  ;;  %v3109_v51 = vmul.f32 %v4270_v7, %v6072_v39  ;;  %4281 = vpow2.f32 %v3754_v9  ;;  %3388 = vst [vmem:[#allocation14 + $0x78] sm:$0xff] %v3340_v36  ;;  %v3125_v58 = vpack.c.bf16 %v4270_v7, %v4268_v55  ;;  %vm3761_vm2 = vmpackc.low %vm2705_vm14, %vm2704_vm9  ;;  %vm2708_vm4 = vcmp.eq.s32.totalorder %v5719_v33, %v3690_v56 }
 0x56c   :  { %v3064_v44 = vadd.f32 1.0, %v4272_v12  ;;  %vm3763_vm7 = vmpackc.low %vm2707_vm15, %vm2706_vm13  ;;  %vm2709_vm5 = vcmp.eq.s32.totalorder %v5722_v28, %v3690_v56  ;;  %vm2711_vm1 = vcmp.eq.s32.totalorder %v5734_v61, %v3690_v56  ;;  %vm2713_vm0 = vcmp.eq.s32.totalorder %v6395_v17, %v3690_v56  ;;  %p4443_p2 = pnand %p4442_p1, %p4436_p12 }
 0x56d   :  { %v4274_v62 = vpop.eup %4273  ;;  %v3124_v8 = vpack.c.bf16 %v3109_v51, %v3108_v16  ;;  %3140 = vmatprep.subr.bf16.mxu0 %v3125_v58  ;;  %vm3765_vm8 = vmpackc.low %vm2709_vm5, %vm2708_vm4 }
 0x56e   :  { %4283 = vrcp.f32 %v3064_v44  ;;  %v3065_v46 = vadd.f32 1.0, %v4274_v62 }
 0x56f   :  { %3141 = vmatpush1.bf16.msra.mxu0 %v3124_v8 }
 0x570   :  { %v4276_v29 = vpop.eup %4275  ;;  %4285 = vrcp.f32 %v3065_v46 }
 0x571   :  { %v3110_v4 = vmul.f32 %v4276_v29, %v6079_v5 }
 0x572   :  { %v4278_v21 = vpop.eup %4277 }
 0x573   :  { %v4280_v23 = vpop.eup %4279  ;;  %v3111_v38 = vmul.f32 %v4278_v21, %v6084_v52  ;;  %v3127_v49 = vpack.c.bf16 %v4278_v21, %v4276_v29 }
 0x574   :  { %v3066_v39 = vadd.f32 1.0, %v4280_v23 }
 0x575   :  { %v4282_v40 = vpop.eup %4281  ;;  %v3126_v37 = vpack.c.bf16 %v3111_v38, %v3110_v4  ;;  %3142 = vmatprep.subr.bf16.mxu0 %v3127_v49 }
 0x576   :  { %4287 = vrcp.f32 %v3066_v39  ;;  %v3067_v24 = vadd.f32 1.0, %v4282_v40 }
 0x577   :  { %3143 = vmatpush1.bf16.msra.mxu0 %v3126_v37 }
 0x578   :  { %v4284_v53 = vpop.eup %4283  ;;  %4289 = vrcp.f32 %v3067_v24 }
 0x579   :  { %v3112_v14 = vmul.f32 %v4284_v53, %v6091_v43 }
 0x57a   :  { %v4286_v30 = vpop.eup %4285 }
 0x57b   :  { %v3113_v31 = vmul.f32 %v4286_v30, %v6096_v10  ;;  %v3129_v5 = vpack.c.bf16 %v4286_v30, %v4284_v53 }
 0x57d   :  { %v3128_v45 = vpack.c.bf16 %v3113_v31, %v3112_v14  ;;  %3144 = vmatprep.subr.bf16.mxu0 %v3129_v5 }
 0x57f   :  { %3145 = vmatpush1.bf16.msra.mxu0 %v3128_v45 }
 0x580   :  { %v4288_v52 = vpop.eup %4287 }
 0x581   :  { %v3114_v59 = vmul.f32 %v4288_v52, %v2876_v41 }
 0x582   :  { %v4290_v35 = vpop.eup %4289 }
 0x583   :  { %v3115_v26 = vmul.f32 %v4290_v35, %v2880_v11  ;;  %v3131_v60 = vpack.c.bf16 %v4290_v35, %v4288_v52 }
 0x585   :  { %v3130_v43 = vpack.c.bf16 %v3115_v26, %v3114_v59  ;;  %3146 = vmatprep.subr.bf16.mxu0 %v3131_v60 }
 0x587   :  { %3147 = vmatpush1.bf16.msra.mxu0 %v3130_v43 }
 0x58a   :  { %3756 = vmatmul.mubr.msk.bf16.vlgmr.msra.gmra.mrb[128].mxu0 %vm3755_vm11, %v6342_v42  ;;  %vm2710_vm11 = vcmp.eq.s32.totalorder %v5731_v19, %v3690_v56 }
 0x58b   :  { %3174 = vmatprep.mubr.bf16.mxu0 %v6343_v34  ;;  %vm3767_vm6 = vmpackc.low %vm2711_vm1, %vm2710_vm11 }
 0x592   :  { %3758 = vmatmul.mubr.msk.bf16.gmra.mrb[132].mxu0 %vm3757_vm10, %v6342_v42  ;;  %vm2712_vm10 = vcmp.eq.s32.totalorder %v6394_v47, %v3690_v56 }
 0x593   :  { %3184 = vmatprep.mubr.bf16.mxu0 %v6343_v34  ;;  %vm3769_vm3 = vmpackc.low %vm2713_vm0, %vm2712_vm10 }
 0x59a   :  { %3760 = vmatmul.mubr.msk.bf16.gmra.mrb[136].mxu0 %vm3759_vm12, %v6342_v42 }
 0x59b   :  { %3194 = vmatprep.mubr.bf16.mxu0 %v6343_v34 }
 0x5a2   :  { %3762 = vmatmul.mubr.msk.bf16.gmra.mrb[140].mxu0 %vm3761_vm2, %v6342_v42 }
 0x5a3   :  { %3204 = vmatprep.mubr.bf16.mxu0 %v6343_v34 }
 0x5aa   :  { %3764 = vmatmul.mubr.msk.bf16.gmra.mrb[144].mxu0 %vm3763_vm7, %v6342_v42 }
 0x5ab   :  { %3214 = vmatprep.mubr.bf16.mxu0 %v6343_v34 }
 0x5b2   :  { %3766 = vmatmul.mubr.msk.bf16.gmra.mrb[148].mxu0 %vm3765_vm8, %v6342_v42 }
 0x5b3   :  { %3224 = vmatprep.mubr.bf16.mxu0 %v6343_v34 }
 0x5ba   :  { %3768 = vmatmul.mubr.msk.bf16.gmra.mrb[152].mxu0 %vm3767_vm6, %v6342_v42 }
 0x5bb   :  { %3234 = vmatprep.mubr.bf16.mxu0 %v6343_v34 }
 0x5c2   :  { %3770 = vmatmul.mubr.msk.bf16.gmra.mrb[156].mxu0 %vm3769_vm3, %v6342_v42 }
 0x5c3   :  { %4446 = shalt.err (!%p4443_p2)
}
 0x5c4   :  { %s4447_s28 = scalar_lea.hbm %s6254_s17, 2048 }
 0x5c5   :  { %p4448_p3 = scmp.ne.s32.totalorder %s6254_s17, %s4447_s28  ;;  %p4451_p4 = scmp.lt.u32.totalorder %s4447_s28, %s6254_s17 }
 0x5c7   :  { %p4453_p5 = pnand %p4451_p4, %p4448_p3 }
 0x5c9   :  { %4456 = shalt.err (!%p4453_p5)
}
 0x5ca   :  { %s4521_s27 = smov 128   ;;  %s4522_s9 = smov 8   ;;  %v4324_v28 = vld [vmem:[%s6251_s14] sm:$0xf]  ;;  %v6396_v19 = vsub.s32 0, %v5152_v48  ;;  %v6397_v20 = vld [vmem:[#allocation46_spill] sm:$0xff] }
 0x5cb   :  { %3400 = dma.vmem_to_hbm [thread:$0]  %s3395_s3, 2048, %s6254_s17, [#allocation4], %s4521_s27, %s4521_s27, %s4522_s9   ;;  %v6398_v11 = vld [vmem:[#allocation47_spill] sm:$0xff]  ;;  %v6399_v58 = vld [vmem:[#allocation48_spill] sm:$0xff]  ;;  %v6400_v29 = vld [vmem:[#allocation49_spill] sm:$0xff] }
 0x5cc   :  { %v6166_v61 = vrot.slane %v4324_v28, %v6396_v19  ;;  %v6401_v31 = vld [vmem:[#allocation50_spill] sm:$0xff]  ;;  %v6402_v56 = vld [vmem:[#allocation51_spill] sm:$0xff]  ;;  %v6404_v19 = vld [vmem:[#allocation53_spill] sm:$0xff]  ;;  %s4523_s14 = smov [#allocation12]   ;;  %s4524_s2 = smov [#allocation14]  }
 0x5cd   :  { %s3406_s17 = sshll.u32 %s4523_s14, 4  ;;  %s3418_s5 = sshll.u32 %s4524_s2, 4  ;;  %s3407_s17 = int_to_ptr.vmem [resolvable:$true] %s3406_s17  ;;  %s6200_s5 = int_to_ptr.vmem [resolvable:$true] %s3418_s5 }
 0x5ce   :  { %v2096_v18 = vadd.f32 %v6397_v20, %v6166_v61  ;;  %v2100_v32 = vadd.f32 %v6398_v11, %v6166_v61  ;;  %v2106_v44 = vadd.f32 %v6399_v58, %v6166_v61  ;;  %v2110_v4 = vadd.f32 %v6400_v29, %v6166_v61  ;;  %s4457_s0 = scalar_lea.vmem %s3407_s17, 2048  ;;  %p4462_p7 = scmp.lt.s32.totalorder %s3407_s17, %s3407_s17 }
 0x5cf   :  { %v2116_v5 = vadd.f32 %v6401_v31, %v6166_v61  ;;  %v2120_v35 = vadd.f32 %v6402_v56, %v6166_v61  ;;  %p4458_p6 = scmp.ne.s32.totalorder %s3407_s17, %s4457_s0  ;;  %p4463_p8 = scmp.lt.s32.totalorder %s4457_s0, %s4457_s0 }
 0x5d1   :  { %p4464_p9 = por %p4463_p8, %p4462_p7 }
 0x5d3   :  { %p4465_p10 = pnand %p4464_p9, %p4458_p6 }
 0x65d   :  { %v3166_v42 = vpop.f32.mrb[128].mxu0 }
 0x65e   :  { %v3168_v34 = vpop.f32.mrb[129].mxu0 }
 0x65f   :  { %v3245_v13 = vadd.f32 1e-06, %v3168_v34  ;;  %v3170_v63 = vpop.f32.mrb[130].mxu0 }
 0x660   :  { %v3172_v1 = vpop.f32.mrb[131].mxu0 }
 0x661   :  { %4291 = vrcp.f32 %v3245_v13  ;;  %v3246_v27 = vadd.f32 1e-06, %v3172_v1 }
 0x663   :  { %4293 = vrcp.f32 %v3246_v27 }
 0x665   :  { %v3176_v3 = vpop.f32.mrb[132].mxu0 }
 0x666   :  { %v3178_v2 = vpop.f32.mrb[133].mxu0 }
 0x667   :  { %v3247_v0 = vadd.f32 1e-06, %v3178_v2  ;;  %v3180_v33 = vpop.f32.mrb[134].mxu0 }
 0x668   :  { %v3182_v10 = vpop.f32.mrb[135].mxu0 }
 0x669   :  { %4295 = vrcp.f32 %v3247_v0  ;;  %v3248_v41 = vadd.f32 1e-06, %v3182_v10  ;;  %v2130_v10 = vadd.f32 %v6404_v19, %v6166_v61 }
 0x66b   :  { %v4292_v50 = vpop.eup %4291  ;;  %4297 = vrcp.f32 %v3248_v41 }
 0x66c   :  { %v3277_v57 = vmul.f32 %v4292_v50, %v3166_v42 }
 0x66d   :  { %v4294_v25 = vpop.eup %4293  ;;  %v3186_v6 = vpop.f32.mrb[136].mxu0 }
 0x66e   :  { %v3293_v15 = vadd.f32 %v3277_v57, %v2096_v18  ;;  %v3278_v22 = vmul.f32 %v4294_v25, %v3170_v63  ;;  %v3188_v54 = vpop.f32.mrb[137].mxu0 }
 0x66f   :  { %v3249_v48 = vadd.f32 1e-06, %v3188_v54  ;;  %v3190_v55 = vpop.f32.mrb[138].mxu0  ;;  %v6405_v54 = vld [vmem:[#allocation54_spill] sm:$0xff] }
 0x670   :  { %v3309_v16 = vmax.f32 %v3293_v15, 0.0  ;;  %v3294_v9 = vadd.f32 %v3278_v22, %v2100_v32  ;;  %v3192_v36 = vpop.f32.mrb[139].mxu0 }
 0x671   :  { %4299 = vrcp.f32 %v3249_v48  ;;  %v3250_v7 = vadd.f32 1e-06, %v3192_v36  ;;  %v2136_v48 = vadd.f32 %v6405_v54, %v6166_v61  ;;  %v6406_v36 = vld [vmem:[#allocation55_spill] sm:$0xff] }
 0x672   :  { %3357 = vst [vmem:[#allocation12] sm:$0xff] %v3309_v16  ;;  %v3310_v12 = vmax.f32 %v3294_v9, 0.0 }
 0x673   :  { %v4296_v51 = vpop.eup %4295  ;;  %4301 = vrcp.f32 %v3250_v7  ;;  %v2140_v7 = vadd.f32 %v6406_v36, %v6166_v61 }
 0x674   :  { %3358 = vst [vmem:[#allocation12 + $0x8] sm:$0xff] %v3310_v12  ;;  %v3279_v62 = vmul.f32 %v4296_v51, %v3176_v3  ;;  %v6403_v3 = vld [vmem:[#allocation52_spill] sm:$0xff] }
 0x675   :  { %v4298_v8 = vpop.eup %4297  ;;  %v3196_v46 = vpop.f32.mrb[140].mxu0  ;;  %v2126_v2 = vadd.f32 %v6403_v3, %v6166_v61 }
 0x676   :  { %v3295_v21 = vadd.f32 %v3279_v62, %v2106_v44  ;;  %v3280_v23 = vmul.f32 %v4298_v8, %v3180_v33  ;;  %v3198_v38 = vpop.f32.mrb[141].mxu0 }
 0x677   :  { %v3251_v49 = vadd.f32 1e-06, %v3198_v38  ;;  %v3200_v39 = vpop.f32.mrb[142].mxu0  ;;  %v6407_v38 = vld [vmem:[#allocation56_spill] sm:$0xff] }
 0x678   :  { %v3311_v40 = vmax.f32 %v3295_v21, 0.0  ;;  %v3296_v37 = vadd.f32 %v3280_v23, %v2110_v4  ;;  %v3202_v24 = vpop.f32.mrb[143].mxu0 }
 0x679   :  { %4303 = vrcp.f32 %v3251_v49  ;;  %v3252_v53 = vadd.f32 1e-06, %v3202_v24  ;;  %v2146_v49 = vadd.f32 %v6407_v38, %v6166_v61  ;;  %v6408_v24 = vld [vmem:[#allocation57_spill] sm:$0xff] }
 0x67a   :  { %3359 = vst [vmem:[#allocation12 + $0x10] sm:$0xff] %v3311_v40  ;;  %v3312_v14 = vmax.f32 %v3296_v37, 0.0 }
 0x67b   :  { %v4300_v30 = vpop.eup %4299  ;;  %4305 = vrcp.f32 %v3252_v53  ;;  %v2150_v53 = vadd.f32 %v6408_v24, %v6166_v61 }
 0x67c   :  { %3360 = vst [vmem:[#allocation12 + $0x18] sm:$0xff] %v3312_v14  ;;  %v3281_v45 = vmul.f32 %v4300_v30, %v3186_v6 }
 0x67d   :  { %v4302_v52 = vpop.eup %4301  ;;  %v3206_v59 = vpop.f32.mrb[144].mxu0 }
 0x67e   :  { %v3297_v26 = vadd.f32 %v3281_v45, %v2116_v5  ;;  %v3282_v60 = vmul.f32 %v4302_v52, %v3190_v55  ;;  %v3208_v43 = vpop.f32.mrb[145].mxu0 }
 0x67f   :  { %v3253_v47 = vadd.f32 1e-06, %v3208_v43  ;;  %v3210_v17 = vpop.f32.mrb[146].mxu0  ;;  %v6409_v43 = vld [vmem:[#allocation58_spill] sm:$0xff] }
 0x680   :  { %v3313_v42 = vmax.f32 %v3297_v26, 0.0  ;;  %v3298_v34 = vadd.f32 %v3282_v60, %v2120_v35  ;;  %v3212_v13 = vpop.f32.mrb[147].mxu0 }
 0x681   :  { %4307 = vrcp.f32 %v3253_v47  ;;  %v3254_v63 = vadd.f32 1e-06, %v3212_v13  ;;  %v2156_v47 = vadd.f32 %v6409_v43, %v6166_v61 }
 0x682   :  { %3361 = vst [vmem:[#allocation12 + $0x20] sm:$0xff] %v3313_v42  ;;  %v3314_v1 = vmax.f32 %v3298_v34, 0.0  ;;  %v6410_v34 = vld [vmem:[#allocation59_spill] sm:$0xff] }
 0x683   :  { %v4304_v27 = vpop.eup %4303  ;;  %4309 = vrcp.f32 %v3254_v63  ;;  %v2160_v13 = vadd.f32 %v6410_v34, %v6166_v61 }
 0x684   :  { %3362 = vst [vmem:[#allocation12 + $0x28] sm:$0xff] %v3314_v1  ;;  %v3283_v0 = vmul.f32 %v4304_v27, %v3196_v46 }
 0x685   :  { %v4306_v33 = vpop.eup %4305  ;;  %v3216_v28 = vpop.f32.mrb[148].mxu0 }
 0x686   :  { %v3299_v41 = vadd.f32 %v3283_v0, %v2126_v2  ;;  %v3284_v50 = vmul.f32 %v4306_v33, %v3200_v39  ;;  %v3218_v20 = vpop.f32.mrb[149].mxu0  ;;  %v6411_v33 = vld [vmem:[#allocation60_spill] sm:$0xff] }
 0x687   :  { %v3255_v18 = vadd.f32 1e-06, %v3218_v20  ;;  %v3220_v57 = vpop.f32.mrb[150].mxu0 }
 0x688   :  { %v3315_v25 = vmax.f32 %v3299_v41, 0.0  ;;  %v3300_v6 = vadd.f32 %v3284_v50, %v2130_v10  ;;  %v3222_v11 = vpop.f32.mrb[151].mxu0  ;;  %v6412_v41 = vld [vmem:[#allocation61_spill] sm:$0xff] }
 0x689   :  { %4311 = vrcp.f32 %v3255_v18  ;;  %v3256_v32 = vadd.f32 1e-06, %v3222_v11  ;;  %v2170_v50 = vadd.f32 %v6412_v41, %v6166_v61 }
 0x68a   :  { %3363 = vst [vmem:[#allocation12 + $0x30] sm:$0xff] %v3315_v25  ;;  %v3316_v15 = vmax.f32 %v3300_v6, 0.0 }
 0x68b   :  { %v4308_v22 = vpop.eup %4307  ;;  %4313 = vrcp.f32 %v3256_v32 }
 0x68c   :  { %3364 = vst [vmem:[#allocation12 + $0x38] sm:$0xff] %v3316_v15  ;;  %v3285_v55 = vmul.f32 %v4308_v22, %v3206_v59 }
 0x68d   :  { %v4310_v16 = vpop.eup %4309  ;;  %v3226_v9 = vpop.f32.mrb[152].mxu0 }
 0x68e   :  { %v3301_v12 = vadd.f32 %v3285_v55, %v2136_v48  ;;  %v3286_v51 = vmul.f32 %v4310_v16, %v3210_v17  ;;  %v3228_v58 = vpop.f32.mrb[153].mxu0 }
 0x68f   :  { %v3257_v44 = vadd.f32 1e-06, %v3228_v58  ;;  %v3230_v62 = vpop.f32.mrb[154].mxu0 }
 0x690   :  { %v3317_v8 = vmax.f32 %v3301_v12, 0.0  ;;  %v3302_v46 = vadd.f32 %v3286_v51, %v2140_v7  ;;  %v3232_v29 = vpop.f32.mrb[155].mxu0 }
 0x691   :  { %4315 = vrcp.f32 %v3257_v44  ;;  %v3258_v4 = vadd.f32 1e-06, %v3232_v29 }
 0x692   :  { %3365 = vst [vmem:[#allocation12 + $0x40] sm:$0xff] %v3317_v8  ;;  %v3318_v21 = vmax.f32 %v3302_v46, 0.0 }
 0x693   :  { %v4312_v23 = vpop.eup %4311  ;;  %4317 = vrcp.f32 %v3258_v4 }
 0x694   :  { %3366 = vst [vmem:[#allocation12 + $0x48] sm:$0xff] %v3318_v21  ;;  %v3287_v39 = vmul.f32 %v4312_v23, %v3216_v28  ;;  %v2166_v28 = vadd.f32 %v6411_v33, %v6166_v61 }
 0x695   :  { %v4314_v40 = vpop.eup %4313  ;;  %v3236_v37 = vpop.f32.mrb[156].mxu0 }
 0x696   :  { %v3303_v14 = vadd.f32 %v3287_v39, %v2146_v49  ;;  %v3288_v30 = vmul.f32 %v4314_v40, %v3220_v57  ;;  %v3238_v31 = vpop.f32.mrb[157].mxu0 }
 0x697   :  { %v3259_v5 = vadd.f32 1e-06, %v3238_v31  ;;  %v3240_v45 = vpop.f32.mrb[158].mxu0 }
 0x698   :  { %v3319_v52 = vmax.f32 %v3303_v14, 0.0  ;;  %v3304_v59 = vadd.f32 %v3288_v30, %v2150_v53  ;;  %v3242_v56 = vpop.f32.mrb[159].mxu0 }
 0x699   :  { %4319 = vrcp.f32 %v3259_v5  ;;  %v3260_v35 = vadd.f32 1e-06, %v3242_v56 }
 0x69a   :  { %3367 = vst [vmem:[#allocation12 + $0x50] sm:$0xff] %v3319_v52  ;;  %v3320_v26 = vmax.f32 %v3304_v59, 0.0 }
 0x69b   :  { %v4316_v60 = vpop.eup %4315  ;;  %4321 = vrcp.f32 %v3260_v35 }
 0x69c   :  { %3368 = vst [vmem:[#allocation12 + $0x58] sm:$0xff] %v3320_v26  ;;  %v3289_v17 = vmul.f32 %v4316_v60, %v3226_v9 }
 0x69d   :  { %v4318_v42 = vpop.eup %4317 }
 0x69e   :  { %v3305_v63 = vadd.f32 %v3289_v17, %v2156_v47  ;;  %v3290_v1 = vmul.f32 %v4318_v42, %v3230_v62 }
 0x6a0   :  { %v3321_v27 = vmax.f32 %v3305_v63, 0.0  ;;  %v3306_v3 = vadd.f32 %v3290_v1, %v2160_v13 }
 0x6a2   :  { %3369 = vst [vmem:[#allocation12 + $0x60] sm:$0xff] %v3321_v27  ;;  %v3322_v2 = vmax.f32 %v3306_v3, 0.0 }
 0x6a3   :  { %v4320_v0 = vpop.eup %4319 }
 0x6a4   :  { %3370 = vst [vmem:[#allocation12 + $0x68] sm:$0xff] %v3322_v2  ;;  %v3291_v19 = vmul.f32 %v4320_v0, %v3236_v37 }
 0x6a5   :  { %v4322_v10 = vpop.eup %4321 }
 0x6a6   :  { %v3307_v20 = vadd.f32 %v3291_v19, %v2166_v28  ;;  %v3292_v18 = vmul.f32 %v4322_v10, %v3240_v45 }
 0x6a8   :  { %v3323_v57 = vmax.f32 %v3307_v20, 0.0  ;;  %v3308_v25 = vadd.f32 %v3292_v18, %v2170_v50 }
 0x6aa   :  { %3371 = vst [vmem:[#allocation12 + $0x70] sm:$0xff] %v3323_v57  ;;  %v3324_v6 = vmax.f32 %v3308_v25, 0.0 }
 0x6ac   :  { %3372 = vst [vmem:[#allocation12 + $0x78] sm:$0xff] %v3324_v6 }
 0x6ad   :  { %4468 = shalt.err (!%p4465_p10)
}
 0x6ae   :  { %s6413_s13 = sld [smem:[#allocation66_spill]] }
 0x6b4   :  { %s4469_s23 = scalar_lea.hbm %s6413_s13, 2048 }
 0x6b5   :  { %p4470_p11 = scmp.ne.s32.totalorder %s6413_s13, %s4469_s23  ;;  %p4473_p12 = scmp.lt.u32.totalorder %s4469_s23, %s6413_s13 }
 0x6b7   :  { %p4475_p13 = pnand %p4473_p12, %p4470_p11 }
 0x6b9   :  { %4478 = shalt.err (!%p4475_p13)
}
 0x6ba   :  { %3412 = dma.vmem_to_hbm [thread:$0]  %s3407_s17, 2048, %s6413_s13, [#allocation13], %s4521_s27, %s4521_s27, %s4522_s9  }
 0x6bb   :  { %s4479_s8 = scalar_lea.vmem %s6200_s5, 2048  ;;  %p4484_p1 = scmp.lt.s32.totalorder %s6200_s5, %s6200_s5 }
 0x6bc   :  { %p4480_p0 = scmp.ne.s32.totalorder %s6200_s5, %s4479_s8  ;;  %p4485_p2 = scmp.lt.s32.totalorder %s4479_s8, %s4479_s8 }
 0x6be   :  { %p4486_p3 = por %p4485_p2, %p4484_p1 }
 0x6c0   :  { %p4487_p4 = pnand %p4486_p3, %p4480_p0 }
 0x6c2   :  { %4490 = shalt.err (!%p4487_p4)
}
 0x6c3   :  { %s6414_s26 = sld [smem:[#allocation67_spill]] }
 0x6c9   :  { %s4491_s15 = scalar_lea.hbm %s6414_s26, 2048 }
 0x6ca   :  { %p4492_p5 = scmp.ne.s32.totalorder %s6414_s26, %s4491_s15  ;;  %p4495_p6 = scmp.lt.u32.totalorder %s4491_s15, %s6414_s26 }
 0x6cc   :  { %p4497_p7 = pnand %p4495_p6, %p4492_p5 }
 0x6ce   :  { %4500 = shalt.err (!%p4497_p7)
}
 0x6cf   :  { %3424 = dma.vmem_to_hbm [thread:$0]  %s6200_s5, 2048, %s6414_s26, [#allocation13], %s4521_s27, %s4521_s27, %s4522_s9  }
 0x6d0   :  { %4507 = dma.done.wait [#allocation4], 2048  }
 0x6d1   :  { %4508 = vsyncadd [#allocation4], 4294965248 }
 0x6d2   :  { %4509 = dma.done.wait [#allocation13], 4096  }
 0x6d3   :  { %4510 = vsyncadd [#allocation13], 4294963200 }
 0x6d4   :  { %3434 = vsyncpa [#allocation3], 1 }
 0x6d5   :  { %3435 = vsyncpa [#allocation6], 1 }
 0x6d6   :  { %3436 = vsyncpa [#allocation9], 1 }
 0x6d7   :  { %3437 = vsyncpa [#allocation4], 1 }
 0x6d8   :  { %3438 = vsyncpa [#allocation13], 1 }

</bundles_post_ra>
